<compile_context>
chip_gen: v7x
topology: tpu7x:2x2x1
jax: 0.10.0
libtpu: 0.0.40
codegen_flags: <defaults>
</compile_context>

<pallas_src>
import functools

import jax
import jax.numpy as jnp
from jax.experimental import pallas as pl
from jax.experimental.pallas import tpu as pltpu

EPS = 1e-5


def _bn_relu_conv1x1_kernel(x_ref, g_ref, b_ref, w_ref, o_ref, acc_ref, *, m_true):
    # x_ref:   (TK, M)      f32  channel-major activation tile (TK input channels)
    # g_ref:   (TK, 1)      f32  gamma tile
    # b_ref:   (TK, 1)      f32  beta tile
    # w_ref:   (TCOUT, TK)  f32  1x1 conv weight tile
    # o_ref:   (TCOUT, M)   f32  output tile (resident across the Cin axis)
    # acc_ref: (TCOUT, M)   f32  VMEM accumulator
    k = pl.program_id(1)

    @pl.when(k == 0)
    def _():
        acc_ref[...] = jnp.zeros_like(acc_ref)

    x = x_ref[...]                                    # (TK, M)

    # Per-channel BN batch stats via XLU row reductions (MXU stays free for conv).
    s1 = jnp.sum(x, axis=-1, keepdims=True)           # (TK, 1)
    s2 = jnp.sum(x * x, axis=-1, keepdims=True)       # (TK, 1)
    inv_m = 1.0 / float(m_true)
    mean = s1 * inv_m
    var = s2 * inv_m - mean * mean                    # biased variance (training-mode BN)

    scale = jax.lax.rsqrt(var + EPS) * g_ref[...]     # (TK, 1)
    shift = b_ref[...] - mean * scale                 # (TK, 1)

    # BN + ReLU on the VPU (f32).
    y = jnp.maximum(x * scale + shift, 0.0)           # (TK, M)

    # Partial 1x1 conv: (TCOUT, TK) @ (TK, M) on the MXU, accumulated over Cin tiles.
    acc_ref[...] += jnp.dot(w_ref[...], y, preferred_element_type=jnp.float32)

    @pl.when(k == pl.num_programs(1) - 1)
    def _():
        o_ref[...] = acc_ref[...]


def _pick_cin_tile(cin):
    for tk in (512, 256, 128):
        if cin % tk == 0:
            return tk
    return cin


def _default_cout_split(cout):
    # Shard Cout across the two TensorCores only on v7x (2 TC/chip). Elsewhere a
    # split would just duplicate the x DMA on a serial grid, so keep it at 1.
    try:
        kind = jax.devices()[0].device_kind.lower()
    except Exception:
        return 1
    if ("v7" in kind or "7x" in kind) and cout % 2 == 0 and (cout // 2) % 8 == 0:
        return 2
    return 1


def bn_relu_conv1x1(x_nchw, gamma, beta, w_oihw):
    """x_nchw: (N, Cin, H, W); gamma/beta: (Cin,); w_oihw: (Cout, Cin, 1, 1)."""
    N, Cin, H, W = x_nchw.shape
    Cout = w_oihw.shape[0]
    M = N * H * W

    # Channel-major flatten.  For N == 1 this is a pure reshape (no transpose).
    if N == 1:
        x_cm = x_nchw.reshape(Cin, M)
    else:
        x_cm = jnp.transpose(x_nchw, (1, 0, 2, 3)).reshape(Cin, M)
    x_cm = x_cm.astype(jnp.float32)

    w_ck = w_oihw.reshape(Cout, Cin).astype(jnp.float32)       # zero-copy reshape
    g = gamma.astype(jnp.float32).reshape(Cin, 1)
    b = beta.astype(jnp.float32).reshape(Cin, 1)

    tk = _pick_cin_tile(Cin)
    cout_split = _default_cout_split(Cout)
    tcout = Cout // cout_split
    grid = (cout_split, Cin // tk)

    kernel = functools.partial(_bn_relu_conv1x1_kernel, m_true=M)

    out_cm = pl.pallas_call(
        kernel,
        out_shape=jax.ShapeDtypeStruct((Cout, M), jnp.float32),
        grid_spec=pltpu.PrefetchScalarGridSpec(
            num_scalar_prefetch=0,
            grid=grid,
            in_specs=[
                pl.BlockSpec((tk, M), lambda p, k: (k, 0)),        # x tile
                pl.BlockSpec((tk, 1), lambda p, k: (k, 0)),        # gamma tile
                pl.BlockSpec((tk, 1), lambda p, k: (k, 0)),        # beta tile
                pl.BlockSpec((tcout, tk), lambda p, k: (p, k)),    # weight tile
            ],
            out_specs=pl.BlockSpec((tcout, M), lambda p, k: (p, 0)),
            scratch_shapes=[pltpu.VMEM((tcout, M), jnp.float32)],
        ),
        compiler_params=pltpu.CompilerParams(
            dimension_semantics=("parallel", "arbitrary"),
            vmem_limit_bytes=32 * 1024 * 1024,
        ),
    )(x_cm, g, b, w_ck)

    # (Cout, M) -> NCHW: pure reshape for N == 1.
    if N == 1:
        return out_cm.reshape(1, Cout, H, W)
    return jnp.transpose(out_cm.reshape(Cout, N, H, W), (1, 0, 2, 3))


if __name__ == "__main__":
    key = jax.random.PRNGKey(0)
    k_x, k_g, k_b, k_w = jax.random.split(key, 4)

    # Shapes from the module: x309 = (1, 1024, 14, 14), Conv2d(1024 -> 128, 1x1).
    N, Cin, H, W, Cout = 1, 1024, 14, 14, 128

    x = jax.random.normal(k_x, (N, Cin, H, W), dtype=jnp.float32)
    # PyTorch defaults are gamma=1, beta=0; perturb deterministically to
    # exercise the affine math.
    gamma = 1.0 + 0.1 * jax.random.normal(k_g, (Cin,), dtype=jnp.float32)
    beta = 0.1 * jax.random.normal(k_b, (Cin,), dtype=jnp.float32)
    w = jax.random.normal(k_w, (Cout, Cin, 1, 1), dtype=jnp.float32) * (1.0 / (Cin ** 0.5))

    out = jax.block_until_ready(bn_relu_conv1x1(x, gamma, beta, w))
    assert out.shape == (N, Cout, H, W), out.shape

    # Pure-JAX reference (training-mode BN with biased variance) for correctness.
    x_mc = jnp.transpose(x, (0, 2, 3, 1)).reshape(-1, Cin)
    mean = x_mc.mean(axis=0, keepdims=True)
    var = ((x_mc - mean) ** 2).mean(axis=0, keepdims=True)
    y = (x_mc - mean) / jnp.sqrt(var + EPS) * gamma[None, :] + beta[None, :]
    y = jnp.maximum(y, 0.0)
    ref = y @ jnp.transpose(w.reshape(Cout, Cin), (1, 0))
    ref = jnp.transpose(ref.reshape(N, H, W, Cout), (0, 3, 1, 2))
    max_err = float(jnp.max(jnp.abs(out - ref)))
    assert jnp.allclose(out, ref, atol=1e-3, rtol=1e-3), max_err

    print("KERNEL_OK")
</pallas_src>

<mosaic_0001>
module attributes {stable_mosaic.version = 11 : i64} {
  func.func @_bn_relu_conv1x1_kernel(%arg0: i32, %arg1: i32, %arg2: memref<512x196xf32, #tpu.memory_space<vmem>>, %arg3: memref<512x1xf32, #tpu.memory_space<vmem>>, %arg4: memref<512x1xf32, #tpu.memory_space<vmem>>, %arg5: memref<128x512xf32, #tpu.memory_space<vmem>>, %arg6: memref<128x196xf32, #tpu.memory_space<vmem>>, %arg7: memref<128x196xf32, #tpu.memory_space<vmem>>) attributes {dimension_semantics = [#tpu.dimension_semantics<parallel>, #tpu.dimension_semantics<arbitrary>], iteration_bounds = array<i64: 1, 2>, scalar_prefetch = 0 : i64, scratch_operands = 1 : i64, tpu.core_type = #tpu.core_type<tc>, window_params = [{transform_indices = @transform_0, window_bounds = array<i64: 512, 196>}, {transform_indices = @transform_1, window_bounds = array<i64: 512, 1>}, {transform_indices = @transform_2, window_bounds = array<i64: 512, 1>}, {transform_indices = @transform_3, window_bounds = array<i64: 128, 512>}, {transform_indices = @transform_4, window_bounds = array<i64: 128, 196>}]} {
    %c0_i32 = arith.constant 0 : i32
    %0 = arith.cmpi eq, %arg1, %c0_i32 : i32
    %1 = arith.extui %0 : i1 to i32
    %c0_i32_0 = arith.constant 0 : i32
    %2 = arith.cmpi ne, %1, %c0_i32_0 : i32
    scf.if %2 {
      %cst_19 = arith.constant 0.000000e+00 : f32
      %37 = vector.broadcast %cst_19 : f32 to vector<128x196xf32>
      %c0_20 = arith.constant 0 : index
      %c0_21 = arith.constant 0 : index
      %38 = vector.load %arg7[%c0_20, %c0_21] : memref<128x196xf32, #tpu.memory_space<vmem>>, vector<128x196xf32>
      tpu.vector_store %arg7[%c0_20, %c0_21], %37 {strides = array<i32>} : memref<128x196xf32, #tpu.memory_space<vmem>>, vector<128x196xf32>,
    } else {
    }
    %c0 = arith.constant 0 : index
    %c0_1 = arith.constant 0 : index
    %3 = vector.load %arg2[%c0, %c0_1] : memref<512x196xf32, #tpu.memory_space<vmem>>, vector<512x196xf32>
    %cst = arith.constant dense<0.000000e+00> : vector<512xf32>
    %4 = vector.multi_reduction <add>, %3, %cst [1] : vector<512x196xf32> to vector<512xf32>
    %5 = vector.shape_cast %4 : vector<512xf32> to vector<512x1xf32>
    %6 = arith.mulf %3, %3 : vector<512x196xf32>
    %cst_2 = arith.constant dense<0.000000e+00> : vector<512xf32>
    %7 = vector.multi_reduction <add>, %6, %cst_2 [1] : vector<512x196xf32> to vector<512xf32>
    %8 = vector.shape_cast %7 : vector<512xf32> to vector<512x1xf32>
    %cst_3 = arith.constant 0.00510204071 : f32
    %9 = vector.broadcast %cst_3 : f32 to vector<512x1xf32>
    %10 = arith.mulf %5, %9 : vector<512x1xf32>
    %cst_4 = arith.constant 0.00510204071 : f32
    %11 = vector.broadcast %cst_4 : f32 to vector<512x1xf32>
    %12 = arith.mulf %8, %11 : vector<512x1xf32>
    %13 = arith.mulf %10, %10 : vector<512x1xf32>
    %14 = arith.subf %12, %13 : vector<512x1xf32>
    %cst_5 = arith.constant 9.99999974E-6 : f32
    %15 = vector.broadcast %cst_5 : f32 to vector<512x1xf32>
    %16 = arith.addf %14, %15 : vector<512x1xf32>
    %17 = math.rsqrt %16 : vector<512x1xf32>
    %c0_6 = arith.constant 0 : index
    %c0_7 = arith.constant 0 : index
    %18 = vector.load %arg3[%c0_6, %c0_7] : memref<512x1xf32, #tpu.memory_space<vmem>>, vector<512x1xf32>
    %19 = arith.mulf %17, %18 : vector<512x1xf32>
    %c0_8 = arith.constant 0 : index
    %c0_9 = arith.constant 0 : index
    %20 = vector.load %arg4[%c0_8, %c0_9] : memref<512x1xf32, #tpu.memory_space<vmem>>, vector<512x1xf32>
    %21 = arith.mulf %10, %19 : vector<512x1xf32>
    %22 = arith.subf %20, %21 : vector<512x1xf32>
    %23 = vector.broadcast %19 : vector<512x1xf32> to vector<512x196xf32>
    %24 = arith.mulf %3, %23 : vector<512x196xf32>
    %25 = vector.broadcast %22 : vector<512x1xf32> to vector<512x196xf32>
    %26 = arith.addf %24, %25 : vector<512x196xf32>
    %cst_10 = arith.constant 0.000000e+00 : f32
    %27 = vector.broadcast %cst_10 : f32 to vector<512x196xf32>
    %28 = arith.maximumf %26, %27 : vector<512x196xf32>
    %c0_11 = arith.constant 0 : index
    %c0_12 = arith.constant 0 : index
    %29 = vector.load %arg7[%c0_11, %c0_12] : memref<128x196xf32, #tpu.memory_space<vmem>>, vector<128x196xf32>
    %c0_13 = arith.constant 0 : index
    %c0_14 = arith.constant 0 : index
    %30 = vector.load %arg5[%c0_13, %c0_14] : memref<128x512xf32, #tpu.memory_space<vmem>>, vector<128x512xf32>
    %cst_15 = arith.constant dense<0.000000e+00> : vector<128x196xf32>
    %31 = tpu.matmul %30, %28, %cst_15 {dimension_numbers = #tpu.dot_dimension_numbers<[1], [0], [0], [1], [0, 0, 1, 1], [], []>} : vector<128x512xf32>, vector<512x196xf32>, vector<128x196xf32> -> vector<128x196xf32>
    %32 = arith.addf %29, %31 : vector<128x196xf32>
    %c0_16 = arith.constant 0 : index
    %c0_17 = arith.constant 0 : index
    %33 = vector.load %arg7[%c0_16, %c0_17] : memref<128x196xf32, #tpu.memory_space<vmem>>, vector<128x196xf32>
    tpu.vector_store %arg7[%c0_16, %c0_17], %32 {strides = array<i32>} : memref<128x196xf32, #tpu.memory_space<vmem>>, vector<128x196xf32>,
    %c1_i32 = arith.constant 1 : i32
    %34 = arith.cmpi eq, %arg1, %c1_i32 : i32
    %35 = arith.extui %34 : i1 to i32
    %c0_i32_18 = arith.constant 0 : i32
    %36 = arith.cmpi ne, %35, %c0_i32_18 : i32
    scf.if %36 {
      %c0_19 = arith.constant 0 : index
      %c0_20 = arith.constant 0 : index
      %37 = vector.load %arg7[%c0_19, %c0_20] : memref<128x196xf32, #tpu.memory_space<vmem>>, vector<128x196xf32>
      %c0_21 = arith.constant 0 : index
      %c0_22 = arith.constant 0 : index
      %38 = vector.load %arg6[%c0_21, %c0_22] : memref<128x196xf32, #tpu.memory_space<vmem>>, vector<128x196xf32>
      tpu.vector_store %arg6[%c0_21, %c0_22], %37 {strides = array<i32>} : memref<128x196xf32, #tpu.memory_space<vmem>>, vector<128x196xf32>,
    } else {
    }
    return
  }
  func.func @transform_0(%arg0: i32, %arg1: i32) -> (i32, i32) {
    %c0_i32 = arith.constant 0 : i32
    %c0_i32_0 = arith.constant 0 : i32
    return %arg1, %c0_i32 : i32, i32
  }
  func.func @transform_1(%arg0: i32, %arg1: i32) -> (i32, i32) {
    %c0_i32 = arith.constant 0 : i32
    %c0_i32_0 = arith.constant 0 : i32
    return %arg1, %c0_i32 : i32, i32
  }
  func.func @transform_2(%arg0: i32, %arg1: i32) -> (i32, i32) {
    %c0_i32 = arith.constant 0 : i32
    %c0_i32_0 = arith.constant 0 : i32
    return %arg1, %c0_i32 : i32, i32
  }
  func.func @transform_3(%arg0: i32, %arg1: i32) -> (i32, i32) {
    %c0_i32 = arith.constant 0 : i32
    return %arg0, %arg1 : i32, i32
  }
  func.func @transform_4(%arg0: i32, %arg1: i32) -> (i32, i32) {
    %c0_i32 = arith.constant 0 : i32
    %c0_i32_0 = arith.constant 0 : i32
    return %arg0, %c0_i32 : i32, i32
  }
}

</mosaic_0001>

<bundles_post_ra>
// kernel: tpu_custom_call.1
= control target key start
LH: loop header
LB: loop body
LE: loop exit
PB: predicated region body
PF: predicated region fallthrough
CT: control target
= control target key end

     0   :  { %s4178_s15 = smov 0   ;;  %s4180_s16 = smov 0   ;;  %s6637_s0 = inlined_call_operand.vmem [shape: f32[1024,196], index: 0, kind: input, shape index: {}]   ;;  %s6638_s1 = inlined_call_operand.vmem [shape: f32[1024,1], index: 1, kind: input, shape index: {}]   ;;  %s6639_s2 = inlined_call_operand.vmem [shape: f32[1024,1], index: 2, kind: input, shape index: {}]   ;;  %s6640_s3 = inlined_call_operand.vmem [shape: f32[128,1024], index: 3, kind: input, shape index: {}]   ;;  %s6641_s4 = inlined_call_operand.vmem [shape: f32[128,196], index: 4, kind: output, shape index: {}]  }
   0x1   :  { %s4182_s17 = smov 0   ;;  %s4184_s18 = smov 0  }
   0x2   :  { %s4186_s19 = smov 0  }
   0x3 LB: > { %s23_s20 = sadd.s32 1, %s4145_s18  ;;  %p120_p1 = scmp.ne.s32.totalorder %s4137_s16, %s4133_s15  ;;  %s4149_s19 = sphi %s4186_s19, %s14_s19   ;;  %s4145_s18 = sphi %s4184_s18, %s7067_s18   ;;  %s4141_s17 = sphi %s4182_s17, %s7066_s17   ;;  %s4137_s16 = sphi %s4180_s16, %s7065_s16   ;;  %s4133_s15 = sphi %s4178_s15, %s7064_s15  }
   0x4   : > { %p24_p0 = scmp.ge.s32.totalorder %s23_s20, 2  ;;  %p121_p2 = scmp.eq.s32.totalorder %s4149_s19, 0 }
   0x5   : > { %s113_s22 = sadd.s32 1, %s4137_s16  ;;  %p3630_p5 = scmp.ge.s32.totalorder %s4149_s19, 2 }
   0x6   : > { %s7069_s20 = smov (%p24_p0, %s23_s20), 0  ;;  %p122_p3 = por %p121_p2, %p120_p1 }
   0x7   : > { %s109_s21 = ssub.s32 %s4145_s18, %s7069_s20  ;;  %172 = sbr.rel (%p3630_p5) target bundleno = 50 (0x32), region = 16 }
   0x8   : > { %p111_p4 = scmp.eq.s32.totalorder %s109_s21, 0 }
   0xa   : > { %s4213_s23 = scalar_select %p111_p4, %s4137_s16, %s113_s22  }
   0xe   : > { %203 = sbr.rel (!%p122_p3) target bundleno = 50 (0x32), region = 32  ;;  %s205_s24 = sand.u32 (%p122_p3), 1, %s4137_s16  }
   0xf   : > { %s3649_s25 = sshll.u32 (%p122_p3), %s4145_s18, 5  ;;  %s3631_s26 = sshll.u32 (%p122_p3), %s205_s24, 9 }
  0x10   : > { %s4221_s29 = scalar_lea.vmem (%p122_p3), %s6640_s3, %s3649_s25  ;;  %s4226_s30 = scalar_lea.vmem (%p122_p3), [#allocation3], %s3631_s26 }
  0x11   : > { %v226_v0 = vld [vmem:[%s4221_s29] sm:$0xff] (%p122_p3)  ;;  %v228_v1 = vld [vmem:[%s4221_s29 + $0x8] sm:$0xff] (%p122_p3)  ;;  %v230_v2 = vld [vmem:[%s4221_s29 + $0x10] sm:$0xff] (%p122_p3) }
  0x12   : > { %227 = vst [vmem:[%s4226_s30] sm:$0xff] (%p122_p3), %v226_v0  ;;  %229 = vst [vmem:[%s4226_s30 + $0x8] sm:$0xff] (%p122_p3), %v228_v1  ;;  %v232_v3 = vld [vmem:[%s4221_s29 + $0x18] sm:$0xff] (%p122_p3)  ;;  %v234_v4 = vld [vmem:[%s4221_s29 + $0x40] sm:$0xff] (%p122_p3) }
  0x13   : > { %231 = vst [vmem:[%s4226_s30 + $0x10] sm:$0xff] (%p122_p3), %v230_v2  ;;  %v236_v5 = vld [vmem:[%s4221_s29 + $0x48] sm:$0xff] (%p122_p3)  ;;  %233 = vst [vmem:[%s4226_s30 + $0x18] sm:$0xff] (%p122_p3), %v232_v3  ;;  %v238_v6 = vld [vmem:[%s4221_s29 + $0x50] sm:$0xff] (%p122_p3) }
  0x14   : > { %235 = vst [vmem:[%s4226_s30 + $0x20] sm:$0xff] (%p122_p3), %v234_v4  ;;  %237 = vst [vmem:[%s4226_s30 + $0x28] sm:$0xff] (%p122_p3), %v236_v5  ;;  %v240_v7 = vld [vmem:[%s4221_s29 + $0x58] sm:$0xff] (%p122_p3)  ;;  %v242_v8 = vld [vmem:[%s4221_s29 + $0x80] sm:$0xff] (%p122_p3) }
  0x15   : > { %239 = vst [vmem:[%s4226_s30 + $0x30] sm:$0xff] %v238_v6  ;;  %241 = vst [vmem:[%s4226_s30 + $0x38] sm:$0xff] %v240_v7  ;;  %v244_v9 = vld [vmem:[%s4221_s29 + $0x88] sm:$0xff]  ;;  %v246_v10 = vld [vmem:[%s4221_s29 + $0x90] sm:$0xff] }
  0x16   : > { %243 = vst [vmem:[%s4226_s30 + $0x40] sm:$0xff] %v242_v8  ;;  %v248_v11 = vld [vmem:[%s4221_s29 + $0x98] sm:$0xff]  ;;  %245 = vst [vmem:[%s4226_s30 + $0x48] sm:$0xff] %v244_v9  ;;  %v250_v12 = vld [vmem:[%s4221_s29 + $0xc0] sm:$0xff] }
  0x17   : > { %247 = vst [vmem:[%s4226_s30 + $0x50] sm:$0xff] %v246_v10  ;;  %249 = vst [vmem:[%s4226_s30 + $0x58] sm:$0xff] %v248_v11  ;;  %v252_v13 = vld [vmem:[%s4221_s29 + $0xc8] sm:$0xff]  ;;  %v254_v14 = vld [vmem:[%s4221_s29 + $0xd0] sm:$0xff] }
  0x18   : > { %251 = vst [vmem:[%s4226_s30 + $0x60] sm:$0xff] %v250_v12  ;;  %253 = vst [vmem:[%s4226_s30 + $0x68] sm:$0xff] %v252_v13  ;;  %v256_v15 = vld [vmem:[%s4221_s29 + $0xd8] sm:$0xff]  ;;  %v258_v16 = vld [vmem:[%s4221_s29 + $0x100] sm:$0xff] }
  0x19   : > { %255 = vst [vmem:[%s4226_s30 + $0x70] sm:$0xff] %v254_v14  ;;  %v260_v17 = vld [vmem:[%s4221_s29 + $0x108] sm:$0xff]  ;;  %257 = vst [vmem:[%s4226_s30 + $0x78] sm:$0xff] %v256_v15  ;;  %v262_v18 = vld [vmem:[%s4221_s29 + $0x110] sm:$0xff] }
  0x1a   : > { %259 = vst [vmem:[%s4226_s30 + $0x80] sm:$0xff] %v258_v16  ;;  %261 = vst [vmem:[%s4226_s30 + $0x88] sm:$0xff] %v260_v17  ;;  %v264_v19 = vld [vmem:[%s4221_s29 + $0x118] sm:$0xff]  ;;  %v266_v20 = vld [vmem:[%s4221_s29 + $0x140] sm:$0xff] }
  0x1b   : > { %263 = vst [vmem:[%s4226_s30 + $0x90] sm:$0xff] %v262_v18  ;;  %265 = vst [vmem:[%s4226_s30 + $0x98] sm:$0xff] %v264_v19  ;;  %v268_v21 = vld [vmem:[%s4221_s29 + $0x148] sm:$0xff]  ;;  %v270_v22 = vld [vmem:[%s4221_s29 + $0x150] sm:$0xff] }
  0x1c   : > { %267 = vst [vmem:[%s4226_s30 + $0xa0] sm:$0xff] %v266_v20  ;;  %v272_v23 = vld [vmem:[%s4221_s29 + $0x158] sm:$0xff]  ;;  %269 = vst [vmem:[%s4226_s30 + $0xa8] sm:$0xff] %v268_v21  ;;  %v274_v24 = vld [vmem:[%s4221_s29 + $0x180] sm:$0xff] }
  0x1d   : > { %271 = vst [vmem:[%s4226_s30 + $0xb0] sm:$0xff] %v270_v22  ;;  %273 = vst [vmem:[%s4226_s30 + $0xb8] sm:$0xff] %v272_v23  ;;  %v276_v25 = vld [vmem:[%s4221_s29 + $0x188] sm:$0xff]  ;;  %v278_v26 = vld [vmem:[%s4221_s29 + $0x190] sm:$0xff] }
  0x1e   : > { %275 = vst [vmem:[%s4226_s30 + $0xc0] sm:$0xff] %v274_v24  ;;  %277 = vst [vmem:[%s4226_s30 + $0xc8] sm:$0xff] %v276_v25  ;;  %v280_v27 = vld [vmem:[%s4221_s29 + $0x198] sm:$0xff]  ;;  %v282_v28 = vld [vmem:[%s4221_s29 + $0x1c0] sm:$0xff] }
  0x1f   : > { %279 = vst [vmem:[%s4226_s30 + $0xd0] sm:$0xff] %v278_v26  ;;  %v284_v29 = vld [vmem:[%s4221_s29 + $0x1c8] sm:$0xff]  ;;  %281 = vst [vmem:[%s4226_s30 + $0xd8] sm:$0xff] %v280_v27  ;;  %v286_v30 = vld [vmem:[%s4221_s29 + $0x1d0] sm:$0xff] }
  0x20   : > { %283 = vst [vmem:[%s4226_s30 + $0xe0] sm:$0xff] %v282_v28  ;;  %285 = vst [vmem:[%s4226_s30 + $0xe8] sm:$0xff] %v284_v29  ;;  %v288_v31 = vld [vmem:[%s4221_s29 + $0x1d8] sm:$0xff]  ;;  %v290_v32 = vld [vmem:[%s4221_s29 + $0x200] sm:$0xff] }
  0x21   : > { %287 = vst [vmem:[%s4226_s30 + $0xf0] sm:$0xff] %v286_v30  ;;  %289 = vst [vmem:[%s4226_s30 + $0xf8] sm:$0xff] %v288_v31  ;;  %v292_v33 = vld [vmem:[%s4221_s29 + $0x208] sm:$0xff]  ;;  %v294_v34 = vld [vmem:[%s4221_s29 + $0x210] sm:$0xff] }
  0x22   : > { %291 = vst [vmem:[%s4226_s30 + $0x100] sm:$0xff] %v290_v32  ;;  %v296_v35 = vld [vmem:[%s4221_s29 + $0x218] sm:$0xff]  ;;  %293 = vst [vmem:[%s4226_s30 + $0x108] sm:$0xff] %v292_v33  ;;  %v298_v36 = vld [vmem:[%s4221_s29 + $0x240] sm:$0xff] }
  0x23   : > { %295 = vst [vmem:[%s4226_s30 + $0x110] sm:$0xff] %v294_v34  ;;  %297 = vst [vmem:[%s4226_s30 + $0x118] sm:$0xff] %v296_v35  ;;  %v300_v37 = vld [vmem:[%s4221_s29 + $0x248] sm:$0xff]  ;;  %v302_v38 = vld [vmem:[%s4221_s29 + $0x250] sm:$0xff] }
  0x24   : > { %299 = vst [vmem:[%s4226_s30 + $0x120] sm:$0xff] %v298_v36  ;;  %301 = vst [vmem:[%s4226_s30 + $0x128] sm:$0xff] %v300_v37  ;;  %v304_v39 = vld [vmem:[%s4221_s29 + $0x258] sm:$0xff]  ;;  %v306_v40 = vld [vmem:[%s4221_s29 + $0x280] sm:$0xff] }
  0x25   : > { %303 = vst [vmem:[%s4226_s30 + $0x130] sm:$0xff] %v302_v38  ;;  %v308_v41 = vld [vmem:[%s4221_s29 + $0x288] sm:$0xff]  ;;  %305 = vst [vmem:[%s4226_s30 + $0x138] sm:$0xff] %v304_v39  ;;  %v310_v42 = vld [vmem:[%s4221_s29 + $0x290] sm:$0xff] }
  0x26   : > { %307 = vst [vmem:[%s4226_s30 + $0x140] sm:$0xff] %v306_v40  ;;  %309 = vst [vmem:[%s4226_s30 + $0x148] sm:$0xff] %v308_v41  ;;  %v312_v43 = vld [vmem:[%s4221_s29 + $0x298] sm:$0xff]  ;;  %v314_v44 = vld [vmem:[%s4221_s29 + $0x2c0] sm:$0xff] }
  0x27   : > { %311 = vst [vmem:[%s4226_s30 + $0x150] sm:$0xff] %v310_v42  ;;  %313 = vst [vmem:[%s4226_s30 + $0x158] sm:$0xff] %v312_v43  ;;  %v316_v45 = vld [vmem:[%s4221_s29 + $0x2c8] sm:$0xff]  ;;  %v318_v46 = vld [vmem:[%s4221_s29 + $0x2d0] sm:$0xff] }
  0x28   : > { %315 = vst [vmem:[%s4226_s30 + $0x160] sm:$0xff] %v314_v44  ;;  %v320_v47 = vld [vmem:[%s4221_s29 + $0x2d8] sm:$0xff]  ;;  %317 = vst [vmem:[%s4226_s30 + $0x168] sm:$0xff] %v316_v45  ;;  %v322_v48 = vld [vmem:[%s4221_s29 + $0x300] sm:$0xff] }
  0x29   : > { %319 = vst [vmem:[%s4226_s30 + $0x170] sm:$0xff] %v318_v46  ;;  %321 = vst [vmem:[%s4226_s30 + $0x178] sm:$0xff] %v320_v47  ;;  %v324_v49 = vld [vmem:[%s4221_s29 + $0x308] sm:$0xff]  ;;  %v326_v50 = vld [vmem:[%s4221_s29 + $0x310] sm:$0xff] }
  0x2a   : > { %323 = vst [vmem:[%s4226_s30 + $0x180] sm:$0xff] %v322_v48  ;;  %325 = vst [vmem:[%s4226_s30 + $0x188] sm:$0xff] %v324_v49  ;;  %v328_v51 = vld [vmem:[%s4221_s29 + $0x318] sm:$0xff]  ;;  %v330_v52 = vld [vmem:[%s4221_s29 + $0x340] sm:$0xff] }
  0x2b   : > { %327 = vst [vmem:[%s4226_s30 + $0x190] sm:$0xff] %v326_v50  ;;  %v332_v53 = vld [vmem:[%s4221_s29 + $0x348] sm:$0xff]  ;;  %329 = vst [vmem:[%s4226_s30 + $0x198] sm:$0xff] %v328_v51  ;;  %v334_v54 = vld [vmem:[%s4221_s29 + $0x350] sm:$0xff] }
  0x2c   : > { %331 = vst [vmem:[%s4226_s30 + $0x1a0] sm:$0xff] %v330_v52  ;;  %333 = vst [vmem:[%s4226_s30 + $0x1a8] sm:$0xff] %v332_v53  ;;  %v336_v55 = vld [vmem:[%s4221_s29 + $0x358] sm:$0xff]  ;;  %v338_v56 = vld [vmem:[%s4221_s29 + $0x380] sm:$0xff] }
  0x2d   : > { %335 = vst [vmem:[%s4226_s30 + $0x1b0] sm:$0xff] %v334_v54  ;;  %337 = vst [vmem:[%s4226_s30 + $0x1b8] sm:$0xff] %v336_v55  ;;  %v340_v57 = vld [vmem:[%s4221_s29 + $0x388] sm:$0xff]  ;;  %v342_v58 = vld [vmem:[%s4221_s29 + $0x390] sm:$0xff] }
  0x2e   : > { %339 = vst [vmem:[%s4226_s30 + $0x1c0] sm:$0xff] %v338_v56  ;;  %v344_v59 = vld [vmem:[%s4221_s29 + $0x398] sm:$0xff]  ;;  %341 = vst [vmem:[%s4226_s30 + $0x1c8] sm:$0xff] %v340_v57  ;;  %v346_v60 = vld [vmem:[%s4221_s29 + $0x3c0] sm:$0xff] }
  0x2f   : > { %343 = vst [vmem:[%s4226_s30 + $0x1d0] sm:$0xff] %v342_v58  ;;  %345 = vst [vmem:[%s4226_s30 + $0x1d8] sm:$0xff] %v344_v59  ;;  %v348_v61 = vld [vmem:[%s4221_s29 + $0x3c8] sm:$0xff]  ;;  %v350_v62 = vld [vmem:[%s4221_s29 + $0x3d0] sm:$0xff] }
  0x30   : > { %347 = vst [vmem:[%s4226_s30 + $0x1e0] sm:$0xff] %v346_v60  ;;  %349 = vst [vmem:[%s4226_s30 + $0x1e8] sm:$0xff] %v348_v61  ;;  %v352_v63 = vld [vmem:[%s4221_s29 + $0x3d8] sm:$0xff] }
  0x31   : > { %351 = vst [vmem:[%s4226_s30 + $0x1f0] sm:$0xff] %v350_v62  ;;  %353 = vst [vmem:[%s4226_s30 + $0x1f8] sm:$0xff] %v352_v63 }
  0x32 PF: > { %p3634_p6 = scmp.ge.s32.totalorder %s4149_s19, 1  ;;  %p358_p7 = scmp.lt.s32.totalorder %s4149_s19, 3 }
  0x34   : > { %p359_p8 = pnand %p3634_p6, %p358_p7 }
  0x36   : > { %362 = sbr.rel (%p359_p8) target bundleno = 1068 (0x42c), region = 55 }
  0x3d   : > { %s365_s5 = sand.u32 1, %s4133_s15   ;;  %s3636_s6 = sshll.u32 %s4141_s17, 6 }
  0x3e   : > { %s3635_s7 = sshll.u32 %s365_s5, 9  ;;  %p408_p9 = scmp.lt.s32.totalorder %s3636_s6, 127 }
  0x3f   : > { %s4372_s25 = scalar_lea.vmem [#allocation3], %s3635_s7  ;;  %p3643_p10 = scmp.ne.s32.totalorder %s4141_s17, 0 }
  0x40   : > { %s7071_s6 = smov (!%p408_p9, %s3636_s6), 127  ;;  %vm440_vm0 = vcmask (!%p3643_p10), 556032   ;;  %v4151_v0 = vmov (!%p3643_p10), 0.0  }
  0x41   : > { %s3650_s8 = sshll.u32 %s7071_s6, 4  ;;  %s3640_s9 = sshll.u32 %s7071_s6, 3  ;;  %439 = vst [vmem:[#allocation2] sm:$0xff] (!%p3643_p10), %v4151_v0  ;;  %442 = vst [vmem:[#allocation2 + $0x10] sm:$0xff] (!%p3643_p10), %v4151_v0 }
  0x42   : > { %s4360_s12 = scalar_lea.vmem %s6637_s0, %s3650_s8  ;;  %s4365_s21 = scalar_lea.vmem %s6638_s1, %s3640_s9  ;;  %444 = vst [vmem:[#allocation2 + $0x20] sm:$0xff] (!%p3643_p10), %v4151_v0  ;;  %446 = vst [vmem:[#allocation2 + $0x30] sm:$0xff] (!%p3643_p10), %v4151_v0 }
  0x43   : > { %s4370_s15 = scalar_lea.vmem %s6639_s2, %s3640_s9  ;;  %438 = sbr.rel (%p3643_p10) target bundleno = 81 (0x51), region = 63  ;;  %448 = vst [vmem:[#allocation2 + $0x40] sm:$0xff] (!%p3643_p10), %v4151_v0  ;;  %450 = vst [vmem:[#allocation2 + $0x50] sm:$0xff] (!%p3643_p10), %v4151_v0 }
  0x44   : > { %452 = vst [vmem:[#allocation2 + $0x60] sm:$0xff] (!%p3643_p10), %v4151_v0  ;;  %454 = vst [vmem:[#allocation2 + $0x70] sm:$0xff] (!%p3643_p10), %v4151_v0 }
  0x45   : > { %456 = vst [vmem:[#allocation2 + $0x80] sm:$0xff] (!%p3643_p10), %v4151_v0  ;;  %458 = vst [vmem:[#allocation2 + $0x90] sm:$0xff] (!%p3643_p10), %v4151_v0 }
  0x46   : > { %460 = vst [vmem:[#allocation2 + $0xa0] sm:$0xff] (!%p3643_p10), %v4151_v0  ;;  %462 = vst [vmem:[#allocation2 + $0xb0] sm:$0xff] (!%p3643_p10), %v4151_v0 }
  0x47   : > { %464 = vst [vmem:[#allocation2 + $0xc0] sm:$0xff] (!%p3643_p10), %v4151_v0  ;;  %466 = vst [vmem:[#allocation2 + $0xd0] sm:$0xff] (!%p3643_p10), %v4151_v0 }
  0x48   : > { %468 = vst [vmem:[#allocation2 + $0xe0] sm:$0xff] (!%p3643_p10), %v4151_v0  ;;  %470 = vst [vmem:[#allocation2 + $0xf0] sm:$0xff] (!%p3643_p10), %v4151_v0 }
  0x49   : > { %441 = vst.msk [vmem:[#allocation2 + $0x8] sm:$0xff] (!%p3643_p10), %vm440_vm0, %v4151_v0  ;;  %443 = vst.msk [vmem:[#allocation2 + $0x18] sm:$0xff] (!%p3643_p10), %vm440_vm0, %v4151_v0 }
  0x4a   : > { %445 = vst.msk [vmem:[#allocation2 + $0x28] sm:$0xff] %vm440_vm0, %v4151_v0  ;;  %447 = vst.msk [vmem:[#allocation2 + $0x38] sm:$0xff] %vm440_vm0, %v4151_v0 }
  0x4b   : > { %449 = vst.msk [vmem:[#allocation2 + $0x48] sm:$0xff] %vm440_vm0, %v4151_v0  ;;  %451 = vst.msk [vmem:[#allocation2 + $0x58] sm:$0xff] %vm440_vm0, %v4151_v0 }
  0x4c   : > { %453 = vst.msk [vmem:[#allocation2 + $0x68] sm:$0xff] %vm440_vm0, %v4151_v0  ;;  %455 = vst.msk [vmem:[#allocation2 + $0x78] sm:$0xff] %vm440_vm0, %v4151_v0 }
  0x4d   : > { %457 = vst.msk [vmem:[#allocation2 + $0x88] sm:$0xff] %vm440_vm0, %v4151_v0  ;;  %459 = vst.msk [vmem:[#allocation2 + $0x98] sm:$0xff] %vm440_vm0, %v4151_v0 }
  0x4e   : > { %461 = vst.msk [vmem:[#allocation2 + $0xa8] sm:$0xff] %vm440_vm0, %v4151_v0  ;;  %463 = vst.msk [vmem:[#allocation2 + $0xb8] sm:$0xff] %vm440_vm0, %v4151_v0 }
  0x4f   : > { %465 = vst.msk [vmem:[#allocation2 + $0xc8] sm:$0xff] %vm440_vm0, %v4151_v0  ;;  %467 = vst.msk [vmem:[#allocation2 + $0xd8] sm:$0xff] %vm440_vm0, %v4151_v0 }
  0x50   : > { %469 = vst.msk [vmem:[#allocation2 + $0xe8] sm:$0xff] %vm440_vm0, %v4151_v0  ;;  %471 = vst.msk [vmem:[#allocation2 + $0xf8] sm:$0xff] %vm440_vm0, %v4151_v0 }
  0x51 PF: > { %v4392_v1 = vld [vmem:[%s4360_s12 + $0x20] sm:$0xff]  ;;  %v4395_v2 = vld [vmem:[%s4360_s12 + $0x28] sm:$0xff]  ;;  %vm600_vm1 = vcmask 556032   ;;  %v4406_v6 = vld [vmem:[%s4360_s12 + $0x30] sm:$0xff]  ;;  %p3644_p11 = scmp.ne.s32.totalorder %s4141_s17, 1 }
  0x52   : > { %v4398_v3 = vld [vmem:[%s4360_s12] sm:$0xff]  ;;  %v609_v4 = vsel %vm600_vm1, %v4395_v2, 0.0  ;;  %v4403_v5 = vld [vmem:[%s4360_s12 + $0x8] sm:$0xff]  ;;  %v4409_v7 = vld [vmem:[%s4360_s12 + $0x38] sm:$0xff] }
  0x53   : > { %v610_v8 = vadd.f32 %v609_v4, %v4392_v1  ;;  %v601_v9 = vsel %vm600_vm1, %v4403_v5, 0.0  ;;  %v613_v10 = vsel %vm600_vm1, %v4409_v7, 0.0  ;;  %v4417_v11 = vld [vmem:[%s4360_s12 + $0x10] sm:$0xff]  ;;  %v4420_v12 = vld [vmem:[%s4360_s12 + $0x18] sm:$0xff]  ;;  %v4429_v16 = vld [vmem:[%s4360_s12 + $0x48] sm:$0xff] }
  0x54   : > { %v602_v13 = vadd.f32 %v601_v9, %v4398_v3  ;;  %v605_v14 = vsel %vm600_vm1, %v4420_v12, 0.0  ;;  %v4426_v15 = vld [vmem:[%s4360_s12 + $0x58] sm:$0xff]  ;;  %v614_v17 = vadd.f32 %v613_v10, %v4406_v6  ;;  %v4434_v19 = vld [vmem:[%s4360_s12 + $0x50] sm:$0xff]  ;;  %v4439_v21 = vld [vmem:[%s4360_s12 + $0x40] sm:$0xff]  ;;  %v617_v22 = vsel %vm600_vm1, %v4429_v16, 0.0 }
  0x55   : > { %611 = vadd.xlane.f32.xlu1 %v610_v8  ;;  %v606_v18 = vadd.f32 %v605_v14, %v4417_v11  ;;  %v621_v20 = vsel %vm600_vm1, %v4426_v15, 0.0  ;;  %v4444_v23 = vld [vmem:[%s4360_s12 + $0x78] sm:$0xff]  ;;  %v4447_v24 = vld [vmem:[%s4360_s12 + $0x68] sm:$0xff]  ;;  %v618_v26 = vadd.f32 %v617_v22, %v4439_v21  ;;  %v4452_v27 = vld [vmem:[%s4360_s12 + $0x70] sm:$0xff] }
  0x56   : > { %603 = vadd.xlane.f32.xlu0 %v602_v13  ;;  %v622_v25 = vadd.f32 %v621_v20, %v4434_v19  ;;  %v629_v28 = vsel %vm600_vm1, %v4444_v23, 0.0  ;;  %v4457_v29 = vld [vmem:[%s4360_s12 + $0x60] sm:$0xff]  ;;  %v625_v30 = vsel %vm600_vm1, %v4447_v24, 0.0  ;;  %v4462_v31 = vld [vmem:[%s4360_s12 + $0x98] sm:$0xff]  ;;  %v4465_v32 = vld [vmem:[%s4360_s12 + $0x88] sm:$0xff] }
  0x57   : > { %v630_v33 = vadd.f32 %v629_v28, %v4452_v27  ;;  %v626_v34 = vadd.f32 %v625_v30, %v4457_v29  ;;  %v4470_v35 = vld [vmem:[%s4360_s12 + $0x90] sm:$0xff]  ;;  %v637_v36 = vsel %vm600_vm1, %v4462_v31, 0.0  ;;  %v4475_v37 = vld [vmem:[%s4360_s12 + $0x80] sm:$0xff]  ;;  %v633_v38 = vsel %vm600_vm1, %v4465_v32, 0.0  ;;  %v4480_v39 = vld [vmem:[%s4360_s12 + $0xb8] sm:$0xff] }
  0x58   : > { %v4483_v40 = vld [vmem:[%s4360_s12 + $0xa8] sm:$0xff]  ;;  %v638_v41 = vadd.f32 %v637_v36, %v4470_v35  ;;  %v634_v42 = vadd.f32 %v633_v38, %v4475_v37  ;;  %v4488_v43 = vld [vmem:[%s4360_s12 + $0xb0] sm:$0xff]  ;;  %v645_v44 = vsel %vm600_vm1, %v4480_v39, 0.0  ;;  %v4493_v45 = vld [vmem:[%s4360_s12 + $0xa0] sm:$0xff] }
  0x59   : > { %615 = vadd.xlane.f32.xlu1 %v614_v17  ;;  %v641_v46 = vsel %vm600_vm1, %v4483_v40, 0.0  ;;  %v4498_v47 = vld [vmem:[%s4360_s12 + $0xd8] sm:$0xff]  ;;  %v4501_v48 = vld [vmem:[%s4360_s12 + $0xc8] sm:$0xff]  ;;  %v646_v49 = vadd.f32 %v645_v44, %v4488_v43  ;;  %v4506_v51 = vld [vmem:[%s4360_s12 + $0xd0] sm:$0xff] }
  0x5a   : > { %607 = vadd.xlane.f32.xlu0 %v606_v18  ;;  %v642_v50 = vadd.f32 %v641_v46, %v4493_v45  ;;  %v653_v52 = vsel %vm600_vm1, %v4498_v47, 0.0  ;;  %v4511_v53 = vld [vmem:[%s4360_s12 + $0xc0] sm:$0xff]  ;;  %v649_v54 = vsel %vm600_vm1, %v4501_v48, 0.0  ;;  %v4516_v55 = vld [vmem:[%s4360_s12 + $0xf8] sm:$0xff]  ;;  %v4519_v56 = vld [vmem:[%s4360_s12 + $0xe8] sm:$0xff] }
  0x5b   : > { %v654_v57 = vadd.f32 %v653_v52, %v4506_v51  ;;  %v650_v58 = vadd.f32 %v649_v54, %v4511_v53  ;;  %v4524_v59 = vld [vmem:[%s4360_s12 + $0xf0] sm:$0xff]  ;;  %v661_v60 = vsel %vm600_vm1, %v4516_v55, 0.0  ;;  %v4529_v61 = vld [vmem:[%s4360_s12 + $0xe0] sm:$0xff]  ;;  %v657_v62 = vsel %vm600_vm1, %v4519_v56, 0.0  ;;  %v4534_v63 = vld [vmem:[%s4360_s12 + $0x118] sm:$0xff] }
  0x5c   : > { %v4537_v0 = vld [vmem:[%s4360_s12 + $0x108] sm:$0xff]  ;;  %v662_v4 = vadd.f32 %v661_v60, %v4524_v59  ;;  %v658_v8 = vadd.f32 %v657_v62, %v4529_v61  ;;  %v4542_v9 = vld [vmem:[%s4360_s12 + $0x110] sm:$0xff]  ;;  %v669_v10 = vsel %vm600_vm1, %v4534_v63, 0.0  ;;  %v4547_v13 = vld [vmem:[%s4360_s12 + $0x100] sm:$0xff] }
  0x5d   : > { %623 = vadd.xlane.f32.xlu1 %v622_v25  ;;  %v665_v14 = vsel %vm600_vm1, %v4537_v0, 0.0  ;;  %v4552_v17 = vld [vmem:[%s4360_s12 + $0x138] sm:$0xff]  ;;  %v4555_v18 = vld [vmem:[%s4360_s12 + $0x128] sm:$0xff]  ;;  %v670_v20 = vadd.f32 %v669_v10, %v4542_v9  ;;  %v4560_v25 = vld [vmem:[%s4360_s12 + $0x130] sm:$0xff] }
  0x5e   : > { %619 = vadd.xlane.f32.xlu0 %v618_v26  ;;  %v666_v22 = vadd.f32 %v665_v14, %v4547_v13  ;;  %v677_v26 = vsel %vm600_vm1, %v4552_v17, 0.0  ;;  %v4565_v28 = vld [vmem:[%s4360_s12 + $0x120] sm:$0xff]  ;;  %v673_v30 = vsel %vm600_vm1, %v4555_v18, 0.0 }
  0x5f   : > { %v678_v36 = vadd.f32 %v677_v26, %v4560_v25  ;;  %v674_v38 = vadd.f32 %v673_v30, %v4565_v28  ;;  %v4583_v44 = vld [vmem:[%s4360_s12 + $0x140] sm:$0xff] }
  0x60   : > { %v4601_v60 = vld [vmem:[%s4360_s12 + $0x160] sm:$0xff] }
  0x61   : > { %631 = vadd.xlane.f32.xlu1 %v630_v33  ;;  %v4570_v33 = vld [vmem:[%s4360_s12 + $0x158] sm:$0xff]  ;;  %v4619_v26 = vld [vmem:[%s4360_s12 + $0x180] sm:$0xff] }
  0x62   : > { %627 = vadd.xlane.f32.xlu0 %v626_v34  ;;  %v4573_v34 = vld [vmem:[%s4360_s12 + $0x148] sm:$0xff]  ;;  %6765 = vst [vmem:[#allocation7_spill] sm:$0xff] %v4619_v26 }
  0x63   : > { %v681_v46 = vsel %vm600_vm1, %v4573_v34, 0.0 }
  0x64   : > { %v682_v54 = vadd.f32 %v681_v46, %v4583_v44 }
  0x65   : > { %639 = vadd.xlane.f32.xlu1 %v638_v41  ;;  %v4578_v41 = vld [vmem:[%s4360_s12 + $0x150] sm:$0xff] }
  0x66   : > { %635 = vadd.xlane.f32.xlu0 %v634_v42  ;;  %v685_v42 = vsel %vm600_vm1, %v4570_v33, 0.0 }
  0x67   : > { %v686_v52 = vadd.f32 %v685_v42, %v4578_v41 }
  0x69   : > { %647 = vadd.xlane.f32.xlu1 %v646_v49  ;;  %v4588_v49 = vld [vmem:[%s4360_s12 + $0x178] sm:$0xff] }
  0x6a   : > { %643 = vadd.xlane.f32.xlu0 %v642_v50  ;;  %v4591_v50 = vld [vmem:[%s4360_s12 + $0x168] sm:$0xff] }
  0x6b   : > { %v689_v62 = vsel %vm600_vm1, %v4591_v50, 0.0 }
  0x6c   : > { %v690_v14 = vadd.f32 %v689_v62, %v4601_v60 }
  0x6d   : > { %655 = vadd.xlane.f32.xlu1 %v654_v57  ;;  %v4596_v57 = vld [vmem:[%s4360_s12 + $0x170] sm:$0xff] }
  0x6e   : > { %651 = vadd.xlane.f32.xlu0 %v650_v58  ;;  %v693_v58 = vsel %vm600_vm1, %v4588_v49, 0.0 }
  0x6f   : > { %v694_v10 = vadd.f32 %v693_v58, %v4596_v57  ;;  %v4637_v58 = vld [vmem:[%s4360_s12 + $0x1a0] sm:$0xff] }
  0x70   : > { %6769 = vst [vmem:[#allocation11_spill] sm:$0xff] %v4637_v58 }
  0x71   : > { %663 = vadd.xlane.f32.xlu1 %v662_v4  ;;  %v4606_v4 = vld [vmem:[%s4360_s12 + $0x198] sm:$0xff] }
  0x72   : > { %659 = vadd.xlane.f32.xlu0 %v658_v8  ;;  %6762 = vst [vmem:[#allocation4_spill] sm:$0xff] %v4606_v4  ;;  %v4609_v8 = vld [vmem:[%s4360_s12 + $0x188] sm:$0xff] }
  0x73   : > { %6763 = vst [vmem:[#allocation5_spill] sm:$0xff] %v4609_v8  ;;  %v697_v30 = vsel %vm600_vm1, %v4609_v8, 0.0  ;;  %v4642_v8 = vld [vmem:[%s4360_s12 + $0x1d8] sm:$0xff] }
  0x74   : > { %v698_v46 = vadd.f32 %v697_v30, %v4619_v26  ;;  %6770 = vst [vmem:[#allocation12_spill] sm:$0xff] %v4642_v8  ;;  %v4650_v30 = vld [vmem:[%s4360_s12 + $0x1d0] sm:$0xff] }
  0x75   : > { %671 = vadd.xlane.f32.xlu1 %v670_v20  ;;  %v4614_v20 = vld [vmem:[%s4360_s12 + $0x190] sm:$0xff]  ;;  %6772 = vst [vmem:[#allocation14_spill] sm:$0xff] %v4650_v30 }
  0x76   : > { %667 = vadd.xlane.f32.xlu0 %v666_v22  ;;  %6764 = vst [vmem:[#allocation6_spill] sm:$0xff] %v4614_v20  ;;  %v701_v22 = vsel %vm600_vm1, %v4606_v4, 0.0  ;;  %v4951_v4 = vld [vmem:[%s4360_s12 + $0x3e8] sm:$0xff] }
  0x77   : > { %v702_v42 = vadd.f32 %v701_v22, %v4614_v20  ;;  %v4660_v20 = vld [vmem:[%s4360_s12 + $0x1f8] sm:$0xff]  ;;  %6837 = vst [vmem:[#allocation79_spill] sm:$0xff] %v4951_v4 }
  0x78   : > { %6774 = vst [vmem:[#allocation16_spill] sm:$0xff] %v4660_v20 }
  0x79   : > { %679 = vadd.xlane.f32.xlu1 %v678_v36  ;;  %v4624_v36 = vld [vmem:[%s4360_s12 + $0x1b8] sm:$0xff] }
  0x7a   : > { %675 = vadd.xlane.f32.xlu0 %v674_v38  ;;  %6766 = vst [vmem:[#allocation8_spill] sm:$0xff] %v4624_v36  ;;  %v4627_v38 = vld [vmem:[%s4360_s12 + $0x1a8] sm:$0xff] }
  0x7b   : > { %6767 = vst [vmem:[#allocation9_spill] sm:$0xff] %v4627_v38  ;;  %v705_v62 = vsel %vm600_vm1, %v4627_v38, 0.0  ;;  %v4655_v38 = vld [vmem:[%s4360_s12 + $0x1c0] sm:$0xff] }
  0x7c   : > { %v706_v22 = vadd.f32 %v705_v62, %v4637_v58  ;;  %6773 = vst [vmem:[#allocation15_spill] sm:$0xff] %v4655_v38  ;;  %v4668_v62 = vld [vmem:[%s4360_s12 + $0x1f0] sm:$0xff] }
  0x7d   : > { %687 = vadd.xlane.f32.xlu1 %v686_v52  ;;  %v4632_v52 = vld [vmem:[%s4360_s12 + $0x1b0] sm:$0xff]  ;;  %6776 = vst [vmem:[#allocation18_spill] sm:$0xff] %v4668_v62 }
  0x7e   : > { %683 = vadd.xlane.f32.xlu0 %v682_v54  ;;  %6768 = vst [vmem:[#allocation10_spill] sm:$0xff] %v4632_v52  ;;  %v709_v54 = vsel %vm600_vm1, %v4624_v36, 0.0  ;;  %v717_v36 = vsel %vm600_vm1, %v4642_v8, 0.0  ;;  %v725_v8 = vsel %vm600_vm1, %v4660_v20, 0.0 }
  0x81   : > { %695 = vadd.xlane.f32.xlu1 %v694_v10  ;;  %v4645_v10 = vld [vmem:[%s4360_s12 + $0x1c8] sm:$0xff] }
  0x82   : > { %691 = vadd.xlane.f32.xlu0 %v690_v14  ;;  %6771 = vst [vmem:[#allocation13_spill] sm:$0xff] %v4645_v10  ;;  %v710_v14 = vadd.f32 %v709_v54, %v4632_v52  ;;  %v713_v26 = vsel %vm600_vm1, %v4645_v10, 0.0  ;;  %v4673_v10 = vld [vmem:[%s4360_s12 + $0x1e0] sm:$0xff]  ;;  %v4678_v52 = vld [vmem:[%s4360_s12 + $0x218] sm:$0xff] }
  0x83   : > { %v714_v54 = vadd.f32 %v713_v26, %v4655_v38  ;;  %6777 = vst [vmem:[#allocation19_spill] sm:$0xff] %v4673_v10  ;;  %6778 = vst [vmem:[#allocation20_spill] sm:$0xff] %v4678_v52  ;;  %v726_v26 = vadd.f32 %v725_v8, %v4668_v62  ;;  %v733_v20 = vsel %vm600_vm1, %v4678_v52, 0.0  ;;  %v4714_v62 = vld [vmem:[%s4360_s12 + $0x258] sm:$0xff] }
  0x84   : > { %6786 = vst [vmem:[#allocation28_spill] sm:$0xff] %v4714_v62 }
  0x85   : > { %703 = vadd.xlane.f32.xlu1 %v702_v42  ;;  %v4663_v42 = vld [vmem:[%s4360_s12 + $0x1e8] sm:$0xff] }
  0x86   : > { %699 = vadd.xlane.f32.xlu0 %v698_v46  ;;  %6775 = vst [vmem:[#allocation17_spill] sm:$0xff] %v4663_v42  ;;  %v718_v46 = vadd.f32 %v717_v36, %v4650_v30  ;;  %v721_v58 = vsel %vm600_vm1, %v4663_v42, 0.0  ;;  %v4691_v42 = vld [vmem:[%s4360_s12 + $0x200] sm:$0xff]  ;;  %v4696_v30 = vld [vmem:[%s4360_s12 + $0x238] sm:$0xff] }
  0x87   : > { %v722_v36 = vadd.f32 %v721_v58, %v4673_v10  ;;  %6781 = vst [vmem:[#allocation23_spill] sm:$0xff] %v4691_v42  ;;  %6782 = vst [vmem:[#allocation24_spill] sm:$0xff] %v4696_v30  ;;  %v741_v52 = vsel %vm600_vm1, %v4696_v30, 0.0  ;;  %v749_v30 = vsel %vm600_vm1, %v4714_v62, 0.0 }
  0x89   : > { %711 = vadd.xlane.f32.xlu1 %v710_v14  ;;  %v4681_v14 = vld [vmem:[%s4360_s12 + $0x208] sm:$0xff] }
  0x8a   : > { %707 = vadd.xlane.f32.xlu0 %v706_v22  ;;  %6779 = vst [vmem:[#allocation21_spill] sm:$0xff] %v4681_v14  ;;  %v4686_v22 = vld [vmem:[%s4360_s12 + $0x210] sm:$0xff]  ;;  %v729_v38 = vsel %vm600_vm1, %v4681_v14, 0.0  ;;  %v4709_v14 = vld [vmem:[%s4360_s12 + $0x220] sm:$0xff] }
  0x8b   : > { %6780 = vst [vmem:[#allocation22_spill] sm:$0xff] %v4686_v22  ;;  %v734_v8 = vadd.f32 %v733_v20, %v4686_v22  ;;  %v730_v58 = vadd.f32 %v729_v38, %v4691_v42  ;;  %6785 = vst [vmem:[#allocation27_spill] sm:$0xff] %v4709_v14  ;;  %v4732_v22 = vld [vmem:[%s4360_s12 + $0x278] sm:$0xff] }
  0x8c   : > { %6790 = vst [vmem:[#allocation32_spill] sm:$0xff] %v4732_v22  ;;  %v757_v62 = vsel %vm600_vm1, %v4732_v22, 0.0 }
  0x8d   : > { %719 = vadd.xlane.f32.xlu1 %v718_v46  ;;  %v4699_v46 = vld [vmem:[%s4360_s12 + $0x228] sm:$0xff] }
  0x8e   : > { %715 = vadd.xlane.f32.xlu0 %v714_v54  ;;  %6783 = vst [vmem:[#allocation25_spill] sm:$0xff] %v4699_v46  ;;  %v4704_v54 = vld [vmem:[%s4360_s12 + $0x230] sm:$0xff]  ;;  %v737_v10 = vsel %vm600_vm1, %v4699_v46, 0.0  ;;  %v4727_v46 = vld [vmem:[%s4360_s12 + $0x240] sm:$0xff] }
  0x8f   : > { %6784 = vst [vmem:[#allocation26_spill] sm:$0xff] %v4704_v54  ;;  %v742_v20 = vadd.f32 %v741_v52, %v4704_v54  ;;  %v738_v38 = vadd.f32 %v737_v10, %v4709_v14  ;;  %6789 = vst [vmem:[#allocation31_spill] sm:$0xff] %v4727_v46  ;;  %v4750_v54 = vld [vmem:[%s4360_s12 + $0x298] sm:$0xff] }
  0x90   : > { %6794 = vst [vmem:[#allocation36_spill] sm:$0xff] %v4750_v54  ;;  %v765_v22 = vsel %vm600_vm1, %v4750_v54, 0.0 }
  0x91   : > { %727 = vadd.xlane.f32.xlu1 %v726_v26  ;;  %v4717_v26 = vld [vmem:[%s4360_s12 + $0x248] sm:$0xff] }
  0x92   : > { %723 = vadd.xlane.f32.xlu0 %v722_v36  ;;  %6787 = vst [vmem:[#allocation29_spill] sm:$0xff] %v4717_v26  ;;  %v4722_v36 = vld [vmem:[%s4360_s12 + $0x250] sm:$0xff]  ;;  %v745_v42 = vsel %vm600_vm1, %v4717_v26, 0.0  ;;  %v4745_v26 = vld [vmem:[%s4360_s12 + $0x260] sm:$0xff] }
  0x93   : > { %6788 = vst [vmem:[#allocation30_spill] sm:$0xff] %v4722_v36  ;;  %v750_v52 = vadd.f32 %v749_v30, %v4722_v36  ;;  %v746_v10 = vadd.f32 %v745_v42, %v4727_v46  ;;  %6793 = vst [vmem:[#allocation35_spill] sm:$0xff] %v4745_v26  ;;  %v4768_v36 = vld [vmem:[%s4360_s12 + $0x2b8] sm:$0xff] }
  0x94   : > { %6798 = vst [vmem:[#allocation40_spill] sm:$0xff] %v4768_v36  ;;  %v773_v54 = vsel %vm600_vm1, %v4768_v36, 0.0 }
  0x95   : > { %735 = vadd.xlane.f32.xlu1 %v734_v8  ;;  %v4735_v8 = vld [vmem:[%s4360_s12 + $0x268] sm:$0xff] }
  0x96   : > { %731 = vadd.xlane.f32.xlu0 %v730_v58  ;;  %6791 = vst [vmem:[#allocation33_spill] sm:$0xff] %v4735_v8  ;;  %v4740_v58 = vld [vmem:[%s4360_s12 + $0x270] sm:$0xff]  ;;  %v753_v14 = vsel %vm600_vm1, %v4735_v8, 0.0  ;;  %v4763_v8 = vld [vmem:[%s4360_s12 + $0x280] sm:$0xff] }
  0x97   : > { %6792 = vst [vmem:[#allocation34_spill] sm:$0xff] %v4740_v58  ;;  %v758_v30 = vadd.f32 %v757_v62, %v4740_v58  ;;  %v754_v42 = vadd.f32 %v753_v14, %v4745_v26  ;;  %6797 = vst [vmem:[#allocation39_spill] sm:$0xff] %v4763_v8  ;;  %v4786_v58 = vld [vmem:[%s4360_s12 + $0x2d8] sm:$0xff] }
  0x98   : > { %6802 = vst [vmem:[#allocation44_spill] sm:$0xff] %v4786_v58  ;;  %v781_v36 = vsel %vm600_vm1, %v4786_v58, 0.0 }
  0x99   : > { %743 = vadd.xlane.f32.xlu1 %v742_v20  ;;  %v4753_v20 = vld [vmem:[%s4360_s12 + $0x288] sm:$0xff] }
  0x9a   : > { %739 = vadd.xlane.f32.xlu0 %v738_v38  ;;  %6795 = vst [vmem:[#allocation37_spill] sm:$0xff] %v4753_v20  ;;  %v4758_v38 = vld [vmem:[%s4360_s12 + $0x290] sm:$0xff]  ;;  %v761_v46 = vsel %vm600_vm1, %v4753_v20, 0.0  ;;  %v4781_v20 = vld [vmem:[%s4360_s12 + $0x2a0] sm:$0xff] }
  0x9b   : > { %6796 = vst [vmem:[#allocation38_spill] sm:$0xff] %v4758_v38  ;;  %v766_v62 = vadd.f32 %v765_v22, %v4758_v38  ;;  %v762_v14 = vadd.f32 %v761_v46, %v4763_v8  ;;  %6801 = vst [vmem:[#allocation43_spill] sm:$0xff] %v4781_v20  ;;  %v4804_v38 = vld [vmem:[%s4360_s12 + $0x2f8] sm:$0xff] }
  0x9c   : > { %6806 = vst [vmem:[#allocation48_spill] sm:$0xff] %v4804_v38  ;;  %v789_v58 = vsel %vm600_vm1, %v4804_v38, 0.0 }
  0x9d   : > { %751 = vadd.xlane.f32.xlu1 %v750_v52  ;;  %v4771_v52 = vld [vmem:[%s4360_s12 + $0x2a8] sm:$0xff] }
  0x9e   : > { %747 = vadd.xlane.f32.xlu0 %v746_v10  ;;  %6799 = vst [vmem:[#allocation41_spill] sm:$0xff] %v4771_v52  ;;  %v4776_v10 = vld [vmem:[%s4360_s12 + $0x2b0] sm:$0xff]  ;;  %v769_v26 = vsel %vm600_vm1, %v4771_v52, 0.0  ;;  %v4799_v52 = vld [vmem:[%s4360_s12 + $0x2c0] sm:$0xff] }
  0x9f   : > { %6800 = vst [vmem:[#allocation42_spill] sm:$0xff] %v4776_v10  ;;  %v774_v22 = vadd.f32 %v773_v54, %v4776_v10  ;;  %v770_v46 = vadd.f32 %v769_v26, %v4781_v20  ;;  %6805 = vst [vmem:[#allocation47_spill] sm:$0xff] %v4799_v52  ;;  %v4822_v10 = vld [vmem:[%s4360_s12 + $0x318] sm:$0xff] }
  0xa0   : > { %6810 = vst [vmem:[#allocation52_spill] sm:$0xff] %v4822_v10  ;;  %v797_v38 = vsel %vm600_vm1, %v4822_v10, 0.0 }
  0xa1   : > { %759 = vadd.xlane.f32.xlu1 %v758_v30  ;;  %v4789_v30 = vld [vmem:[%s4360_s12 + $0x2c8] sm:$0xff] }
  0xa2   : > { %755 = vadd.xlane.f32.xlu0 %v754_v42  ;;  %6803 = vst [vmem:[#allocation45_spill] sm:$0xff] %v4789_v30  ;;  %v4794_v42 = vld [vmem:[%s4360_s12 + $0x2d0] sm:$0xff]  ;;  %v777_v8 = vsel %vm600_vm1, %v4789_v30, 0.0  ;;  %v4817_v30 = vld [vmem:[%s4360_s12 + $0x2e0] sm:$0xff] }
  0xa3   : > { %6804 = vst [vmem:[#allocation46_spill] sm:$0xff] %v4794_v42  ;;  %v782_v54 = vadd.f32 %v781_v36, %v4794_v42  ;;  %v778_v26 = vadd.f32 %v777_v8, %v4799_v52  ;;  %6809 = vst [vmem:[#allocation51_spill] sm:$0xff] %v4817_v30  ;;  %v4840_v42 = vld [vmem:[%s4360_s12 + $0x338] sm:$0xff] }
  0xa4   : > { %6814 = vst [vmem:[#allocation56_spill] sm:$0xff] %v4840_v42  ;;  %v805_v10 = vsel %vm600_vm1, %v4840_v42, 0.0 }
  0xa5   : > { %767 = vadd.xlane.f32.xlu1 %v766_v62  ;;  %v4807_v62 = vld [vmem:[%s4360_s12 + $0x2e8] sm:$0xff] }
  0xa6   : > { %763 = vadd.xlane.f32.xlu0 %v762_v14  ;;  %6807 = vst [vmem:[#allocation49_spill] sm:$0xff] %v4807_v62  ;;  %v4812_v14 = vld [vmem:[%s4360_s12 + $0x2f0] sm:$0xff]  ;;  %v785_v20 = vsel %vm600_vm1, %v4807_v62, 0.0  ;;  %v4835_v62 = vld [vmem:[%s4360_s12 + $0x300] sm:$0xff] }
  0xa7   : > { %6808 = vst [vmem:[#allocation50_spill] sm:$0xff] %v4812_v14  ;;  %v790_v36 = vadd.f32 %v789_v58, %v4812_v14  ;;  %v786_v8 = vadd.f32 %v785_v20, %v4817_v30  ;;  %6813 = vst [vmem:[#allocation55_spill] sm:$0xff] %v4835_v62  ;;  %v4858_v14 = vld [vmem:[%s4360_s12 + $0x358] sm:$0xff] }
  0xa8   : > { %6818 = vst [vmem:[#allocation60_spill] sm:$0xff] %v4858_v14  ;;  %v813_v42 = vsel %vm600_vm1, %v4858_v14, 0.0 }
  0xa9   : > { %775 = vadd.xlane.f32.xlu1 %v774_v22  ;;  %v4825_v22 = vld [vmem:[%s4360_s12 + $0x308] sm:$0xff] }
  0xaa   : > { %771 = vadd.xlane.f32.xlu0 %v770_v46  ;;  %6811 = vst [vmem:[#allocation53_spill] sm:$0xff] %v4825_v22  ;;  %v4830_v46 = vld [vmem:[%s4360_s12 + $0x310] sm:$0xff]  ;;  %v793_v52 = vsel %vm600_vm1, %v4825_v22, 0.0  ;;  %v4853_v22 = vld [vmem:[%s4360_s12 + $0x320] sm:$0xff] }
  0xab   : > { %6812 = vst [vmem:[#allocation54_spill] sm:$0xff] %v4830_v46  ;;  %v798_v58 = vadd.f32 %v797_v38, %v4830_v46  ;;  %v794_v20 = vadd.f32 %v793_v52, %v4835_v62  ;;  %6817 = vst [vmem:[#allocation59_spill] sm:$0xff] %v4853_v22  ;;  %v4876_v46 = vld [vmem:[%s4360_s12 + $0x378] sm:$0xff] }
  0xac   : > { %6822 = vst [vmem:[#allocation64_spill] sm:$0xff] %v4876_v46  ;;  %v821_v14 = vsel %vm600_vm1, %v4876_v46, 0.0 }
  0xad   : > { %783 = vadd.xlane.f32.xlu1 %v782_v54  ;;  %v4843_v54 = vld [vmem:[%s4360_s12 + $0x328] sm:$0xff] }
  0xae   : > { %779 = vadd.xlane.f32.xlu0 %v778_v26  ;;  %6815 = vst [vmem:[#allocation57_spill] sm:$0xff] %v4843_v54  ;;  %v4848_v26 = vld [vmem:[%s4360_s12 + $0x330] sm:$0xff]  ;;  %v801_v30 = vsel %vm600_vm1, %v4843_v54, 0.0  ;;  %v4871_v54 = vld [vmem:[%s4360_s12 + $0x340] sm:$0xff] }
  0xaf   : > { %6816 = vst [vmem:[#allocation58_spill] sm:$0xff] %v4848_v26  ;;  %v806_v38 = vadd.f32 %v805_v10, %v4848_v26  ;;  %v802_v52 = vadd.f32 %v801_v30, %v4853_v22  ;;  %6821 = vst [vmem:[#allocation63_spill] sm:$0xff] %v4871_v54  ;;  %v4894_v26 = vld [vmem:[%s4360_s12 + $0x398] sm:$0xff] }
  0xb0   : > { %6826 = vst [vmem:[#allocation68_spill] sm:$0xff] %v4894_v26  ;;  %v829_v46 = vsel %vm600_vm1, %v4894_v26, 0.0 }
  0xb1   : > { %791 = vadd.xlane.f32.xlu1 %v790_v36  ;;  %v4861_v36 = vld [vmem:[%s4360_s12 + $0x348] sm:$0xff] }
  0xb2   : > { %787 = vadd.xlane.f32.xlu0 %v786_v8  ;;  %6819 = vst [vmem:[#allocation61_spill] sm:$0xff] %v4861_v36  ;;  %v4866_v8 = vld [vmem:[%s4360_s12 + $0x350] sm:$0xff]  ;;  %v809_v62 = vsel %vm600_vm1, %v4861_v36, 0.0  ;;  %v4889_v36 = vld [vmem:[%s4360_s12 + $0x360] sm:$0xff] }
  0xb3   : > { %6820 = vst [vmem:[#allocation62_spill] sm:$0xff] %v4866_v8  ;;  %v814_v10 = vadd.f32 %v813_v42, %v4866_v8  ;;  %v810_v30 = vadd.f32 %v809_v62, %v4871_v54  ;;  %6825 = vst [vmem:[#allocation67_spill] sm:$0xff] %v4889_v36  ;;  %v4912_v8 = vld [vmem:[%s4360_s12 + $0x3b8] sm:$0xff] }
  0xb4   : > { %6830 = vst [vmem:[#allocation72_spill] sm:$0xff] %v4912_v8  ;;  %v837_v26 = vsel %vm600_vm1, %v4912_v8, 0.0 }
  0xb5   : > { %799 = vadd.xlane.f32.xlu1 %v798_v58  ;;  %v4879_v58 = vld [vmem:[%s4360_s12 + $0x368] sm:$0xff] }
  0xb6   : > { %795 = vadd.xlane.f32.xlu0 %v794_v20  ;;  %6823 = vst [vmem:[#allocation65_spill] sm:$0xff] %v4879_v58  ;;  %v4884_v20 = vld [vmem:[%s4360_s12 + $0x370] sm:$0xff]  ;;  %v817_v22 = vsel %vm600_vm1, %v4879_v58, 0.0  ;;  %v4907_v58 = vld [vmem:[%s4360_s12 + $0x380] sm:$0xff] }
  0xb7   : > { %6824 = vst [vmem:[#allocation66_spill] sm:$0xff] %v4884_v20  ;;  %v822_v42 = vadd.f32 %v821_v14, %v4884_v20  ;;  %v818_v62 = vadd.f32 %v817_v22, %v4889_v36  ;;  %6829 = vst [vmem:[#allocation71_spill] sm:$0xff] %v4907_v58  ;;  %v4930_v20 = vld [vmem:[%s4360_s12 + $0x3d8] sm:$0xff] }
  0xb8   : > { %6833 = vst [vmem:[#allocation75_spill] sm:$0xff] %v4930_v20  ;;  %v845_v8 = vsel %vm600_vm1, %v4930_v20, 0.0  ;;  %v860_v20 = vmul.f32 %v4420_v12, %v4420_v12  ;;  %v857_v12 = vmul.f32 %v4398_v3, %v4398_v3  ;;  %v861_v3 = vmul.f32 %v4392_v1, %v4392_v1 }
  0xb9   : > { %807 = vadd.xlane.f32.xlu1 %v806_v38  ;;  %v4897_v38 = vld [vmem:[%s4360_s12 + $0x388] sm:$0xff]  ;;  %v865_v1 = vmul.f32 %v4439_v21, %v4439_v21  ;;  %v869_v21 = vmul.f32 %v4457_v29, %v4457_v29  ;;  %v873_v29 = vmul.f32 %v4475_v37, %v4475_v37  ;;  %v877_v37 = vmul.f32 %v4493_v45, %v4493_v45 }
  0xba   : > { %803 = vadd.xlane.f32.xlu0 %v802_v52  ;;  %6827 = vst [vmem:[#allocation69_spill] sm:$0xff] %v4897_v38  ;;  %v4902_v52 = vld [vmem:[%s4360_s12 + $0x390] sm:$0xff]  ;;  %v825_v54 = vsel %vm600_vm1, %v4897_v38, 0.0  ;;  %v4925_v38 = vld [vmem:[%s4360_s12 + $0x3a0] sm:$0xff] }
  0xbb   : > { %6828 = vst [vmem:[#allocation70_spill] sm:$0xff] %v4902_v52  ;;  %v830_v14 = vadd.f32 %v829_v46, %v4902_v52  ;;  %v826_v22 = vadd.f32 %v825_v54, %v4907_v58  ;;  %6832 = vst [vmem:[#allocation74_spill] sm:$0xff] %v4925_v38  ;;  %v4943_v58 = vld [vmem:[%s4360_s12 + $0x3c0] sm:$0xff]  ;;  %v4948_v52 = vld [vmem:[%s4360_s12 + $0x3f8] sm:$0xff] }
  0xbc   : > { %6835 = vst [vmem:[#allocation77_spill] sm:$0xff] %v4943_v58  ;;  %6836 = vst [vmem:[#allocation78_spill] sm:$0xff] %v4948_v52 }
  0xbd   : > { %815 = vadd.xlane.f32.xlu1 %v814_v10  ;;  %v4915_v10 = vld [vmem:[%s4360_s12 + $0x3a8] sm:$0xff] }
  0xbe   : > { %811 = vadd.xlane.f32.xlu0 %v810_v30  ;;  %6831 = vst [vmem:[#allocation73_spill] sm:$0xff] %v4915_v10  ;;  %v4920_v30 = vld [vmem:[%s4360_s12 + $0x3b0] sm:$0xff]  ;;  %v833_v36 = vsel %vm600_vm1, %v4915_v10, 0.0 }
  0xbf   : > { %v838_v46 = vadd.f32 %v837_v26, %v4920_v30  ;;  %v834_v54 = vadd.f32 %v833_v36, %v4925_v38  ;;  %v4963_v38 = vld [vmem:[%s4360_s12 + $0x3e0] sm:$0xff] }
  0xc1   : > { %823 = vadd.xlane.f32.xlu1 %v822_v42  ;;  %v4933_v42 = vld [vmem:[%s4360_s12 + $0x3c8] sm:$0xff] }
  0xc2   : > { %819 = vadd.xlane.f32.xlu0 %v818_v62  ;;  %6834 = vst [vmem:[#allocation76_spill] sm:$0xff] %v4933_v42  ;;  %v4938_v62 = vld [vmem:[%s4360_s12 + $0x3d0] sm:$0xff]  ;;  %v841_v10 = vsel %vm600_vm1, %v4933_v42, 0.0  ;;  %v849_v42 = vsel %vm600_vm1, %v4951_v4, 0.0  ;;  %v864_v4 = vmul.f32 %v4409_v7, %v4409_v7  ;;  %v868_v7 = vmul.f32 %v4426_v15, %v4426_v15 }
  0xc3   : > { %v846_v26 = vadd.f32 %v845_v8, %v4938_v62  ;;  %v842_v36 = vadd.f32 %v841_v10, %v4943_v58  ;;  %v859_v10 = vmul.f32 %v4417_v11, %v4417_v11  ;;  %v863_v11 = vmul.f32 %v4406_v6, %v4406_v6 }
  0xc4   : > { %v867_v6 = vmul.f32 %v4434_v19, %v4434_v19  ;;  %v872_v15 = vmul.f32 %v4444_v23, %v4444_v23  ;;  %v871_v19 = vmul.f32 %v4452_v27, %v4452_v27  ;;  %v876_v23 = vmul.f32 %v4462_v31, %v4462_v31 }
  0xc5   : > { %831 = vadd.xlane.f32.xlu1 %v830_v14  ;;  %v4956_v14 = vld [vmem:[%s4360_s12 + $0x3f0] sm:$0xff]  ;;  %v875_v27 = vmul.f32 %v4470_v35, %v4470_v35  ;;  %v880_v31 = vmul.f32 %v4480_v39, %v4480_v39  ;;  %v879_v35 = vmul.f32 %v4488_v43, %v4488_v43  ;;  %v884_v39 = vmul.f32 %v4498_v47, %v4498_v47 }
  0xc6   : > { %827 = vadd.xlane.f32.xlu0 %v826_v22  ;;  %v853_v22 = vsel %vm600_vm1, %v4948_v52, 0.0  ;;  %v989_v52 = vsel %vm600_vm1, %v860_v20, 0.0  ;;  %v997_v20 = vsel %vm600_vm1, %v864_v4, 0.0  ;;  %v1005_v4 = vsel %vm600_vm1, %v868_v7, 0.0 }
  0xc7   : > { %v854_v8 = vadd.f32 %v853_v22, %v4956_v14  ;;  %v1029_v7 = vsel %vm600_vm1, %v880_v31, 0.0  ;;  %v1037_v45 = vsel %vm600_vm1, %v884_v39, 0.0  ;;  %v881_v47 = vmul.f32 %v4511_v53, %v4511_v53 }
  0xc8   : > { %v1030_v43 = vadd.f32 %v1029_v7, %v879_v35  ;;  %v900_v31 = vmul.f32 %v4570_v33, %v4570_v33  ;;  %v897_v33 = vmul.f32 %v4583_v44, %v4583_v44  ;;  %v904_v7 = vmul.f32 %v4588_v49, %v4588_v49 }
  0xc9   : > { %839 = vadd.xlane.f32.xlu1 %v838_v46  ;;  %v858_v46 = vmul.f32 %v4403_v5, %v4403_v5  ;;  %v862_v5 = vmul.f32 %v4395_v2, %v4395_v2  ;;  %v866_v2 = vmul.f32 %v4429_v16, %v4429_v16  ;;  %v870_v16 = vmul.f32 %v4447_v24, %v4447_v24 }
  0xca   : > { %835 = vadd.xlane.f32.xlu0 %v834_v54  ;;  %v850_v54 = vadd.f32 %v849_v42, %v4963_v38  ;;  %v874_v24 = vmul.f32 %v4465_v32, %v4465_v32  ;;  %v878_v32 = vmul.f32 %v4483_v40, %v4483_v40  ;;  %v1077_v49 = vsel %vm600_vm1, %v904_v7, 0.0 }
  0xcb   : > { %v985_v58 = vsel %vm600_vm1, %v858_v46, 0.0  ;;  %v1001_v22 = vsel %vm600_vm1, %v866_v2, 0.0  ;;  %v1006_v46 = vadd.f32 %v1005_v4, %v867_v6  ;;  %v882_v2 = vmul.f32 %v4501_v48, %v4501_v48 }
  0xcc   : > { %v986_v42 = vadd.f32 %v985_v58, %v857_v12  ;;  %v1025_v40 = vsel %vm600_vm1, %v878_v32, 0.0  ;;  %v888_v4 = vmul.f32 %v4516_v55, %v4516_v55  ;;  %v885_v55 = vmul.f32 %v4529_v61, %v4529_v61 }
  0xcd   : > { %847 = vadd.xlane.f32.xlu1 %v846_v26  ;;  %v990_v26 = vadd.f32 %v989_v52, %v859_v10  ;;  %v998_v52 = vadd.f32 %v997_v20, %v863_v11  ;;  %v1013_v10 = vsel %vm600_vm1, %v872_v15, 0.0  ;;  %v1017_v11 = vsel %vm600_vm1, %v874_v24, 0.0 }
  0xce   : > { %843 = vadd.xlane.f32.xlu0 %v842_v36  ;;  %v993_v36 = vsel %vm600_vm1, %v862_v5, 0.0  ;;  %v1014_v12 = vadd.f32 %v1013_v10, %v871_v19  ;;  %v1033_v48 = vsel %vm600_vm1, %v882_v2, 0.0  ;;  %v886_v15 = vmul.f32 %v4519_v56, %v4519_v56 }
  0xcf   : > { %v994_v58 = vadd.f32 %v993_v36, %v861_v3  ;;  %v1018_v3 = vadd.f32 %v1017_v11, %v873_v29  ;;  %v1045_v53 = vsel %vm600_vm1, %v888_v4, 0.0  ;;  %v892_v19 = vmul.f32 %v4534_v63, %v4534_v63  ;;  %v6839_v4 = vld [vmem:[#allocation5_spill] sm:$0xff] }
  0xd0   : > { %v1041_v56 = vsel %vm600_vm1, %v886_v15, 0.0  ;;  %v890_v10 = vmul.f32 %v4537_v0, %v4537_v0  ;;  %v889_v63 = vmul.f32 %v4547_v13, %v4547_v13  ;;  %v896_v24 = vmul.f32 %v4552_v17, %v4552_v17  ;;  %v6840_v15 = vld [vmem:[#allocation6_spill] sm:$0xff] }
  0xd1   : > { %855 = vadd.xlane.f32.xlu1 %v854_v8  ;;  %v1002_v8 = vadd.f32 %v1001_v22, %v865_v1  ;;  %v887_v22 = vmul.f32 %v4524_v59, %v4524_v59  ;;  %v1053_v61 = vsel %vm600_vm1, %v892_v19, 0.0  ;;  %v893_v17 = vmul.f32 %v4565_v28, %v4565_v28  ;;  %v6842_v19 = vld [vmem:[#allocation8_spill] sm:$0xff] }
  0xd2   : > { %851 = vadd.xlane.f32.xlu0 %v850_v54  ;;  %v1009_v54 = vsel %vm600_vm1, %v870_v16, 0.0  ;;  %v1049_v0 = vsel %vm600_vm1, %v890_v10, 0.0  ;;  %v1061_v13 = vsel %vm600_vm1, %v896_v24, 0.0  ;;  %v898_v32 = vmul.f32 %v4573_v34, %v4573_v34 }
  0xd3   : > { %v1010_v5 = vadd.f32 %v1009_v54, %v869_v21  ;;  %v1046_v59 = vadd.f32 %v1045_v53, %v887_v22  ;;  %v891_v21 = vmul.f32 %v4542_v9, %v4542_v9  ;;  %v1042_v54 = vadd.f32 %v1041_v56, %v885_v55  ;;  %v6841_v53 = vld [vmem:[#allocation7_spill] sm:$0xff] }
  0xd4   : > { %v1050_v29 = vadd.f32 %v1049_v0, %v889_v63  ;;  %v1069_v28 = vsel %vm600_vm1, %v900_v31, 0.0  ;;  %v1065_v39 = vsel %vm600_vm1, %v898_v32, 0.0  ;;  %v903_v2 = vmul.f32 %v4596_v57, %v4596_v57  ;;  %v6844_v63 = vld [vmem:[#allocation10_spill] sm:$0xff]  ;;  %v6847_v32 = vld [vmem:[#allocation13_spill] sm:$0xff] }
  0xd5   : > { %991 = vadd.xlane.f32.xlu1 %v990_v26  ;;  %v1021_v26 = vsel %vm600_vm1, %v876_v23, 0.0  ;;  %v1054_v9 = vadd.f32 %v1053_v61, %v891_v21  ;;  %v905_v55 = vmul.f32 %v6841_v53, %v6841_v53  ;;  %v912_v56 = vmul.f32 %v6842_v19, %v6842_v19  ;;  %v6843_v21 = vld [vmem:[#allocation9_spill] sm:$0xff] }
  0xd6   : > { %987 = vadd.xlane.f32.xlu0 %v986_v42  ;;  %v1022_v42 = vadd.f32 %v1021_v26, %v875_v27  ;;  %v894_v27 = vmul.f32 %v4555_v18, %v4555_v18  ;;  %v1078_v57 = vadd.f32 %v1077_v49, %v903_v2  ;;  %v911_v24 = vmul.f32 %v6844_v63, %v6844_v63 }
  0xd8   : > { %v1057_v18 = vsel %vm600_vm1, %v894_v27, 0.0 }
  0xd9   : > { %999 = vadd.xlane.f32.xlu1 %v998_v52  ;;  %v883_v52 = vmul.f32 %v4506_v51, %v4506_v51 }
  0xda   : > { %995 = vadd.xlane.f32.xlu0 %v994_v58  ;;  %v1026_v58 = vadd.f32 %v1025_v40, %v877_v37  ;;  %v4152_v37 = vmov 0  }
  0xdb   : > { %v1038_v51 = vadd.f32 %v1037_v45, %v883_v52  ;;  %3854 = vset.pattern.permute.xlu1 %v4152_v37  ;;  %3853 = vset.pattern.permute.xlu0 %v4152_v37  ;;  %v901_v52 = vmul.f32 %v4601_v60, %v4601_v60 }
  0xdd   : > { %1007 = vadd.xlane.f32.xlu1 %v1006_v46  ;;  %v1034_v46 = vadd.f32 %v1033_v48, %v881_v47  ;;  %v906_v48 = vmul.f32 %v6839_v4, %v6839_v4 }
  0xde   : > { %1003 = vadd.xlane.f32.xlu0 %v1002_v8 }
  0xe1   : > { %1015 = vadd.xlane.f32.xlu1 %v1014_v12 }
  0xe2   : > { %1011 = vadd.xlane.f32.xlu0 %v1010_v5  ;;  %v5023_v20 = vpop.xlane.xlu1 %611  ;;  %v895_v5 = vmul.f32 %v4560_v25, %v4560_v25 }
  0xe3   : > { %v5030_v36 = vpop.xlane.xlu0 %603 }
  0xe4   : > { %v1062_v25 = vadd.f32 %v1061_v13, %v895_v5  ;;  %v6845_v5 = vld [vmem:[#allocation11_spill] sm:$0xff]  ;;  %v6846_v13 = vld [vmem:[#allocation12_spill] sm:$0xff] }
  0xe5   : > { %1023 = vadd.xlane.f32.xlu1 %v1022_v42  ;;  %v899_v42 = vmul.f32 %v4578_v41, %v4578_v41  ;;  %v902_v41 = vmul.f32 %v4591_v50, %v4591_v50 }
  0xe6   : > { %1019 = vadd.xlane.f32.xlu0 %v1018_v3  ;;  %v5037_v6 = vpop.xlane.xlu1 %615  ;;  %v1058_v3 = vadd.f32 %v1057_v18, %v893_v17  ;;  %v916_v17 = vmul.f32 %v6846_v13, %v6846_v13 }
  0xe7   : > { %v5044_v1 = vpop.xlane.xlu0 %607  ;;  %v1070_v40 = vadd.f32 %v1069_v28, %v899_v42  ;;  %v1073_v50 = vsel %vm600_vm1, %v902_v41, 0.0 }
  0xe8   : > { %v1101_v37 = vsel %vm600_vm1, %v916_v17, 0.0 }
  0xe9   : > { %1031 = vadd.xlane.f32.xlu1 %v1030_v43  ;;  %v1066_v43 = vadd.f32 %v1065_v39, %v897_v33  ;;  %v6849_v39 = vld [vmem:[#allocation15_spill] sm:$0xff] }
  0xea   : > { %1027 = vadd.xlane.f32.xlu0 %v1026_v58  ;;  %v5051_v16 = vpop.xlane.xlu1 %623  ;;  %v6838_v58 = vld [vmem:[#allocation4_spill] sm:$0xff]  ;;  %v913_v41 = vmul.f32 %v6849_v39, %v6849_v39 }
  0xeb   : > { %v5058_v8 = vpop.xlane.xlu0 %619  ;;  %v908_v45 = vmul.f32 %v6838_v58, %v6838_v58 }
  0xed   : > { %1039 = vadd.xlane.f32.xlu1 %v1038_v51  ;;  %v907_v51 = vmul.f32 %v6840_v15, %v6840_v15  ;;  %v1085_v60 = vsel %vm600_vm1, %v908_v45, 0.0 }
  0xee   : > { %1035 = vadd.xlane.f32.xlu0 %v1034_v46  ;;  %v5065_v23 = vpop.xlane.xlu1 %631  ;;  %v1074_v46 = vadd.f32 %v1073_v50, %v901_v52  ;;  %v6851_v52 = vld [vmem:[#allocation17_spill] sm:$0xff]  ;;  %v6852_v50 = vld [vmem:[#allocation18_spill] sm:$0xff] }
  0xef   : > { %v5072_v12 = vpop.xlane.xlu0 %627  ;;  %v1086_v61 = vadd.f32 %v1085_v60, %v907_v51  ;;  %v918_v58 = vmul.f32 %v6851_v52, %v6851_v52  ;;  %v919_v4 = vmul.f32 %v6852_v50, %v6852_v50  ;;  %v6853_v51 = vld [vmem:[#allocation19_spill] sm:$0xff]  ;;  %v6854_v60 = vld [vmem:[#allocation20_spill] sm:$0xff] }
  0xf0   : > { %v924_v53 = vmul.f32 %v6854_v60, %v6854_v60 }
  0xf1   : > { %1047 = vadd.xlane.f32.xlu1 %v1046_v59  ;;  %v1081_v59 = vsel %vm600_vm1, %v906_v48, 0.0  ;;  %v1105_v19 = vsel %vm600_vm1, %v918_v58, 0.0 }
  0xf2   : > { %1043 = vadd.xlane.f32.xlu0 %v1042_v54  ;;  %v5079_v26 = vpop.xlane.xlu1 %639  ;;  %v910_v54 = vmul.f32 %v6843_v21, %v6843_v21  ;;  %v1082_v27 = vadd.f32 %v1081_v59, %v905_v55 }
  0xf3   : > { %v5086_v11 = vpop.xlane.xlu0 %635 }
  0xf4   : > { %v1089_v18 = vsel %vm600_vm1, %v910_v54, 0.0  ;;  %v6856_v54 = vld [vmem:[#allocation22_spill] sm:$0xff] }
  0xf5   : > { %1055 = vadd.xlane.f32.xlu1 %v1054_v9  ;;  %v1093_v9 = vsel %vm600_vm1, %v912_v56, 0.0  ;;  %v6855_v56 = vld [vmem:[#allocation21_spill] sm:$0xff] }
  0xf6   : > { %1051 = vadd.xlane.f32.xlu0 %v1050_v29  ;;  %v5093_v35 = vpop.xlane.xlu1 %647  ;;  %v909_v29 = vmul.f32 %v6845_v5, %v6845_v5  ;;  %v1094_v42 = vadd.f32 %v1093_v9, %v911_v24  ;;  %v922_v59 = vmul.f32 %v6855_v56, %v6855_v56  ;;  %v6857_v9 = vld [vmem:[#allocation23_spill] sm:$0xff]  ;;  %v6868_v56 = vld [vmem:[#allocation32_spill] sm:$0xff] }
  0xf7   : > { %v5100_v34 = vpop.xlane.xlu0 %643  ;;  %v921_v5 = vmul.f32 %v6857_v9, %v6857_v9  ;;  %v6871_v9 = vld [vmem:[#allocation34_spill] sm:$0xff] }
  0xf8   : > { %v1090_v7 = vadd.f32 %v1089_v18, %v909_v29  ;;  %v6858_v29 = vld [vmem:[#allocation24_spill] sm:$0xff]  ;;  %v1113_v18 = vsel %vm600_vm1, %v922_v59, 0.0  ;;  %v936_v59 = vmul.f32 %v6868_v56, %v6868_v56 }
  0xf9   : > { %1063 = vadd.xlane.f32.xlu1 %v1062_v25  ;;  %v914_v25 = vmul.f32 %v6847_v32, %v6847_v32  ;;  %v928_v13 = vmul.f32 %v6858_v29, %v6858_v29  ;;  %v6859_v32 = vld [vmem:[#allocation25_spill] sm:$0xff] }
  0xfa   : > { %1059 = vadd.xlane.f32.xlu0 %v1058_v3  ;;  %v5107_v44 = vpop.xlane.xlu1 %655  ;;  %v6848_v3 = vld [vmem:[#allocation14_spill] sm:$0xff] }
  0xfb   : > { %v5114_v47 = vpop.xlane.xlu0 %651  ;;  %v915_v28 = vmul.f32 %v6848_v3, %v6848_v3  ;;  %v1097_v49 = vsel %vm600_vm1, %v914_v25, 0.0  ;;  %v926_v25 = vmul.f32 %v6859_v32, %v6859_v32  ;;  %v6860_v3 = vld [vmem:[#allocation26_spill] sm:$0xff]  ;;  %v1125_v39 = vsel %vm600_vm1, %v928_v13, 0.0  ;;  %v6873_v32 = vld [vmem:[#allocation35_spill] sm:$0xff] }
  0xfd   : > { %1071 = vadd.xlane.f32.xlu1 %v1070_v40  ;;  %v6850_v40 = vld [vmem:[#allocation16_spill] sm:$0xff]  ;;  %v1102_v45 = vadd.f32 %v1101_v37, %v915_v28  ;;  %v927_v28 = vmul.f32 %v6860_v3, %v6860_v3  ;;  %v1114_v37 = vadd.f32 %v1113_v18, %v921_v5  ;;  %v1121_v58 = vsel %vm600_vm1, %v926_v25, 0.0 }
  0xfe   : > { %1067 = vadd.xlane.f32.xlu0 %v1066_v43  ;;  %v5121_v22 = vpop.xlane.xlu1 %663  ;;  %v920_v2 = vmul.f32 %v6850_v40, %v6850_v40  ;;  %v935_v5 = vmul.f32 %v6871_v9, %v6871_v9  ;;  %v1141_v18 = vsel %vm600_vm1, %v936_v59, 0.0  ;;  %v933_v25 = vmul.f32 %v6873_v32, %v6873_v32 }
  0xff   : > { %v5128_v10 = vpop.xlane.xlu0 %659 }
 0x100   : > { %v1109_v15 = vsel %vm600_vm1, %v920_v2, 0.0  ;;  %v6863_v2 = vld [vmem:[#allocation28_spill] sm:$0xff] }
 0x101   : > { %1079 = vadd.xlane.f32.xlu1 %v1078_v57  ;;  %v1098_v57 = vadd.f32 %v1097_v49, %v913_v41  ;;  %v1110_v21 = vadd.f32 %v1109_v15, %v919_v4  ;;  %v6862_v41 = vld [vmem:[#allocation27_spill] sm:$0xff]  ;;  %v932_v49 = vmul.f32 %v6863_v2, %v6863_v2  ;;  %v1126_v4 = vadd.f32 %v1125_v39, %v927_v28  ;;  %v6876_v39 = vld [vmem:[#allocation37_spill] sm:$0xff]  ;;  %v6877_v2 = vld [vmem:[#allocation38_spill] sm:$0xff] }
 0x102   : > { %1075 = vadd.xlane.f32.xlu0 %v1074_v46  ;;  %v5135_v0 = vpop.xlane.xlu1 %671  ;;  %v917_v46 = vmul.f32 %v6853_v51, %v6853_v51  ;;  %v925_v40 = vmul.f32 %v6862_v41, %v6862_v41  ;;  %v938_v41 = vmul.f32 %v6876_v39, %v6876_v39 }
 0x103   : > { %v5142_v31 = vpop.xlane.xlu0 %667  ;;  %v1133_v60 = vsel %vm600_vm1, %v932_v49, 0.0  ;;  %v939_v49 = vmul.f32 %v6877_v2, %v6877_v2 }
 0x104   : > { %v1106_v24 = vadd.f32 %v1105_v19, %v917_v46  ;;  %v1122_v46 = vadd.f32 %v1121_v58, %v925_v40  ;;  %v1142_v40 = vadd.f32 %v1141_v18, %v935_v5  ;;  %v6884_v5 = vld [vmem:[#allocation43_spill] sm:$0xff]  ;;  %v6885_v18 = vld [vmem:[#allocation44_spill] sm:$0xff] }
 0x105   : > { %1087 = vadd.xlane.f32.xlu1 %v1086_v61  ;;  %v923_v61 = vmul.f32 %v6856_v54, %v6856_v54  ;;  %v948_v32 = vmul.f32 %v6885_v18, %v6885_v18 }
 0x106   : > { %1083 = vadd.xlane.f32.xlu0 %v1082_v27  ;;  %v5149_v33 = vpop.xlane.xlu1 %679  ;;  %v1117_v27 = vsel %vm600_vm1, %v924_v53, 0.0  ;;  %v6867_v53 = vld [vmem:[#allocation31_spill] sm:$0xff] }
 0x107   : > { %v5156_v43 = vpop.xlane.xlu0 %675  ;;  %v929_v19 = vmul.f32 %v6867_v53, %v6867_v53  ;;  %v1145_v53 = vsel %vm600_vm1, %v938_v41, 0.0  ;;  %v6887_v41 = vld [vmem:[#allocation46_spill] sm:$0xff] }
 0x109   : > { %1095 = vadd.xlane.f32.xlu1 %v1094_v42  ;;  %v1118_v42 = vadd.f32 %v1117_v27, %v923_v61  ;;  %v6870_v61 = vld [vmem:[#allocation33_spill] sm:$0xff] }
 0x10a   : > { %1091 = vadd.xlane.f32.xlu0 %v1090_v7  ;;  %v5163_v48 = vpop.xlane.xlu1 %687 }
 0x10b   : > { %v5170_v55 = vpop.xlane.xlu0 %683 }
 0x10d   : > { %1103 = vadd.xlane.f32.xlu1 %v1102_v45  ;;  %v6864_v45 = vld [vmem:[#allocation29_spill] sm:$0xff] }
 0x10e   : > { %1099 = vadd.xlane.f32.xlu0 %v1098_v57  ;;  %v5177_v63 = vpop.xlane.xlu1 %695  ;;  %v930_v50 = vmul.f32 %v6864_v45, %v6864_v45  ;;  %v6865_v57 = vld [vmem:[#allocation30_spill] sm:$0xff] }
 0x10f   : > { %v5184_v17 = vpop.xlane.xlu0 %691  ;;  %v931_v15 = vmul.f32 %v6865_v57, %v6865_v57 }
 0x110   : > { %v1129_v54 = vsel %vm600_vm1, %v930_v50, 0.0 }
 0x111   : > { %1111 = vadd.xlane.f32.xlu1 %v1110_v21  ;;  %v1134_v27 = vadd.f32 %v1133_v60, %v931_v15  ;;  %v1130_v13 = vadd.f32 %v1129_v54, %v929_v19  ;;  %v6880_v15 = vld [vmem:[#allocation40_spill] sm:$0xff]  ;;  %v6882_v19 = vld [vmem:[#allocation41_spill] sm:$0xff]  ;;  %v6883_v54 = vld [vmem:[#allocation42_spill] sm:$0xff] }
 0x112   : > { %1107 = vadd.xlane.f32.xlu0 %v1106_v24  ;;  %v5191_v7 = vpop.xlane.xlu1 %703  ;;  %v934_v24 = vmul.f32 %v6870_v61, %v6870_v61  ;;  %v942_v56 = vmul.f32 %v6882_v19, %v6882_v19  ;;  %v943_v61 = vmul.f32 %v6883_v54, %v6883_v54  ;;  %v6890_v19 = vld [vmem:[#allocation49_spill] sm:$0xff]  ;;  %v6891_v54 = vld [vmem:[#allocation50_spill] sm:$0xff] }
 0x113   : > { %6861 = vst [vmem:[#allocation4_spill] sm:$0xff] %v5191_v7  ;;  %v5198_v52 = vpop.xlane.xlu0 %699 }
 0x115   : > { %1119 = vadd.xlane.f32.xlu1 %v1118_v42  ;;  %v6874_v42 = vld [vmem:[#allocation36_spill] sm:$0xff] }
 0x116   : > { %1115 = vadd.xlane.f32.xlu0 %v1114_v37  ;;  %v5205_v51 = vpop.xlane.xlu1 %711  ;;  %v940_v3 = vmul.f32 %v6874_v42, %v6874_v42  ;;  %v1137_v37 = vsel %vm600_vm1, %v934_v24, 0.0  ;;  %v1153_v42 = vsel %vm600_vm1, %v942_v56, 0.0  ;;  %v950_v56 = vmul.f32 %v6890_v19, %v6890_v19  ;;  %v6897_v19 = vld [vmem:[#allocation56_spill] sm:$0xff] }
 0x117   : > { %6866 = vst [vmem:[#allocation5_spill] sm:$0xff] %v5205_v51  ;;  %v5212_v21 = vpop.xlane.xlu0 %707  ;;  %v1138_v45 = vadd.f32 %v1137_v37, %v933_v25 }
 0x118   : > { %6869 = vst [vmem:[#allocation6_spill] sm:$0xff] %v5212_v21  ;;  %v1149_v50 = vsel %vm600_vm1, %v940_v3, 0.0  ;;  %v6886_v3 = vld [vmem:[#allocation45_spill] sm:$0xff]  ;;  %v6913_v21 = vld [vmem:[#allocation72_spill] sm:$0xff] }
 0x119   : > { %1127 = vadd.xlane.f32.xlu1 %v1126_v4  ;;  %v6879_v4 = vld [vmem:[#allocation39_spill] sm:$0xff]  ;;  %v1150_v59 = vadd.f32 %v1149_v50, %v939_v49  ;;  %v946_v37 = vmul.f32 %v6886_v3, %v6886_v3 }
 0x11a   : > { %1123 = vadd.xlane.f32.xlu0 %v1122_v46  ;;  %v5219_v29 = vpop.xlane.xlu1 %719  ;;  %v937_v57 = vmul.f32 %v6879_v4, %v6879_v4  ;;  %v944_v46 = vmul.f32 %v6880_v15, %v6880_v15  ;;  %v6888_v50 = vld [vmem:[#allocation47_spill] sm:$0xff] }
 0x11b   : > { %6872 = vst [vmem:[#allocation7_spill] sm:$0xff] %v5219_v29  ;;  %v5226_v28 = vpop.xlane.xlu0 %715  ;;  %v945_v4 = vmul.f32 %v6888_v50, %v6888_v50 }
 0x11c   : > { %6875 = vst [vmem:[#allocation8_spill] sm:$0xff] %v5226_v28  ;;  %v1157_v9 = vsel %vm600_vm1, %v944_v46, 0.0  ;;  %v6909_v28 = vld [vmem:[#allocation68_spill] sm:$0xff] }
 0x11d   : > { %1135 = vadd.xlane.f32.xlu1 %v1134_v27  ;;  %v1146_v27 = vadd.f32 %v1145_v53, %v937_v57  ;;  %v1158_v39 = vadd.f32 %v1157_v9, %v943_v61  ;;  %v6889_v57 = vld [vmem:[#allocation48_spill] sm:$0xff]  ;;  %v1161_v53 = vsel %vm600_vm1, %v946_v37, 0.0  ;;  %v951_v61 = vmul.f32 %v6891_v54, %v6891_v54 }
 0x11e   : > { %1131 = vadd.xlane.f32.xlu0 %v1130_v13  ;;  %v5233_v58 = vpop.xlane.xlu1 %727  ;;  %v941_v13 = vmul.f32 %v6884_v5, %v6884_v5  ;;  %v952_v15 = vmul.f32 %v6889_v57, %v6889_v57  ;;  %v1162_v9 = vadd.f32 %v1161_v53, %v945_v4  ;;  %v1169_v37 = vsel %vm600_vm1, %v950_v56, 0.0 }
 0x11f   : > { %6878 = vst [vmem:[#allocation9_spill] sm:$0xff] %v5233_v58  ;;  %v5240_v60 = vpop.xlane.xlu0 %723  ;;  %v960_v56 = vmul.f32 %v6897_v19, %v6897_v19 }
 0x120   : > { %6881 = vst [vmem:[#allocation10_spill] sm:$0xff] %v5240_v60  ;;  %v1154_v49 = vadd.f32 %v1153_v42, %v941_v13  ;;  %v1173_v5 = vsel %vm600_vm1, %v952_v15, 0.0  ;;  %v6892_v13 = vld [vmem:[#allocation51_spill] sm:$0xff]  ;;  %v6905_v60 = vld [vmem:[#allocation64_spill] sm:$0xff] }
 0x121   : > { %1143 = vadd.xlane.f32.xlu1 %v1142_v40  ;;  %v947_v40 = vmul.f32 %v6887_v41, %v6887_v41  ;;  %v949_v18 = vmul.f32 %v6892_v13, %v6892_v13  ;;  %v6896_v15 = vld [vmem:[#allocation55_spill] sm:$0xff]  ;;  %v6899_v13 = vld [vmem:[#allocation58_spill] sm:$0xff] }
 0x122   : > { %1139 = vadd.xlane.f32.xlu0 %v1138_v45  ;;  %v5247_v24 = vpop.xlane.xlu1 %735  ;;  %v1165_v45 = vsel %vm600_vm1, %v948_v32, 0.0  ;;  %v6893_v32 = vld [vmem:[#allocation52_spill] sm:$0xff]  ;;  %v953_v53 = vmul.f32 %v6896_v15, %v6896_v15 }
 0x123   : > { %v5254_v25 = vpop.xlane.xlu0 %731  ;;  %v956_v42 = vmul.f32 %v6893_v32, %v6893_v32  ;;  %v1170_v4 = vadd.f32 %v1169_v37, %v949_v18  ;;  %v959_v18 = vmul.f32 %v6899_v13, %v6899_v13  ;;  %v1189_v37 = vsel %vm600_vm1, %v960_v56, 0.0  ;;  %v6901_v15 = vld [vmem:[#allocation60_spill] sm:$0xff] }
 0x125   : > { %1151 = vadd.xlane.f32.xlu1 %v1150_v59  ;;  %v1166_v59 = vadd.f32 %v1165_v45, %v947_v40  ;;  %v1174_v40 = vadd.f32 %v1173_v5, %v951_v61  ;;  %v1181_v57 = vsel %vm600_vm1, %v956_v42, 0.0  ;;  %v6898_v61 = vld [vmem:[#allocation57_spill] sm:$0xff] }
 0x126   : > { %1147 = vadd.xlane.f32.xlu0 %v1146_v27  ;;  %v5261_v2 = vpop.xlane.xlu1 %743  ;;  %v958_v5 = vmul.f32 %v6898_v61, %v6898_v61  ;;  %v6903_v61 = vld [vmem:[#allocation62_spill] sm:$0xff] }
 0x127   : > { %v5268_v46 = vpop.xlane.xlu0 %739 }
 0x129   : > { %1159 = vadd.xlane.f32.xlu1 %v1158_v39  ;;  %v6894_v39 = vld [vmem:[#allocation53_spill] sm:$0xff] }
 0x12a   : > { %1155 = vadd.xlane.f32.xlu0 %v1154_v49  ;;  %v5275_v27 = vpop.xlane.xlu1 %751  ;;  %v954_v41 = vmul.f32 %v6894_v39, %v6894_v39  ;;  %v6895_v49 = vld [vmem:[#allocation54_spill] sm:$0xff]  ;;  %v6900_v39 = vld [vmem:[#allocation59_spill] sm:$0xff] }
 0x12b   : > { %v5282_v3 = vpop.xlane.xlu0 %747  ;;  %v955_v45 = vmul.f32 %v6895_v49, %v6895_v49  ;;  %v957_v49 = vmul.f32 %v6900_v39, %v6900_v39  ;;  %v6904_v39 = vld [vmem:[#allocation63_spill] sm:$0xff] }
 0x12d   : > { %1167 = vadd.xlane.f32.xlu1 %v1166_v59  ;;  %v1177_v59 = vsel %vm600_vm1, %v954_v41, 0.0  ;;  %v964_v41 = vmul.f32 %v6901_v15, %v6901_v15  ;;  %v961_v15 = vmul.f32 %v6904_v39, %v6904_v39  ;;  %v6908_v39 = vld [vmem:[#allocation67_spill] sm:$0xff] }
 0x12e   : > { %1163 = vadd.xlane.f32.xlu0 %v1162_v9  ;;  %v5289_v50 = vpop.xlane.xlu1 %759  ;;  %v1182_v9 = vadd.f32 %v1181_v57, %v955_v45  ;;  %v1178_v42 = vadd.f32 %v1177_v59, %v953_v53  ;;  %v6902_v45 = vld [vmem:[#allocation61_spill] sm:$0xff]  ;;  %v963_v53 = vmul.f32 %v6903_v61, %v6903_v61 }
 0x12f   : > { %v5296_v54 = vpop.xlane.xlu0 %755  ;;  %v962_v57 = vmul.f32 %v6902_v45, %v6902_v45  ;;  %v1197_v13 = vsel %vm600_vm1, %v964_v41, 0.0  ;;  %v6907_v45 = vld [vmem:[#allocation66_spill] sm:$0xff] }
 0x131   : > { %1175 = vadd.xlane.f32.xlu1 %v1174_v40  ;;  %v1185_v40 = vsel %vm600_vm1, %v958_v5, 0.0  ;;  %v968_v5 = vmul.f32 %v6905_v60, %v6905_v60  ;;  %v965_v60 = vmul.f32 %v6908_v39, %v6908_v39  ;;  %v6912_v39 = vld [vmem:[#allocation71_spill] sm:$0xff] }
 0x132   : > { %1171 = vadd.xlane.f32.xlu0 %v1170_v4  ;;  %v5303_v32 = vpop.xlane.xlu1 %767  ;;  %v1190_v4 = vadd.f32 %v1189_v37, %v959_v18  ;;  %v1186_v59 = vadd.f32 %v1185_v40, %v957_v49  ;;  %v6906_v18 = vld [vmem:[#allocation65_spill] sm:$0xff]  ;;  %v967_v49 = vmul.f32 %v6907_v45, %v6907_v45 }
 0x133   : > { %v5310_v19 = vpop.xlane.xlu0 %763  ;;  %v966_v37 = vmul.f32 %v6906_v18, %v6906_v18  ;;  %v1205_v61 = vsel %vm600_vm1, %v968_v5, 0.0  ;;  %v6911_v18 = vld [vmem:[#allocation70_spill] sm:$0xff] }
 0x135   : > { %1183 = vadd.xlane.f32.xlu1 %v1182_v9  ;;  %v1193_v9 = vsel %vm600_vm1, %v962_v57, 0.0  ;;  %v972_v57 = vmul.f32 %v6909_v28, %v6909_v28  ;;  %v969_v28 = vmul.f32 %v6912_v39, %v6912_v39  ;;  %v6917_v39 = vld [vmem:[#allocation75_spill] sm:$0xff] }
 0x136   : > { %1179 = vadd.xlane.f32.xlu0 %v1178_v42  ;;  %v5317_v56 = vpop.xlane.xlu1 %775  ;;  %v1198_v42 = vadd.f32 %v1197_v13, %v963_v53  ;;  %v1194_v40 = vadd.f32 %v1193_v9, %v961_v15  ;;  %v6910_v53 = vld [vmem:[#allocation69_spill] sm:$0xff]  ;;  %v971_v15 = vmul.f32 %v6911_v18, %v6911_v18  ;;  %v6916_v18 = vld [vmem:[#allocation74_spill] sm:$0xff] }
 0x137   : > { %v5324_v58 = vpop.xlane.xlu0 %771  ;;  %v970_v13 = vmul.f32 %v6910_v53, %v6910_v53  ;;  %v1213_v45 = vsel %vm600_vm1, %v972_v57, 0.0 }
 0x139   : > { %1191 = vadd.xlane.f32.xlu1 %v1190_v4  ;;  %v1201_v4 = vsel %vm600_vm1, %v966_v37, 0.0  ;;  %v976_v37 = vmul.f32 %v6913_v21, %v6913_v21  ;;  %v973_v21 = vmul.f32 %v6916_v18, %v6916_v18 }
 0x13a   : > { %1187 = vadd.xlane.f32.xlu0 %v1186_v59  ;;  %v5331_v41 = vpop.xlane.xlu1 %783  ;;  %v1206_v59 = vadd.f32 %v1205_v61, %v967_v49  ;;  %v1202_v9 = vadd.f32 %v1201_v4, %v965_v60  ;;  %v6914_v49 = vld [vmem:[#allocation73_spill] sm:$0xff]  ;;  %v975_v60 = vmul.f32 %v4920_v30, %v4920_v30 }
 0x13b   : > { %v5338_v29 = vpop.xlane.xlu0 %779  ;;  %v974_v61 = vmul.f32 %v6914_v49, %v6914_v49  ;;  %v1221_v53 = vsel %vm600_vm1, %v976_v37, 0.0  ;;  %v6921_v49 = vld [vmem:[#allocation77_spill] sm:$0xff] }
 0x13c   : > { %v1222_v30 = vadd.f32 %v1221_v53, %v975_v60  ;;  %v977_v18 = vmul.f32 %v6921_v49, %v6921_v49  ;;  %v6924_v60 = vld [vmem:[#allocation79_spill] sm:$0xff] }
 0x13d   : > { %1199 = vadd.xlane.f32.xlu1 %v1198_v42  ;;  %v1209_v42 = vsel %vm600_vm1, %v970_v13, 0.0  ;;  %v980_v13 = vmul.f32 %v6917_v39, %v6917_v39  ;;  %v6922_v39 = vld [vmem:[#allocation78_spill] sm:$0xff]  ;;  %v982_v53 = vmul.f32 %v6924_v60, %v6924_v60 }
 0x13e   : > { %1195 = vadd.xlane.f32.xlu0 %v1194_v40  ;;  %v5345_v5 = vpop.xlane.xlu1 %791  ;;  %v1214_v40 = vadd.f32 %v1213_v45, %v971_v15  ;;  %v1210_v4 = vadd.f32 %v1209_v42, %v969_v28  ;;  %v6919_v15 = vld [vmem:[#allocation76_spill] sm:$0xff] }
 0x13f   : > { %v5352_v51 = vpop.xlane.xlu0 %787  ;;  %v978_v45 = vmul.f32 %v6919_v15, %v6919_v15  ;;  %v1229_v42 = vsel %vm600_vm1, %v980_v13, 0.0  ;;  %v981_v15 = vmul.f32 %v4963_v38, %v4963_v38 }
 0x141   : > { %1207 = vadd.xlane.f32.xlu1 %v1206_v59  ;;  %v1217_v59 = vsel %vm600_vm1, %v974_v61, 0.0  ;;  %v984_v61 = vmul.f32 %v6922_v39, %v6922_v39 }
 0x142   : > { %1203 = vadd.xlane.f32.xlu0 %v1202_v9  ;;  %v5359_v57 = vpop.xlane.xlu1 %799  ;;  %v979_v9 = vmul.f32 %v4938_v62, %v4938_v62  ;;  %v1218_v37 = vadd.f32 %v1217_v59, %v973_v21 }
 0x143   : > { %6915 = vst [vmem:[#allocation11_spill] sm:$0xff] %v5359_v57  ;;  %v5366_v7 = vpop.xlane.xlu0 %795  ;;  %v1237_v59 = vsel %vm600_vm1, %v984_v61, 0.0 }
 0x144   : > { %6918 = vst [vmem:[#allocation12_spill] sm:$0xff] %v5366_v7  ;;  %v1230_v62 = vadd.f32 %v1229_v42, %v979_v9 }
 0x145   : > { %1215 = vadd.xlane.f32.xlu1 %v1214_v40  ;;  %v1225_v40 = vsel %vm600_vm1, %v978_v45, 0.0  ;;  %v1233_v45 = vsel %vm600_vm1, %v982_v53, 0.0  ;;  %v5414_v53 = vmul.f32 0.0051020407, %v5044_v1 }
 0x146   : > { %1211 = vadd.xlane.f32.xlu0 %v1210_v4  ;;  %v5373_v28 = vpop.xlane.xlu1 %807  ;;  %v983_v4 = vmul.f32 %v4956_v14, %v4956_v14  ;;  %v1226_v13 = vadd.f32 %v1225_v40, %v977_v18  ;;  %v1234_v9 = vadd.f32 %v1233_v45, %v981_v15 }
 0x147   : > { %6920 = vst [vmem:[#allocation13_spill] sm:$0xff] %v5373_v28  ;;  %v5380_v7 = vpop.xlane.xlu0 %803  ;;  %v1370_v15 = vmul.f32 %v5414_v53, %v5414_v53  ;;  %v5470_v28 = vmul.f32 0.0051020407, %v5086_v11 }
 0x148   : > { %6923 = vst [vmem:[#allocation14_spill] sm:$0xff] %v5380_v7  ;;  %v1238_v39 = vadd.f32 %v1237_v59, %v983_v4  ;;  %v5419_v4 = vmul.f32 0.0051020407, %v5030_v36  ;;  %v5422_v59 = vmul.f32 0.0051020407, %v5037_v6 }
 0x149   : > { %1223 = vadd.xlane.f32.xlu1 %v1222_v30 }
 0x14a   : > { %1219 = vadd.xlane.f32.xlu0 %v1218_v37  ;;  %v5387_v21 = vpop.xlane.xlu1 %815  ;;  %v1369_v1 = vmul.f32 %v5419_v4, %v5419_v4 }
 0x14b   : > { %6925 = vst [vmem:[#allocation15_spill] sm:$0xff] %v5387_v21  ;;  %v5392_v49 = vpop.xlane.xlu0 %811 }
 0x14c   : > { %6926 = vst [vmem:[#allocation16_spill] sm:$0xff] %v5392_v49 }
 0x14d   : > { %1231 = vadd.xlane.f32.xlu1 %v1230_v62 }
 0x14e   : > { %1227 = vadd.xlane.f32.xlu0 %v1226_v13  ;;  %v5395_v30 = vpop.xlane.xlu1 %823 }
 0x14f   : > { %6927 = vst [vmem:[#allocation17_spill] sm:$0xff] %v5395_v30  ;;  %v5397_v14 = vpop.xlane.xlu0 %819 }
 0x150   : > { %6928 = vst [vmem:[#allocation18_spill] sm:$0xff] %v5397_v14  ;;  %v5439_v14 = vmul.f32 0.0051020407, %v5051_v16  ;;  %v5446_v16 = vmul.f32 0.0051020407, %v5072_v12 }
 0x151   : > { %1239 = vadd.xlane.f32.xlu1 %v1238_v39 }
 0x152   : > { %1235 = vadd.xlane.f32.xlu0 %v1234_v9  ;;  %v5399_v37 = vpop.xlane.xlu1 %831  ;;  %v5427_v9 = vmul.f32 0.0051020407, %v5023_v20 }
 0x153   : > { %6929 = vst [vmem:[#allocation19_spill] sm:$0xff] %v5399_v37  ;;  %v5401_v42 = vpop.xlane.xlu0 %827  ;;  %v5436_v37 = vmul.f32 0.0051020407, %v5058_v8 }
 0x154   : > { %6930 = vst [vmem:[#allocation20_spill] sm:$0xff] %v5401_v42 }
 0x156   : > { %v5403_v18 = vpop.xlane.xlu1 %839 }
 0x157   : > { %6931 = vst [vmem:[#allocation21_spill] sm:$0xff] %v5403_v18  ;;  %v5405_v38 = vpop.xlane.xlu0 %835 }
 0x158   : > { %6932 = vst [vmem:[#allocation22_spill] sm:$0xff] %v5405_v38 }
 0x15a   : > { %v5407_v61 = vpop.xlane.xlu1 %847 }
 0x15b   : > { %6933 = vst [vmem:[#allocation23_spill] sm:$0xff] %v5407_v61  ;;  %v5409_v40 = vpop.xlane.xlu0 %843  ;;  %v1372_v61 = vmul.f32 %v5422_v59, %v5422_v59 }
 0x15c   : > { %6934 = vst [vmem:[#allocation24_spill] sm:$0xff] %v5409_v40 }
 0x15e   : > { %v5411_v60 = vpop.xlane.xlu1 %855 }
 0x15f   : > { %6935 = vst [vmem:[#allocation25_spill] sm:$0xff] %v5411_v60  ;;  %v5416_v62 = vpop.xlane.xlu0 %851 }
 0x160   : > { %6936 = vst [vmem:[#allocation26_spill] sm:$0xff] %v5416_v62 }
 0x162   : > { %v992_v13 = vpop.xlane.xlu1 %991 }
 0x163   : > { %v1306_v45 = vmul.f32 0.0051020407, %v992_v13  ;;  %v988_v39 = vpop.xlane.xlu0 %987  ;;  %v1371_v13 = vmul.f32 %v5427_v9, %v5427_v9 }
 0x164   : > { %v1305_v60 = vmul.f32 0.0051020407, %v988_v39 }
 0x165   : > { %v1434_v62 = vsub.f32 %v1306_v45, %v1370_v15 }
 0x166   : > { %v1433_v40 = vsub.f32 %v1305_v60, %v1369_v1  ;;  %v1000_v36 = vpop.xlane.xlu1 %999  ;;  %v1373_v1 = vmul.f32 %v5436_v37, %v5436_v37 }
 0x167   : > { %v1498_v6 = vadd.f32 1e-05, %v1434_v62  ;;  %v1308_v38 = vmul.f32 0.0051020407, %v1000_v36  ;;  %v996_v18 = vpop.xlane.xlu0 %995 }
 0x168   : > { %v1497_v20 = vadd.f32 1e-05, %v1433_v40  ;;  %v1307_v42 = vmul.f32 0.0051020407, %v996_v18  ;;  %v1374_v18 = vmul.f32 %v5439_v14, %v5439_v14 }
 0x169   : > { %3855 = vrsqrt.f32 %v1498_v6  ;;  %v1436_v60 = vsub.f32 %v1308_v38, %v1372_v61  ;;  %v5449_v61 = vmul.f32 0.0051020407, %v5079_v26  ;;  %v5461_v26 = vmul.f32 0.0051020407, %v5093_v35 }
 0x16a   : > { %3857 = vrsqrt.f32 %v1497_v20  ;;  %v1435_v15 = vsub.f32 %v1307_v42, %v1371_v13  ;;  %v1008_v45 = vpop.xlane.xlu1 %1007 }
 0x16b   : > { %v1310_v39 = vmul.f32 0.0051020407, %v1008_v45  ;;  %v1004_v62 = vpop.xlane.xlu0 %1003  ;;  %v1500_v36 = vadd.f32 1e-05, %v1436_v60  ;;  %v1626_v60 = vld [vmem:[%s4365_s21 + $0x8] sm:$0xff]  ;;  %v1375_v45 = vmul.f32 %v5446_v16, %v5446_v16  ;;  %6937 = vst [vmem:[#allocation27_spill] sm:$0xff] %v5461_v26 }
 0x16c   : > { %v1499_v30 = vadd.f32 1e-05, %v1435_v15  ;;  %v1309_v8 = vmul.f32 0.0051020407, %v1004_v62  ;;  %v5453_v15 = vmul.f32 0.0051020407, %v5065_v23 }
 0x16d   : > { %v1438_v40 = vsub.f32 %v1310_v39, %v1374_v18  ;;  %v1625_v62 = vld [vmem:[%s4365_s21] sm:$0xff] }
 0x16e   : > { %3859 = vrsqrt.f32 %v1499_v30  ;;  %v1437_v38 = vsub.f32 %v1309_v8, %v1373_v1  ;;  %v1016_v42 = vpop.xlane.xlu1 %1015  ;;  %v1378_v1 = vmul.f32 %v5449_v61, %v5449_v61  ;;  %v1376_v7 = vmul.f32 %v5453_v15, %v5453_v15 }
 0x16f   : > { %v1012_v6 = vpop.xlane.xlu0 %1011  ;;  %3861 = vrsqrt.f32 %v1500_v36  ;;  %v1502_v39 = vadd.f32 1e-05, %v1438_v40  ;;  %v1312_v23 = vmul.f32 0.0051020407, %v1016_v42  ;;  %v1627_v40 = vld [vmem:[%s4365_s21 + $0x10] sm:$0xff] }
 0x170   : > { %v1501_v13 = vadd.f32 1e-05, %v1437_v38  ;;  %v1311_v20 = vmul.f32 0.0051020407, %v1012_v6  ;;  %v5477_v42 = vmul.f32 0.0051020407, %v5107_v44 }
 0x171   : > { %v1440_v11 = vsub.f32 %v1312_v23, %v1376_v7 }
 0x172   : > { %v1024_v12 = vpop.xlane.xlu1 %1023  ;;  %3863 = vrsqrt.f32 %v1501_v13  ;;  %v1439_v38 = vsub.f32 %v1311_v20, %v1375_v45  ;;  %v1380_v13 = vmul.f32 %v5461_v26, %v5461_v26  ;;  %6938 = vst [vmem:[#allocation28_spill] sm:$0xff] %v5477_v42  ;;  %v1628_v26 = vld [vmem:[%s4365_s21 + $0x18] sm:$0xff]  ;;  %v1382_v7 = vmul.f32 %v5477_v42, %v5477_v42 }
 0x173   : > { %v3856_v30 = vpop.eup %3855  ;;  %v1314_v36 = vmul.f32 0.0051020407, %v1024_v12  ;;  %v1020_v8 = vpop.xlane.xlu0 %1019  ;;  %3865 = vrsqrt.f32 %v1502_v39  ;;  %v1636_v42 = vld [vmem:[%s4365_s21 + $0x58] sm:$0xff] }
 0x174   : > { %v3858_v18 = vpop.eup %3857  ;;  %v5463_v6 = vmul.f32 %v3856_v30, %v1626_v60  ;;  %v1313_v30 = vmul.f32 0.0051020407, %v1020_v8 }
 0x175   : > { %v1442_v49 = vsub.f32 %v1314_v36, %v1378_v1  ;;  %v5465_v21 = vmul.f32 %v3858_v18, %v1625_v62  ;;  %v1503_v62 = vadd.f32 1e-05, %v1439_v38  ;;  %v5481_v1 = vmul.f32 0.0051020407, %v5100_v34 }
 0x176   : > { %v1032_v35 = vpop.xlane.xlu1 %1031  ;;  %1952 = vperm.xlu1 %3854, %v5463_v6   ;;  %v1504_v38 = vadd.f32 1e-05, %v1440_v11  ;;  %v5505_v11 = vmul.f32 0.0051020407, %v5135_v0 }
 0x177   : > { %v1506_v20 = vadd.f32 1e-05, %v1442_v49  ;;  %v1316_v60 = vmul.f32 0.0051020407, %v1032_v35  ;;  %1947 = vperm.xlu0 %3853, %v5465_v21   ;;  %v1028_v45 = vpop.xlane.xlu0 %1027  ;;  %6939 = vst [vmem:[#allocation29_spill] sm:$0xff] %v5481_v1  ;;  %v1377_v49 = vmul.f32 %v5470_v28, %v5470_v28 }
 0x178   : > { %v3860_v12 = vpop.eup %3859  ;;  %v5488_v35 = vmul.f32 0.0051020407, %v5121_v22  ;;  %v1315_v34 = vmul.f32 0.0051020407, %v1028_v45  ;;  %6942 = vst [vmem:[#allocation32_spill] sm:$0xff] %v5505_v11 }
 0x179   : > { %3867 = vrsqrt.f32 %v1506_v20  ;;  %v1444_v36 = vsub.f32 %v1316_v60, %v1380_v13  ;;  %v5483_v18 = vmul.f32 %v3860_v12, %v1627_v40  ;;  %v3862_v44 = vpop.eup %3861  ;;  %v1441_v40 = vsub.f32 %v1313_v30, %v1377_v49 }
 0x17a   : > { %6940 = vst [vmem:[#allocation30_spill] sm:$0xff] %v5488_v35  ;;  %v1040_v57 = vpop.xlane.xlu1 %1039  ;;  %3869 = vrsqrt.f32 %v1503_v62  ;;  %v1379_v13 = vmul.f32 %v5481_v1, %v5481_v1  ;;  %v5496_v20 = vmul.f32 %v3862_v44, %v1628_v26  ;;  %v5499_v12 = vmul.f32 0.0051020407, %v5114_v47 }
 0x17b   : > { %v1508_v39 = vadd.f32 1e-05, %v1444_v36  ;;  %v1318_v8 = vmul.f32 0.0051020407, %v1040_v57  ;;  %1957 = vperm.xlu1 %3854, %v5483_v18   ;;  %v1036_v23 = vpop.xlane.xlu0 %1035  ;;  %v1384_v57 = vmul.f32 %v5488_v35, %v5488_v35  ;;  %v1629_v36 = vld [vmem:[%s4365_s21 + $0x20] sm:$0xff] }
 0x17c   : > { %v3864_v60 = vpop.eup %3863  ;;  %6941 = vst [vmem:[#allocation31_spill] sm:$0xff] %v5499_v12  ;;  %v1443_v62 = vsub.f32 %v1315_v34, %v1379_v13  ;;  %v1505_v44 = vadd.f32 1e-05, %v1441_v40  ;;  %v1317_v47 = vmul.f32 0.0051020407, %v1036_v23  ;;  %v1381_v0 = vmul.f32 %v5499_v12, %v5499_v12 }
 0x17d   : > { %3871 = vrsqrt.f32 %v1508_v39  ;;  %v1446_v22 = vsub.f32 %v1318_v8, %v1382_v7  ;;  %v5508_v39 = vmul.f32 %v3864_v60, %v1629_v36  ;;  %v1634_v8 = vld [vmem:[%s4365_s21 + $0x48] sm:$0xff]  ;;  %v3866_v35 = vpop.eup %3865  ;;  %v5514_v34 = vmul.f32 0.0051020407, %v5128_v10 }
 0x17e   : > { %v1048_v45 = vpop.xlane.xlu1 %1047  ;;  %3873 = vrsqrt.f32 %v1504_v38  ;;  %v5517_v13 = vmul.f32 0.0051020407, %v5149_v33  ;;  %v1630_v38 = vld [vmem:[%s4365_s21 + $0x28] sm:$0xff]  ;;  %v1386_v23 = vmul.f32 %v5505_v11, %v5505_v11  ;;  %v1507_v60 = vadd.f32 1e-05, %v1443_v62 }
 0x17f   : > { %v1510_v30 = vadd.f32 1e-05, %v1446_v22  ;;  %v1320_v49 = vmul.f32 0.0051020407, %v1048_v45  ;;  %1962 = vperm.xlu1 %3854, %v5496_v20   ;;  %v1044_v26 = vpop.xlane.xlu0 %1043  ;;  %6943 = vst [vmem:[#allocation33_spill] sm:$0xff] %v5514_v34  ;;  %v1445_v10 = vsub.f32 %v1317_v47, %v1381_v0  ;;  %v5525_v12 = vmul.f32 %v3866_v35, %v1630_v38 }
 0x180   : > { %6944 = vst [vmem:[#allocation34_spill] sm:$0xff] %v5517_v13  ;;  %v1383_v62 = vmul.f32 %v5514_v34, %v5514_v34  ;;  %v5538_v35 = vmul.f32 0.0051020407, %v5163_v48  ;;  %v1638_v48 = vld [vmem:[%s4365_s21 + $0x68] sm:$0xff] }
 0x181   : > { %3875 = vrsqrt.f32 %v1510_v30  ;;  %v1448_v7 = vsub.f32 %v1320_v49, %v1384_v57  ;;  %v1319_v30 = vmul.f32 0.0051020407, %v1044_v26  ;;  %v1631_v26 = vld [vmem:[%s4365_s21 + $0x30] sm:$0xff]  ;;  %v1509_v38 = vadd.f32 1e-05, %v1445_v10  ;;  %v1642_v34 = vld [vmem:[%s4365_s21 + $0x88] sm:$0xff] }
 0x182   : > { %v1056_v22 = vpop.xlane.xlu1 %1055  ;;  %3877 = vrsqrt.f32 %v1505_v44  ;;  %6946 = vst [vmem:[#allocation36_spill] sm:$0xff] %v5538_v35 }
 0x183   : > { %v3868_v40 = vpop.eup %3867  ;;  %v1512_v57 = vadd.f32 1e-05, %v1448_v7  ;;  %v1322_v45 = vmul.f32 0.0051020407, %v1056_v22  ;;  %1967 = vperm.xlu1 %3854, %v5508_v39   ;;  %v1052_v36 = vpop.xlane.xlu0 %1051  ;;  %v5531_v7 = vmul.f32 0.0051020407, %v5142_v31  ;;  %v1388_v22 = vmul.f32 %v5517_v13, %v5517_v13 }
 0x184   : > { %v5523_v49 = vmul.f32 %v3868_v40, %v1634_v8  ;;  %v3870_v1 = vpop.eup %3869  ;;  %v1447_v40 = vsub.f32 %v1319_v30, %v1383_v62 }
 0x185   : > { %3879 = vrsqrt.f32 %v1512_v57  ;;  %v1450_v33 = vsub.f32 %v1322_v45, %v1386_v23  ;;  %6945 = vst [vmem:[#allocation35_spill] sm:$0xff] %v5531_v7  ;;  %v1321_v23 = vmul.f32 0.0051020407, %v1052_v36  ;;  %v5544_v45 = vmul.f32 0.0051020407, %v5156_v43 }
 0x186   : > { %v1064_v44 = vpop.xlane.xlu1 %1063  ;;  %1992 = vperm.xlu0 %3853, %v5523_v49   ;;  %3881 = vrsqrt.f32 %v1507_v60  ;;  %v5546_v11 = vmul.f32 %v3870_v1, %v1631_v26  ;;  %v1390_v43 = vmul.f32 %v5538_v35, %v5538_v35  ;;  %v1511_v26 = vadd.f32 1e-05, %v1447_v40  ;;  %v1640_v35 = vld [vmem:[%s4365_s21 + $0x78] sm:$0xff] }
 0x187   : > { %v3872_v47 = vpop.eup %3871  ;;  %v1514_v8 = vadd.f32 1e-05, %v1450_v33  ;;  %v1324_v0 = vmul.f32 0.0051020407, %v1064_v44  ;;  %1972 = vperm.xlu1 %3854, %v5525_v12   ;;  %v1060_v31 = vpop.xlane.xlu0 %1059  ;;  %6947 = vst [vmem:[#allocation37_spill] sm:$0xff] %v5544_v45  ;;  %v1385_v33 = vmul.f32 %v5531_v7, %v5531_v7 }
 0x188   : > { %v5541_v57 = vmul.f32 %v3872_v47, %v1636_v42  ;;  %v3874_v60 = vpop.eup %3873  ;;  %v5552_v44 = vmul.f32 0.0051020407, %v5177_v63  ;;  %v1632_v42 = vld [vmem:[%s4365_s21 + $0x38] sm:$0xff]  ;;  %v1323_v1 = vmul.f32 0.0051020407, %v1060_v31 }
 0x189   : > { %3883 = vrsqrt.f32 %v1514_v8  ;;  %v1452_v13 = vsub.f32 %v1324_v0, %v1388_v22  ;;  %v1449_v63 = vsub.f32 %v1321_v23, %v1385_v33  ;;  %v1387_v8 = vmul.f32 %v5544_v45, %v5544_v45 }
 0x18a   : > { %6948 = vst [vmem:[#allocation38_spill] sm:$0xff] %v5552_v44  ;;  %v1072_v10 = vpop.xlane.xlu1 %1071  ;;  %2002 = vperm.xlu0 %3853, %v5541_v57   ;;  %3885 = vrsqrt.f32 %v1509_v38  ;;  %v5563_v7 = vmul.f32 %v3874_v60, %v1632_v42  ;;  %v5567_v31 = vmul.f32 0.0051020407, %v5170_v55  ;;  %v1633_v38 = vld [vmem:[%s4365_s21 + $0x40] sm:$0xff]  ;;  %v1392_v23 = vmul.f32 %v5552_v44, %v5552_v44 }
 0x18b   : > { %v3876_v36 = vpop.eup %3875  ;;  %v1516_v30 = vadd.f32 1e-05, %v1452_v13  ;;  %v1326_v62 = vmul.f32 0.0051020407, %v1072_v10  ;;  %1977 = vperm.xlu1 %3854, %v5546_v11   ;;  %v1068_v22 = vpop.xlane.xlu0 %1067  ;;  %v1513_v42 = vadd.f32 1e-05, %v1449_v63 }
 0x18c   : > { %v5559_v47 = vmul.f32 %v3876_v36, %v1638_v48  ;;  %v3878_v13 = vpop.eup %3877  ;;  %6949 = vst [vmem:[#allocation39_spill] sm:$0xff] %v5567_v31  ;;  %v1451_v48 = vsub.f32 %v1323_v1, %v1387_v8  ;;  %v1325_v55 = vmul.f32 0.0051020407, %v1068_v22  ;;  %v1389_v1 = vmul.f32 %v5567_v31, %v5567_v31  ;;  %v1635_v22 = vld [vmem:[%s4365_s21 + $0x50] sm:$0xff] }
 0x18d   : > { %3887 = vrsqrt.f32 %v1516_v30  ;;  %v1454_v0 = vsub.f32 %v1326_v62, %v1390_v43  ;;  %v5576_v45 = vmul.f32 %v3878_v13, %v1633_v38  ;;  %v5582_v8 = vmul.f32 0.0051020407, %v5184_v17 }
 0x18e   : > { %v1080_v10 = vpop.xlane.xlu1 %1079  ;;  %2012 = vperm.xlu0 %3853, %v5559_v47   ;;  %3889 = vrsqrt.f32 %v1511_v26  ;;  %v1515_v26 = vadd.f32 1e-05, %v1451_v48  ;;  %v5597_v48 = vmul.f32 0.0051020407, %v5198_v52 }
 0x18f   : > { %v3880_v40 = vpop.eup %3879  ;;  %v1518_v33 = vadd.f32 1e-05, %v1454_v0  ;;  %v1328_v36 = vmul.f32 0.0051020407, %v1080_v10  ;;  %1982 = vperm.xlu1 %3854, %v5563_v7   ;;  %v1076_v60 = vpop.xlane.xlu0 %1075  ;;  %6950 = vst [vmem:[#allocation40_spill] sm:$0xff] %v5582_v8  ;;  %v1453_v10 = vsub.f32 %v1325_v55, %v1389_v1 }
 0x190   : > { %v5574_v43 = vmul.f32 %v3880_v40, %v1640_v35  ;;  %v3882_v30 = vpop.eup %3881  ;;  %v1327_v38 = vmul.f32 0.0051020407, %v1076_v60  ;;  %6952 = vst [vmem:[#allocation42_spill] sm:$0xff] %v5597_v48  ;;  %v1637_v60 = vld [vmem:[%s4365_s21 + $0x60] sm:$0xff] }
 0x191   : > { %3891 = vrsqrt.f32 %v1518_v33  ;;  %v1456_v62 = vsub.f32 %v1328_v36, %v1392_v23  ;;  %v5591_v17 = vmul.f32 %v3882_v30, %v1635_v22  ;;  %v1644_v23 = vld [vmem:[%s4365_s21 + $0x98] sm:$0xff]  ;;  %v1391_v36 = vmul.f32 %v5582_v8, %v5582_v8 }
 0x192   : > { %v5584_v0 = vpop.xlane.xlu1 %1087  ;;  %2022 = vperm.xlu0 %3853, %v5574_v43   ;;  %3893 = vrsqrt.f32 %v1513_v42  ;;  %v1517_v55 = vadd.f32 1e-05, %v1453_v10  ;;  %v1393_v8 = vmul.f32 %v5597_v48, %v5597_v48  ;;  %v1641_v48 = vld [vmem:[%s4365_s21 + $0x80] sm:$0xff] }
 0x193   : > { %6951 = vst [vmem:[#allocation41_spill] sm:$0xff] %v5584_v0  ;;  %v3884_v35 = vpop.eup %3883  ;;  %v1520_v63 = vadd.f32 1e-05, %v1456_v62  ;;  %1987 = vperm.xlu1 %3854, %v5576_v45   ;;  %v1084_v13 = vpop.xlane.xlu0 %1083  ;;  %v1455_v30 = vsub.f32 %v1327_v38, %v1391_v36  ;;  %v1648_v36 = vld [vmem:[%s4365_s21 + $0xb8] sm:$0xff]  ;;  %v5672_v0 = vmul.f32 0.0051020407, %v5275_v27 }
 0x194   : > { %v5589_v40 = vmul.f32 %v3884_v35, %v1642_v34  ;;  %v3886_v33 = vpop.eup %3885  ;;  %v1329_v1 = vmul.f32 0.0051020407, %v1084_v13  ;;  %v1646_v35 = vld [vmem:[%s4365_s21 + $0xa8] sm:$0xff] }
 0x195   : > { %3895 = vrsqrt.f32 %v1520_v63  ;;  %v5608_v52 = vmul.f32 %v3886_v33, %v1637_v60  ;;  %v1519_v10 = vadd.f32 1e-05, %v1455_v30 }
 0x196   : > { %v5599_v62 = vpop.xlane.xlu1 %1095  ;;  %2032 = vperm.xlu0 %3853, %v5589_v40   ;;  %3897 = vrsqrt.f32 %v1515_v26  ;;  %v1639_v26 = vld [vmem:[%s4365_s21 + $0x70] sm:$0xff]  ;;  %v1457_v38 = vsub.f32 %v1329_v1, %v1393_v8  ;;  %v5636_v8 = vmul.f32 0.0051020407, %v5254_v25 }
 0x197   : > { %6953 = vst [vmem:[#allocation43_spill] sm:$0xff] %v5599_v62  ;;  %v3888_v34 = vpop.eup %3887  ;;  %1997 = vperm.xlu1 %3854, %v5591_v17   ;;  %v5604_v42 = vpop.xlane.xlu0 %1091  ;;  %3899 = vrsqrt.f32 %v1517_v55  ;;  %v5630_v62 = vmul.f32 0.0051020407, %v5247_v24  ;;  %v1643_v24 = vld [vmem:[%s4365_s21 + $0x90] sm:$0xff] }
 0x198   : > { %6954 = vst [vmem:[#allocation44_spill] sm:$0xff] %v5604_v42  ;;  %v5606_v22 = vmul.f32 %v3888_v34, %v1644_v23  ;;  %v3890_v63 = vpop.eup %3889  ;;  %3901 = vrsqrt.f32 %v1519_v10  ;;  %v1401_v10 = vmul.f32 %v5636_v8, %v5636_v8 }
 0x199   : > { %v5622_v33 = vmul.f32 %v3890_v63, %v1639_v26  ;;  %v1402_v26 = vmul.f32 %v5630_v62, %v5630_v62 }
 0x19a   : > { %6955 = vst [vmem:[#allocation45_spill] sm:$0xff] %v5606_v22  ;;  %v5613_v44 = vpop.xlane.xlu1 %1103  ;;  %2042 = vperm.xlu0 %3853, %v5606_v22  }
 0x19b   : > { %6956 = vst [vmem:[#allocation46_spill] sm:$0xff] %v5613_v44  ;;  %v3892_v42 = vpop.eup %3891  ;;  %2007 = vperm.xlu1 %3854, %v5608_v52   ;;  %v5618_v13 = vpop.xlane.xlu0 %1099 }
 0x19c   : > { %6957 = vst [vmem:[#allocation47_spill] sm:$0xff] %v5618_v13  ;;  %v5620_v23 = vmul.f32 %v3892_v42, %v1646_v35  ;;  %v3894_v60 = vpop.eup %3893  ;;  %v1521_v42 = vadd.f32 1e-05, %v1457_v38  ;;  %v1645_v13 = vld [vmem:[%s4365_s21 + $0xa0] sm:$0xff] }
 0x19d   : > { %v5640_v35 = vmul.f32 %v3894_v60, %v1641_v48  ;;  %v5650_v48 = vmul.f32 0.0051020407, %v5261_v2 }
 0x19e   : > { %6958 = vst [vmem:[#allocation48_spill] sm:$0xff] %v5620_v23  ;;  %v5625_v34 = vpop.xlane.xlu1 %1111  ;;  %2052 = vperm.xlu0 %3853, %v5620_v23   ;;  %3903 = vrsqrt.f32 %v1521_v42 }
 0x19f   : > { %6959 = vst [vmem:[#allocation49_spill] sm:$0xff] %v5625_v34  ;;  %v3896_v44 = vpop.eup %3895  ;;  %2017 = vperm.xlu1 %3854, %v5622_v33   ;;  %v5633_v55 = vpop.xlane.xlu0 %1107 }
 0x1a0   : > { %6960 = vst [vmem:[#allocation50_spill] sm:$0xff] %v5633_v55  ;;  %v5638_v30 = vmul.f32 %v3896_v44, %v1648_v36  ;;  %v3898_v1 = vpop.eup %3897  ;;  %v5655_v55 = vmul.f32 0.0051020407, %v5268_v46 }
 0x1a1   : > { %v5652_v36 = vmul.f32 %v3898_v1, %v1643_v24  ;;  %v3900_v60 = vpop.eup %3899 }
 0x1a2   : > { %6961 = vst [vmem:[#allocation51_spill] sm:$0xff] %v5638_v30  ;;  %v1120_v63 = vpop.xlane.xlu1 %1119  ;;  %2062 = vperm.xlu0 %3853, %v5638_v30   ;;  %v5661_v1 = vmul.f32 %v3900_v60, %v1645_v13  ;;  %v3902_v46 = vpop.eup %3901  ;;  %v1403_v24 = vmul.f32 %v5655_v55, %v5655_v55 }
 0x1a3   : > { %v1338_v34 = vmul.f32 0.0051020407, %v1120_v63  ;;  %2027 = vperm.xlu1 %3854, %v5640_v35   ;;  %v1116_v25 = vpop.xlane.xlu0 %1115  ;;  %6962 = vst [vmem:[#allocation52_spill] sm:$0xff] %v5652_v36 }
 0x1a4   : > { %v1337_v44 = vmul.f32 0.0051020407, %v1116_v25  ;;  %6963 = vst [vmem:[#allocation53_spill] sm:$0xff] %v5661_v1 }
 0x1a5   : > { %v1466_v38 = vsub.f32 %v1338_v34, %v1402_v26  ;;  %v1404_v34 = vmul.f32 %v5650_v48, %v5650_v48 }
 0x1a6   : > { %v1465_v30 = vsub.f32 %v1337_v44, %v1401_v10  ;;  %v1128_v63 = vpop.xlane.xlu1 %1127  ;;  %v1647_v10 = vld [vmem:[%s4365_s21 + $0xb0] sm:$0xff] }
 0x1a7   : > { %v1530_v31 = vadd.f32 1e-05, %v1466_v38  ;;  %v1340_v23 = vmul.f32 0.0051020407, %v1128_v63  ;;  %2037 = vperm.xlu1 %3854, %v5652_v36   ;;  %v1124_v42 = vpop.xlane.xlu0 %1123  ;;  %v5667_v38 = vmul.f32 %v3902_v46, %v1647_v10  ;;  %v1657_v46 = vld [vmem:[%s4365_s21 + $0x100] sm:$0xff] }
 0x1a8   : > { %v1529_v25 = vadd.f32 1e-05, %v1465_v30  ;;  %v1339_v2 = vmul.f32 0.0051020407, %v1124_v42  ;;  %v3904_v63 = vpop.eup %3903 }
 0x1a9   : > { %3905 = vrsqrt.f32 %v1530_v31  ;;  %v1468_v44 = vsub.f32 %v1340_v23, %v1404_v34  ;;  %6964 = vst [vmem:[#allocation54_spill] sm:$0xff] %v5667_v38  ;;  %v1649_v31 = vld [vmem:[%s4365_s21 + $0xc0] sm:$0xff]  ;;  %v1658_v23 = vld [vmem:[%s4365_s21 + $0x108] sm:$0xff]  ;;  %v5678_v34 = vmul.f32 0.0051020407, %v5282_v3  ;;  %v1818_v3 = vmul.f32 %v5463_v6, %v5414_v53 }
 0x1aa   : > { %3907 = vrsqrt.f32 %v1529_v25  ;;  %v1136_v26 = vpop.xlane.xlu1 %1135  ;;  %v1467_v30 = vsub.f32 %v1339_v2, %v1403_v24  ;;  %v5674_v36 = vmul.f32 %v3904_v63, %v1649_v31  ;;  %v1406_v63 = vmul.f32 %v5672_v0, %v5672_v0 }
 0x1ab   : > { %2047 = vperm.xlu1 %3854, %v5661_v1   ;;  %v1532_v13 = vadd.f32 1e-05, %v1468_v44  ;;  %v1132_v25 = vpop.xlane.xlu0 %1131  ;;  %v1342_v10 = vmul.f32 0.0051020407, %v1136_v26  ;;  %v1405_v26 = vmul.f32 %v5678_v34, %v5678_v34 }
 0x1ac   : > { %v1531_v60 = vadd.f32 1e-05, %v1467_v30  ;;  %6965 = vst [vmem:[#allocation55_spill] sm:$0xff] %v5674_v36  ;;  %v1341_v27 = vmul.f32 0.0051020407, %v1132_v25  ;;  %v1753_v25 = vld [vmem:[%s4370_s15] sm:$0xff] }
 0x1ad   : > { %3909 = vrsqrt.f32 %v1532_v13 }
 0x1ae   : > { %v1144_v42 = vpop.xlane.xlu1 %1143  ;;  %3911 = vrsqrt.f32 %v1531_v60  ;;  %v1754_v60 = vld [vmem:[%s4370_s15 + $0x8] sm:$0xff] }
 0x1af   : > { %2057 = vperm.xlu1 %3854, %v5667_v38   ;;  %v1817_v38 = vmul.f32 %v5465_v21, %v5419_v4  ;;  %v1786_v21 = vld [vmem:[%s4370_s15 + $0x108] sm:$0xff]  ;;  %v1785_v4 = vld [vmem:[%s4370_s15 + $0x100] sm:$0xff] }
 0x1b2   : > { %v5680_v2 = vpop.xlane.xlu1 %1151 }
 0x1b3   : > { %v3906_v24 = vpop.eup %3905  ;;  %2067 = vperm.xlu1 %3854, %v5674_v36   ;;  %v1881_v36 = vsub.f32 %v1753_v25, %v1817_v38 }
 0x1b4   : > { %v3908_v44 = vpop.eup %3907  ;;  %v1722_v30 = vmul.f32 %v3906_v24, %v1658_v23  ;;  %v1470_v23 = vsub.f32 %v1342_v10, %v1406_v63  ;;  %v1469_v24 = vsub.f32 %v1341_v27, %v1405_v26  ;;  %v5703_v10 = vmul.f32 0.0051020407, %v5289_v50 }
 0x1b5   : > { %v1721_v31 = vmul.f32 %v3908_v44, %v1657_v46  ;;  %v1140_v46 = vpop.xlane.xlu0 %1139  ;;  %v1882_v44 = vsub.f32 %v1754_v60, %v1818_v3  ;;  %v1344_v60 = vmul.f32 0.0051020407, %v1144_v42 }
 0x1b6   : > { %v5692_v13 = vpop.xlane.xlu1 %1159  ;;  %v1850_v53 = vmul.f32 %v1722_v30, %v5630_v62  ;;  %v1534_v1 = vadd.f32 1e-05, %v1470_v23  ;;  %v1533_v27 = vadd.f32 1e-05, %v1469_v24  ;;  %v5706_v62 = vmul.f32 0.0051020407, %v5296_v54 }
 0x1b7   : > { %2112 = vperm.xlu1 %3854, %v1722_v30   ;;  %2107 = vperm.xlu0 %3853, %v1721_v31   ;;  %v1849_v6 = vmul.f32 %v1721_v31, %v5636_v8  ;;  %v3910_v63 = vpop.eup %3909  ;;  %v1660_v30 = vld [vmem:[%s4365_s21 + $0x118] sm:$0xff]  ;;  %v1659_v31 = vld [vmem:[%s4365_s21 + $0x110] sm:$0xff]  ;;  %v1408_v50 = vmul.f32 %v5703_v10, %v5703_v10  ;;  %v1820_v24 = vmul.f32 %v5496_v20, %v5422_v59 }
 0x1b8   : > { %v1914_v3 = vsub.f32 %v1786_v21, %v1850_v53  ;;  %v3912_v26 = vpop.eup %3911  ;;  %3913 = vrsqrt.f32 %v1534_v1  ;;  %v1724_v23 = vmul.f32 %v3910_v63, %v1660_v30  ;;  %v1819_v1 = vmul.f32 %v5483_v18, %v5427_v9  ;;  %v1755_v53 = vld [vmem:[%s4370_s15 + $0x10] sm:$0xff]  ;;  %v1788_v9 = vld [vmem:[%s4370_s15 + $0x118] sm:$0xff] }
 0x1b9   : > { %v1913_v38 = vsub.f32 %v1785_v4, %v1849_v6  ;;  %v1148_v8 = vpop.xlane.xlu0 %1147  ;;  %3915 = vrsqrt.f32 %v1533_v27  ;;  %v1723_v54 = vmul.f32 %v3912_v26, %v1659_v31  ;;  %v1407_v42 = vmul.f32 %v5706_v62, %v5706_v62  ;;  %v1787_v18 = vld [vmem:[%s4370_s15 + $0x110] sm:$0xff] }
 0x1ba   : > { %v5700_v22 = vpop.xlane.xlu1 %1167  ;;  %v1472_v6 = vsub.f32 %v1344_v60, %v1408_v50  ;;  %v1883_v27 = vsub.f32 %v1755_v53, %v1819_v1  ;;  %v1852_v63 = vmul.f32 %v1724_v23, %v5650_v48  ;;  %v5734_v48 = vmul.f32 0.0051020407, %v5310_v19 }
 0x1bb   : > { %2400 = vperm.xlu1 %3854, %v1882_v44   ;;  %2395 = vperm.xlu0 %3853, %v1881_v36   ;;  %v1343_v36 = vmul.f32 0.0051020407, %v1140_v46  ;;  %v1756_v44 = vld [vmem:[%s4370_s15 + $0x18] sm:$0xff]  ;;  %v1851_v59 = vmul.f32 %v1723_v54, %v5655_v55  ;;  %v1821_v53 = vmul.f32 %v5508_v39, %v5436_v37  ;;  %v1790_v37 = vld [vmem:[%s4370_s15 + $0x128] sm:$0xff] }
 0x1bc   : > { %v1884_v4 = vsub.f32 %v1756_v44, %v1820_v24  ;;  %v1536_v20 = vadd.f32 1e-05, %v1472_v6  ;;  %v1916_v31 = vsub.f32 %v1788_v9, %v1852_v63  ;;  %v1345_v24 = vmul.f32 0.0051020407, %v1148_v8  ;;  %v1758_v6 = vld [vmem:[%s4370_s15 + $0x28] sm:$0xff] }
 0x1bd   : > { %v1471_v46 = vsub.f32 %v1343_v36, %v1407_v42  ;;  %v5722_v21 = vpop.xlane.xlu0 %1155  ;;  %v1915_v60 = vsub.f32 %v1787_v18, %v1851_v59  ;;  %v1662_v36 = vld [vmem:[%s4365_s21 + $0x128] sm:$0xff]  ;;  %v1822_v44 = vmul.f32 %v5525_v12, %v5439_v14  ;;  %v1789_v12 = vld [vmem:[%s4370_s15 + $0x120] sm:$0xff] }
 0x1be   : > { %v5712_v25 = vpop.xlane.xlu1 %1175  ;;  %3917 = vrsqrt.f32 %v1536_v20  ;;  %v5762_v20 = vmul.f32 0.0051020407, %v5317_v56 }
 0x1bf   : > { %2560 = vperm.xlu1 %3854, %v1914_v3   ;;  %2555 = vperm.xlu0 %3853, %v1913_v38   ;;  %v5731_v38 = vmul.f32 0.0051020407, %v5303_v32  ;;  %v1535_v26 = vadd.f32 1e-05, %v1471_v46  ;;  %v1757_v46 = vld [vmem:[%s4370_s15 + $0x20] sm:$0xff]  ;;  %v1886_v63 = vsub.f32 %v1758_v6, %v1822_v44 }
 0x1c0   : > { %v1885_v59 = vsub.f32 %v1757_v46, %v1821_v53  ;;  %v1412_v56 = vmul.f32 %v5762_v20, %v5762_v20  ;;  %v1760_v53 = vld [vmem:[%s4370_s15 + $0x38] sm:$0xff] }
 0x1c1   : > { %v5736_v55 = vpop.xlane.xlu0 %1163  ;;  %v1410_v32 = vmul.f32 %v5731_v38, %v5731_v38  ;;  %3919 = vrsqrt.f32 %v1535_v26 }
 0x1c2   : > { %v5728_v3 = vpop.xlane.xlu1 %1183  ;;  %v3914_v30 = vpop.eup %3913 }
 0x1c3   : > { %2122 = vperm.xlu1 %3854, %v1724_v23   ;;  %2117 = vperm.xlu0 %3853, %v1723_v54   ;;  %v3916_v50 = vpop.eup %3915  ;;  %v1661_v23 = vld [vmem:[%s4365_s21 + $0x120] sm:$0xff]  ;;  %v1346_v54 = vmul.f32 0.0051020407, %v5680_v2  ;;  %v1726_v19 = vmul.f32 %v3914_v30, %v1662_v36  ;;  %v1409_v2 = vmul.f32 %v5734_v48, %v5734_v48  ;;  %v1664_v36 = vld [vmem:[%s4365_s21 + $0x138] sm:$0xff] }
 0x1c4   : > { %v1725_v42 = vmul.f32 %v3916_v50, %v1661_v23  ;;  %v1663_v23 = vld [vmem:[%s4365_s21 + $0x130] sm:$0xff] }
 0x1c5   : > { %v1473_v8 = vsub.f32 %v1345_v24, %v1409_v2  ;;  %v1854_v9 = vmul.f32 %v1726_v19, %v5672_v0  ;;  %v5765_v0 = vmul.f32 0.0051020407, %v5324_v58  ;;  %v1759_v2 = vld [vmem:[%s4370_s15 + $0x30] sm:$0xff] }
 0x1c6   : > { %v5743_v1 = vpop.xlane.xlu1 %1191  ;;  %v1853_v14 = vmul.f32 %v1725_v42, %v5678_v34 }
 0x1c7   : > { %2410 = vperm.xlu1 %3854, %v1884_v4   ;;  %2405 = vperm.xlu0 %3853, %v1883_v27   ;;  %v1474_v4 = vsub.f32 %v1346_v54, %v1410_v32  ;;  %v5753_v27 = vpop.xlane.xlu0 %1171  ;;  %v1537_v26 = vadd.f32 1e-05, %v1473_v8  ;;  %v1348_v54 = vmul.f32 0.0051020407, %v5692_v13  ;;  %v1347_v32 = vmul.f32 0.0051020407, %v5722_v21 }
 0x1c8   : > { %v3918_v30 = vpop.eup %3917  ;;  %v1823_v13 = vmul.f32 %v5546_v11, %v5446_v16  ;;  %v1411_v44 = vmul.f32 %v5765_v0, %v5765_v0  ;;  %v1792_v16 = vld [vmem:[%s4370_s15 + $0x138] sm:$0xff]  ;;  %v1791_v11 = vld [vmem:[%s4370_s15 + $0x130] sm:$0xff] }
 0x1c9   : > { %v1538_v39 = vadd.f32 1e-05, %v1474_v4  ;;  %v1728_v58 = vmul.f32 %v3918_v30, %v1664_v36  ;;  %v1476_v6 = vsub.f32 %v1348_v54, %v1412_v56  ;;  %v1666_v30 = vld [vmem:[%s4365_s21 + $0x148] sm:$0xff]  ;;  %v1826_v54 = vmul.f32 %v5523_v49, %v5449_v61  ;;  %v1793_v49 = vld [vmem:[%s4370_s15 + $0x140] sm:$0xff] }
 0x1ca   : > { %v5759_v18 = vpop.xlane.xlu1 %1199  ;;  %v1475_v21 = vsub.f32 %v1347_v32, %v1411_v44  ;;  %v1887_v8 = vsub.f32 %v1759_v2, %v1823_v13  ;;  %v1762_v32 = vld [vmem:[%s4370_s15 + $0x48] sm:$0xff] }
 0x1cb   : > { %2570 = vperm.xlu1 %3854, %v1916_v31   ;;  %2565 = vperm.xlu0 %3853, %v1915_v60   ;;  %v1918_v31 = vsub.f32 %v1790_v37, %v1854_v9  ;;  %v1917_v60 = vsub.f32 %v1789_v12, %v1853_v14  ;;  %v3920_v50 = vpop.eup %3919  ;;  %v5767_v34 = vpop.xlane.xlu0 %1179  ;;  %3921 = vrsqrt.f32 %v1538_v39  ;;  %v5794_v9 = vmul.f32 0.0051020407, %v5331_v41 }
 0x1cc   : > { %3923 = vrsqrt.f32 %v1537_v26  ;;  %v1539_v14 = vadd.f32 1e-05, %v1475_v21  ;;  %v1890_v13 = vsub.f32 %v1762_v32, %v1826_v54  ;;  %v1795_v32 = vld [vmem:[%s4370_s15 + $0x150] sm:$0xff] }
 0x1cd   : > { %v1414_v41 = vmul.f32 %v5794_v9, %v5794_v9 }
 0x1ce   : > { %v5775_v24 = vpop.xlane.xlu1 %1207 }
 0x1cf   : > { %2132 = vperm.xlu1 %3854, %v1726_v19   ;;  %2127 = vperm.xlu0 %3853, %v1725_v42   ;;  %v1727_v19 = vmul.f32 %v3920_v50, %v1663_v23  ;;  %v1824_v42 = vmul.f32 %v5563_v7, %v5453_v15  ;;  %v5785_v46 = vpop.xlane.xlu0 %1187  ;;  %v1540_v7 = vadd.f32 1e-05, %v1476_v6  ;;  %v1349_v50 = vmul.f32 0.0051020407, %v5736_v55 }
 0x1d0   : > { %v5826_v6 = vmul.f32 0.0051020407, %v5345_v5 }
 0x1d1   : > { %v1888_v4 = vsub.f32 %v1760_v53, %v1824_v42  ;;  %v1855_v15 = vmul.f32 %v1727_v19, %v5706_v62  ;;  %3925 = vrsqrt.f32 %v1540_v7  ;;  %v1352_v7 = vmul.f32 0.0051020407, %v5712_v25 }
 0x1d2   : > { %3927 = vrsqrt.f32 %v1539_v14  ;;  %v1416_v5 = vmul.f32 %v5826_v6, %v5826_v6  ;;  %v1351_v14 = vmul.f32 0.0051020407, %v5753_v27 }
 0x1d3   : > { %2420 = vperm.xlu1 %3854, %v1886_v63   ;;  %2415 = vperm.xlu0 %3853, %v1885_v59   ;;  %v1856_v63 = vmul.f32 %v1728_v58, %v5703_v10  ;;  %v5791_v59 = vpop.xlane.xlu1 %1215  ;;  %v1919_v39 = vsub.f32 %v1791_v11, %v1855_v15  ;;  %v5797_v10 = vmul.f32 0.0051020407, %v5338_v29  ;;  %v5799_v62 = vpop.xlane.xlu0 %1195  ;;  %v1667_v11 = vld [vmem:[%s4365_s21 + $0x150] sm:$0xff] }
 0x1d5   : > { %v3922_v37 = vpop.eup %3921  ;;  %v1920_v12 = vsub.f32 %v1792_v16, %v1856_v63  ;;  %v1413_v56 = vmul.f32 %v5797_v10, %v5797_v10  ;;  %v1668_v16 = vld [vmem:[%s4365_s21 + $0x158] sm:$0xff] }
 0x1d6   : > { %v3924_v26 = vpop.eup %3923  ;;  %v1730_v29 = vmul.f32 %v3922_v37, %v1666_v30  ;;  %v6967_v30 = vld [vmem:[#allocation29_spill] sm:$0xff] }
 0x1d7   : > { %2580 = vperm.xlu1 %3854, %v1918_v31   ;;  %2575 = vperm.xlu0 %3853, %v1917_v60   ;;  %v1665_v31 = vld [vmem:[%s4365_s21 + $0x140] sm:$0xff]  ;;  %v1350_v60 = vmul.f32 0.0051020407, %v5700_v22  ;;  %v5807_v36 = vpop.xlane.xlu1 %1223  ;;  %v1825_v22 = vmul.f32 %v5576_v45, %v5470_v28  ;;  %v1477_v55 = vsub.f32 %v1349_v50, %v1413_v56  ;;  %v5817_v42 = vpop.xlane.xlu0 %1203  ;;  %v1794_v28 = vld [vmem:[%s4370_s15 + $0x148] sm:$0xff]  ;;  %v1827_v25 = vmul.f32 %v5591_v17, %v6967_v30  ;;  %v1796_v56 = vld [vmem:[%s4370_s15 + $0x158] sm:$0xff] }
 0x1d8   : > { %v1729_v23 = vmul.f32 %v3924_v26, %v1665_v31  ;;  %v1858_v53 = vmul.f32 %v1730_v29, %v5731_v38  ;;  %v5829_v38 = vmul.f32 0.0051020407, %v5352_v51  ;;  %v1480_v50 = vsub.f32 %v1352_v7, %v1416_v5  ;;  %v6970_v7 = vld [vmem:[#allocation28_spill] sm:$0xff] }
 0x1d9   : > { %v1541_v21 = vadd.f32 1e-05, %v1477_v55  ;;  %v1830_v5 = vmul.f32 %v5559_v47, %v6970_v7 }
 0x1da   : > { %v1857_v61 = vmul.f32 %v1729_v23, %v5734_v48  ;;  %v1415_v31 = vmul.f32 %v5829_v38, %v5829_v38 }
 0x1db   : > { %2142 = vperm.xlu1 %3854, %v1728_v58   ;;  %2137 = vperm.xlu0 %3853, %v1727_v19   ;;  %v1761_v58 = vld [vmem:[%s4370_s15 + $0x40] sm:$0xff]  ;;  %v1478_v19 = vsub.f32 %v1350_v60, %v1414_v41  ;;  %v5823_v2 = vpop.xlane.xlu1 %1231  ;;  %v5831_v48 = vpop.xlane.xlu0 %1211  ;;  %v1764_v60 = vld [vmem:[%s4370_s15 + $0x58] sm:$0xff]  ;;  %v1763_v41 = vld [vmem:[%s4370_s15 + $0x50] sm:$0xff] }
 0x1dc   : > { %v1889_v44 = vsub.f32 %v1761_v58, %v1825_v22  ;;  %v1921_v63 = vsub.f32 %v1793_v49, %v1857_v61  ;;  %v1479_v27 = vsub.f32 %v1351_v14, %v1415_v31  ;;  %v1891_v22 = vsub.f32 %v1763_v41, %v1827_v25  ;;  %v6969_v49 = vld [vmem:[#allocation12_spill] sm:$0xff]  ;;  %v6971_v14 = vld [vmem:[#allocation31_spill] sm:$0xff] }
 0x1dd   : > { %v1542_v45 = vadd.f32 1e-05, %v1478_v19  ;;  %v1544_v58 = vadd.f32 1e-05, %v1480_v50  ;;  %v6968_v19 = vld [vmem:[#allocation11_spill] sm:$0xff]  ;;  %v1798_v50 = vld [vmem:[%s4370_s15 + $0x168] sm:$0xff] }
 0x1de   : > { %v5858_v55 = vmul.f32 0.0051020407, %v6968_v19 }
 0x1df   : > { %2430 = vperm.xlu1 %3854, %v1888_v4   ;;  %2425 = vperm.xlu0 %3853, %v1887_v8   ;;  %v3926_v4 = vpop.eup %3925  ;;  %v1922_v8 = vsub.f32 %v1794_v28, %v1858_v53  ;;  %3929 = vrsqrt.f32 %v1542_v45  ;;  %v5839_v37 = vpop.xlane.xlu1 %1239  ;;  %v5861_v45 = vmul.f32 0.0051020407, %v6969_v49 }
 0x1e0   : > { %v3928_v15 = vpop.eup %3927  ;;  %3931 = vrsqrt.f32 %v1541_v21  ;;  %v1732_v51 = vmul.f32 %v3926_v4, %v1668_v16  ;;  %v1670_v21 = vld [vmem:[%s4365_s21 + $0x168] sm:$0xff]  ;;  %v1669_v4 = vld [vmem:[%s4365_s21 + $0x160] sm:$0xff] }
 0x1e1   : > { %3933 = vrsqrt.f32 %v1544_v58 }
 0x1e3   : > { %2590 = vperm.xlu1 %3854, %v1920_v12   ;;  %2585 = vperm.xlu0 %3853, %v1919_v39   ;;  %v1731_v12 = vmul.f32 %v3928_v15, %v1667_v11  ;;  %v6966_v39 = vld [vmem:[#allocation27_spill] sm:$0xff]  ;;  %v1353_v15 = vmul.f32 0.0051020407, %v5767_v34 }
 0x1e4   : > { %v1828_v26 = vmul.f32 %v5541_v57, %v6966_v39  ;;  %v1860_v57 = vmul.f32 %v1732_v51, %v5762_v20  ;;  %v1766_v39 = vld [vmem:[%s4370_s15 + $0x68] sm:$0xff] }
 0x1e5   : > { %v1859_v17 = vmul.f32 %v1731_v12, %v5765_v0  ;;  %v1894_v31 = vsub.f32 %v1766_v39, %v1830_v5 }
 0x1e6   : > { %v1892_v54 = vsub.f32 %v1764_v60, %v1828_v26  ;;  %v1924_v53 = vsub.f32 %v1796_v56, %v1860_v57  ;;  %v1765_v26 = vld [vmem:[%s4370_s15 + $0x60] sm:$0xff] }
 0x1e7   : > { %2152 = vperm.xlu1 %3854, %v1730_v29   ;;  %2147 = vperm.xlu0 %3853, %v1729_v23   ;;  %v5849_v29 = vpop.xlane.xlu0 %1219  ;;  %v1923_v61 = vsub.f32 %v1795_v32, %v1859_v17 }
 0x1eb   : > { %2440 = vperm.xlu1 %3854, %v1890_v13   ;;  %2435 = vperm.xlu0 %3853, %v1889_v44   ;;  %v1543_v13 = vadd.f32 1e-05, %v1479_v27  ;;  %v3930_v44 = vpop.eup %3929  ;;  %v5863_v20 = vpop.xlane.xlu0 %1227  ;;  %v1797_v27 = vld [vmem:[%s4370_s15 + $0x160] sm:$0xff] }
 0x1ec   : > { %v3932_v28 = vpop.eup %3931  ;;  %v1734_v16 = vmul.f32 %v3930_v44, %v1670_v21  ;;  %v1355_v21 = vmul.f32 0.0051020407, %v5785_v46 }
 0x1ed   : > { %3935 = vrsqrt.f32 %v1543_v13  ;;  %v1733_v11 = vmul.f32 %v3932_v28, %v1669_v4  ;;  %v3934_v32 = vpop.eup %3933  ;;  %v1356_v28 = vmul.f32 0.0051020407, %v5743_v1 }
 0x1ee   : > { %v1862_v60 = vmul.f32 %v1734_v16, %v5794_v9 }
 0x1ef   : > { %2600 = vperm.xlu1 %3854, %v1922_v8   ;;  %2595 = vperm.xlu0 %3853, %v1921_v63   ;;  %v1354_v8 = vmul.f32 0.0051020407, %v5728_v3  ;;  %v1418_v63 = vmul.f32 %v5858_v55, %v5858_v55  ;;  %v1417_v3 = vmul.f32 %v5861_v45, %v5861_v45  ;;  %v5883_v25 = vpop.xlane.xlu0 %1235 }
 0x1f0   : > { %v1926_v58 = vsub.f32 %v1798_v50, %v1862_v60 }
 0x1f1   : > { %v1482_v30 = vsub.f32 %v1354_v8, %v1418_v63  ;;  %v1481_v34 = vsub.f32 %v1353_v15, %v1417_v3  ;;  %v6975_v15 = vld [vmem:[#allocation30_spill] sm:$0xff] }
 0x1f3   : > { %2162 = vperm.xlu1 %3854, %v1732_v51   ;;  %2157 = vperm.xlu0 %3853, %v1731_v12   ;;  %v1829_v51 = vmul.f32 %v5608_v52, %v6971_v14  ;;  %v1861_v52 = vmul.f32 %v1733_v11, %v5797_v10  ;;  %v1545_v17 = vadd.f32 1e-05, %v1481_v34  ;;  %v6973_v10 = vld [vmem:[#allocation14_spill] sm:$0xff]  ;;  %v1768_v14 = vld [vmem:[%s4370_s15 + $0x78] sm:$0xff] }
 0x1f4   : > { %v5897_v13 = vmul.f32 0.0051020407, %v6973_v10  ;;  %v1358_v10 = vmul.f32 0.0051020407, %v5759_v18 }
 0x1f5   : > { %v5851_v23 = vpop.permute.xlu1 %1952  ;;  %v1893_v47 = vsub.f32 %v1765_v26, %v1829_v51  ;;  %v1925_v9 = vsub.f32 %v1797_v27, %v1861_v52  ;;  %v1767_v51 = vld [vmem:[%s4370_s15 + $0x70] sm:$0xff]  ;;  %v6978_v52 = vld [vmem:[#allocation15_spill] sm:$0xff] }
 0x1f6   : > { %v5894_v56 = vpop.permute.xlu0 %1947  ;;  %v1419_v1 = vmul.f32 %v5897_v13, %v5897_v13  ;;  %v5928_v50 = vmul.f32 0.0051020407, %v6978_v52 }
 0x1f7   : > { %2450 = vperm.xlu1 %3854, %v1892_v54   ;;  %2445 = vperm.xlu0 %3853, %v1891_v22   ;;  %v1546_v54 = vadd.f32 1e-05, %v1482_v30  ;;  %v6972_v22 = vld [vmem:[#allocation13_spill] sm:$0xff]  ;;  %v3936_v19 = vpop.eup %3935 }
 0x1f8   : > { %v5892_v57 = vmul.f32 0.0051020407, %v6972_v22  ;;  %v1483_v3 = vsub.f32 %v1355_v21, %v1419_v1  ;;  %v1769_v1 = vld [vmem:[%s4370_s15 + $0x80] sm:$0xff] }
 0x1f9   : > { %3937 = vrsqrt.f32 %v1546_v54 }
 0x1fa   : > { %v5865_v0 = vpop.permute.xlu1 %1957  ;;  %v1420_v49 = vmul.f32 %v5892_v57, %v5892_v57  ;;  %3939 = vrsqrt.f32 %v1545_v17  ;;  %v1547_v27 = vadd.f32 1e-05, %v1483_v3 }
 0x1fb   : > { %2610 = vperm.xlu1 %3854, %v1924_v53   ;;  %2605 = vperm.xlu0 %3853, %v1923_v61   ;;  %v1672_v53 = vld [vmem:[%s4365_s21 + $0x178] sm:$0xff]  ;;  %v1671_v61 = vld [vmem:[%s4365_s21 + $0x170] sm:$0xff] }
 0x1fc   : > { %v1736_v8 = vmul.f32 %v3934_v32, %v1672_v53  ;;  %v1735_v63 = vmul.f32 %v3936_v19, %v1671_v61  ;;  %v1484_v46 = vsub.f32 %v1356_v28, %v1420_v49  ;;  %v1673_v19 = vld [vmem:[%s4365_s21 + $0x180] sm:$0xff]  ;;  %v1422_v53 = vmul.f32 %v5928_v50, %v5928_v50 }
 0x1fd   : > { %v1357_v61 = vmul.f32 0.0051020407, %v5799_v62 }
 0x1fe   : > { %v5879_v12 = vpop.permute.xlu1 %1962  ;;  %v1863_v30 = vmul.f32 %v1735_v63, %v5829_v38  ;;  %v1548_v60 = vadd.f32 1e-05, %v1484_v46  ;;  %v6979_v38 = vld [vmem:[#allocation16_spill] sm:$0xff]  ;;  %v1486_v62 = vsub.f32 %v1358_v10, %v1422_v53  ;;  %v6991_v53 = vld [vmem:[#allocation34_spill] sm:$0xff] }
 0x1ff   : > { %2172 = vperm.xlu1 %3854, %v1734_v16   ;;  %2167 = vperm.xlu0 %3853, %v1733_v11   ;;  %v1832_v16 = vmul.f32 %v5574_v43, %v6975_v15  ;;  %v6976_v11 = vld [vmem:[#allocation33_spill] sm:$0xff]  ;;  %v1864_v43 = vmul.f32 %v1736_v8, %v5826_v6  ;;  %v5931_v32 = vmul.f32 0.0051020407, %v6979_v38  ;;  %v6983_v15 = vld [vmem:[#allocation35_spill] sm:$0xff] }
 0x200   : > { %v1831_v7 = vmul.f32 %v5622_v33, %v6976_v11  ;;  %3941 = vrsqrt.f32 %v1548_v60 }
 0x201   : > { %v1896_v39 = vsub.f32 %v1768_v14, %v1832_v16  ;;  %3943 = vrsqrt.f32 %v1547_v27  ;;  %v1833_v16 = vmul.f32 %v5640_v35, %v6983_v15  ;;  %v1421_v18 = vmul.f32 %v5931_v32, %v5931_v32  ;;  %v1772_v15 = vld [vmem:[%s4370_s15 + $0x98] sm:$0xff] }
 0x202   : > { %v5887_v41 = vpop.permute.xlu1 %1967  ;;  %v1895_v26 = vsub.f32 %v1767_v51, %v1831_v7  ;;  %v1770_v7 = vld [vmem:[%s4370_s15 + $0x88] sm:$0xff] }
 0x203   : > { %2460 = vperm.xlu1 %3854, %v1894_v31   ;;  %2455 = vperm.xlu0 %3853, %v1893_v47   ;;  %v1800_v31 = vld [vmem:[%s4370_s15 + $0x178] sm:$0xff]  ;;  %v1799_v47 = vld [vmem:[%s4370_s15 + $0x170] sm:$0xff]  ;;  %v3938_v54 = vpop.eup %3937  ;;  %v1485_v14 = vsub.f32 %v1357_v61, %v1421_v18  ;;  %v1897_v46 = vsub.f32 %v1769_v1, %v1833_v16  ;;  %v6992_v61 = vld [vmem:[#allocation45_spill] sm:$0xff] }
 0x204   : > { %v1928_v22 = vsub.f32 %v1800_v31, %v1864_v43  ;;  %v1927_v6 = vsub.f32 %v1799_v47, %v1863_v30  ;;  %v3940_v17 = vpop.eup %3939  ;;  %v1801_v43 = vld [vmem:[%s4370_s15 + $0x180] sm:$0xff]  ;;  %v1550_v30 = vadd.f32 1e-05, %v1486_v62  ;;  %v6987_v31 = vld [vmem:[#allocation17_spill] sm:$0xff]  ;;  %v1771_v1 = vld [vmem:[%s4370_s15 + $0x90] sm:$0xff] }
 0x205   : > { %v5907_v4 = vpop.permute.xlu0 %1992  ;;  %v1737_v21 = vmul.f32 %v3940_v17, %v1673_v19  ;;  %v5962_v47 = vmul.f32 0.0051020407, %v6987_v31  ;;  %v1549_v60 = vadd.f32 1e-05, %v1485_v14  ;;  %v6989_v17 = vld [vmem:[#allocation18_spill] sm:$0xff]  ;;  %v6993_v16 = vld [vmem:[#allocation37_spill] sm:$0xff] }
 0x206   : > { %v5899_v44 = vpop.permute.xlu1 %1972  ;;  %6974 = vst [vmem:[#allocation56_spill] sm:$0xff] %v5907_v4  ;;  %v5969_v38 = vmul.f32 0.0051020407, %v6989_v17  ;;  %3945 = vrsqrt.f32 %v1550_v30  ;;  %v6994_v18 = vld [vmem:[#allocation52_spill] sm:$0xff]  ;;  %v6997_v30 = vld [vmem:[#allocation5_spill] sm:$0xff]  ;;  %v3988_v4 = vld [vmem:[%s4360_s12 + $0x218] sm:$0xff] }
 0x207   : > { %2620 = vperm.xlu1 %3854, %v1926_v58   ;;  %2615 = vperm.xlu0 %3853, %v1925_v9   ;;  %v1674_v9 = vld [vmem:[%s4365_s21 + $0x188] sm:$0xff]  ;;  %v1865_v3 = vmul.f32 %v1737_v21, %v5861_v45  ;;  %v1424_v19 = vmul.f32 %v5962_v47, %v5962_v47  ;;  %3947 = vrsqrt.f32 %v1549_v60  ;;  %v5993_v31 = vmul.f32 0.0051020407, %v6997_v30 }
 0x208   : > { %v1738_v49 = vmul.f32 %v3938_v54, %v1674_v9  ;;  %v1360_v9 = vmul.f32 0.0051020407, %v5775_v24  ;;  %v1423_v62 = vmul.f32 %v5969_v38, %v5969_v38 }
 0x209   : > { %v5921_v33 = vpop.permute.xlu0 %2002 }
 0x20a   : > { %v5915_v5 = vpop.permute.xlu1 %1977  ;;  %6977 = vst [vmem:[#allocation57_spill] sm:$0xff] %v5921_v33  ;;  %v3942_v52 = vpop.eup %3941  ;;  %v1488_v14 = vsub.f32 %v1360_v9, %v1424_v19 }
 0x20b   : > { %2182 = vperm.xlu1 %3854, %v1736_v8   ;;  %2177 = vperm.xlu0 %3853, %v1735_v63   ;;  %v6982_v8 = vld [vmem:[#allocation32_spill] sm:$0xff]  ;;  %v3944_v54 = vpop.eup %3943 }
 0x20c   : > { %v1834_v63 = vmul.f32 %v5589_v40, %v6982_v8  ;;  %v1866_v40 = vmul.f32 %v1738_v49, %v5858_v55  ;;  %v1929_v55 = vsub.f32 %v1801_v43, %v1865_v3 }
 0x20d   : > { %v5941_v28 = vpop.permute.xlu0 %2012 }
 0x20e   : > { %v5923_v34 = vpop.permute.xlu1 %1982  ;;  %6981 = vst [vmem:[#allocation59_spill] sm:$0xff] %v5941_v28  ;;  %v1898_v51 = vsub.f32 %v1770_v7, %v1834_v63  ;;  %v1835_v7 = vmul.f32 %v6994_v18, %v6993_v16  ;;  %v1678_v16 = vld [vmem:[%s4365_s21 + $0x1a8] sm:$0xff]  ;;  %v1677_v18 = vld [vmem:[%s4365_s21 + $0x1a0] sm:$0xff] }
 0x20f   : > { %2470 = vperm.xlu1 %3854, %v1896_v39   ;;  %2465 = vperm.xlu0 %3853, %v1895_v26   ;;  %v1802_v26 = vld [vmem:[%s4370_s15 + $0x188] sm:$0xff] }
 0x210   : > { %v1930_v27 = vsub.f32 %v1802_v26, %v1866_v40  ;;  %v6996_v26 = vld [vmem:[#allocation4_spill] sm:$0xff] }
 0x211   : > { %v5955_v35 = vpop.permute.xlu0 %2022  ;;  %v5990_v43 = vmul.f32 0.0051020407, %v6996_v26  ;;  %v1361_v26 = vmul.f32 0.0051020407, %v5831_v48 }
 0x212   : > { %v5933_v58 = vpop.permute.xlu1 %1987  ;;  %6985 = vst [vmem:[#allocation61_spill] sm:$0xff] %v5955_v35  ;;  %v7031_v35 = vld [vmem:[#allocation38_spill] sm:$0xff] }
 0x213   : > { %6980 = vst [vmem:[#allocation58_spill] sm:$0xff] %v5933_v58  ;;  %2630 = vperm.xlu1 %3854, %v1928_v22   ;;  %2625 = vperm.xlu0 %3853, %v1927_v6   ;;  %v1676_v22 = vld [vmem:[%s4365_s21 + $0x198] sm:$0xff]  ;;  %v1675_v6 = vld [vmem:[%s4365_s21 + $0x190] sm:$0xff] }
 0x214   : > { %v1740_v8 = vmul.f32 %v3942_v52, %v1676_v22  ;;  %v1739_v63 = vmul.f32 %v3944_v54, %v1675_v6  ;;  %v7000_v54 = vld [vmem:[#allocation6_spill] sm:$0xff] }
 0x215   : > { %v5974_v10 = vpop.permute.xlu0 %2032  ;;  %v6002_v22 = vmul.f32 0.0051020407, %v7000_v54 }
 0x216   : > { %v5949_v11 = vpop.permute.xlu1 %1997  ;;  %6990 = vst [vmem:[#allocation64_spill] sm:$0xff] %v5974_v10  ;;  %v1868_v40 = vmul.f32 %v1740_v8, %v5892_v57  ;;  %v1867_v3 = vmul.f32 %v1739_v63, %v5897_v13  ;;  %v1552_v57 = vadd.f32 1e-05, %v1488_v14  ;;  %v3946_v13 = vpop.eup %3945  ;;  %v7006_v14 = vld [vmem:[#allocation41_spill] sm:$0xff] }
 0x217   : > { %6984 = vst [vmem:[#allocation60_spill] sm:$0xff] %v5949_v11  ;;  %2192 = vperm.xlu1 %3854, %v1738_v49   ;;  %2187 = vperm.xlu0 %3853, %v1737_v21   ;;  %v1836_v49 = vmul.f32 %v6992_v61, %v6991_v53  ;;  %v1359_v21 = vmul.f32 0.0051020407, %v5817_v42  ;;  %v1899_v42 = vsub.f32 %v1771_v1, %v1835_v7  ;;  %v3948_v19 = vpop.eup %3947  ;;  %v7005_v1 = vld [vmem:[#allocation19_spill] sm:$0xff] }
 0x218   : > { %v1394_v53 = vmul.f32 %v5990_v43, %v5990_v43  ;;  %v6008_v61 = vmul.f32 %v5993_v31, %v5993_v31  ;;  %v6022_v7 = vmul.f32 %v6002_v22, %v6002_v22  ;;  %3949 = vrsqrt.f32 %v1552_v57 }
 0x219   : > { %v5995_v60 = vpop.permute.xlu0 %2042  ;;  %v1741_v57 = vmul.f32 %v3948_v19, %v1677_v18  ;;  %v7018_v18 = vld [vmem:[#allocation43_spill] sm:$0xff] }
 0x21a   : > { %v5957_v39 = vpop.permute.xlu1 %2007  ;;  %6998 = vst [vmem:[#allocation66_spill] sm:$0xff] %v5995_v60 }
 0x21b   : > { %6986 = vst [vmem:[#allocation62_spill] sm:$0xff] %v5957_v39  ;;  %2480 = vperm.xlu1 %3854, %v1898_v51   ;;  %2475 = vperm.xlu0 %3853, %v1897_v46   ;;  %v1900_v51 = vsub.f32 %v1772_v15, %v1836_v49  ;;  %v1487_v46 = vsub.f32 %v1359_v21, %v1423_v62  ;;  %v7001_v49 = vld [vmem:[#allocation7_spill] sm:$0xff]  ;;  %v6025_v62 = vmul.f32 0.0051020407, %v7005_v1 }
 0x21c   : > { %v6011_v21 = vmul.f32 0.0051020407, %v7001_v49  ;;  %v1742_v49 = vmul.f32 %v3946_v13, %v1678_v16  ;;  %v1773_v13 = vld [vmem:[%s4370_s15 + $0xa0] sm:$0xff]  ;;  %v7032_v39 = vld [vmem:[#allocation51_spill] sm:$0xff] }
 0x21d   : > { %v1551_v6 = vadd.f32 1e-05, %v1487_v46  ;;  %v7007_v46 = vld [vmem:[#allocation8_spill] sm:$0xff]  ;;  %v6035_v30 = vpop.permute.xlu0 %2052  ;;  %v1426_v19 = vmul.f32 %v6025_v62, %v6025_v62  ;;  %v1840_v28 = vmul.f32 %v7032_v39, %v7031_v35 }
 0x21e   : > { %v5964_v45 = vpop.permute.xlu1 %2017  ;;  %7002 = vst [vmem:[#allocation68_spill] sm:$0xff] %v6011_v21  ;;  %7010 = vst [vmem:[#allocation71_spill] sm:$0xff] %v6035_v30  ;;  %v6043_v1 = vmul.f32 %v6011_v21, %v6011_v21  ;;  %v7021_v30 = vld [vmem:[#allocation22_spill] sm:$0xff]  ;;  %v7033_v39 = vld [vmem:[#allocation40_spill] sm:$0xff] }
 0x21f   : > { %6988 = vst [vmem:[#allocation63_spill] sm:$0xff] %v5964_v45  ;;  %2640 = vperm.xlu1 %3854, %v1930_v27   ;;  %2635 = vperm.xlu0 %3853, %v1929_v55   ;;  %v1804_v27 = vld [vmem:[%s4370_s15 + $0x198] sm:$0xff]  ;;  %v1803_v55 = vld [vmem:[%s4370_s15 + $0x190] sm:$0xff]  ;;  %3951 = vrsqrt.f32 %v1551_v6  ;;  %v1774_v6 = vld [vmem:[%s4370_s15 + $0xa8] sm:$0xff] }
 0x220   : > { %v1932_v17 = vsub.f32 %v1804_v27, %v1868_v40  ;;  %v1931_v9 = vsub.f32 %v1803_v55, %v1867_v3  ;;  %v7008_v40 = vld [vmem:[#allocation9_spill] sm:$0xff]  ;;  %v7011_v27 = vld [vmem:[#allocation36_spill] sm:$0xff] }
 0x221   : > { %v6032_v3 = vmul.f32 0.0051020407, %v7008_v40  ;;  %v7012_v55 = vld [vmem:[#allocation48_spill] sm:$0xff]  ;;  %v1362_v40 = vmul.f32 0.0051020407, %v5791_v59 }
 0x222   : > { %v5982_v24 = vpop.permute.xlu1 %2027  ;;  %v1838_v54 = vmul.f32 %v7012_v55, %v7011_v27  ;;  %v1332_v27 = vmul.f32 0.0051020407, %v7018_v18  ;;  %v7019_v55 = vld [vmem:[#allocation44_spill] sm:$0xff]  ;;  %v6063_v59 = vmul.f32 0.0051020407, %v7021_v30  ;;  %v1870_v18 = vmul.f32 %v1742_v49, %v5928_v50 }
 0x223   : > { %6995 = vst [vmem:[#allocation65_spill] sm:$0xff] %v5982_v24  ;;  %2202 = vperm.xlu1 %3854, %v1740_v8   ;;  %2197 = vperm.xlu0 %3853, %v1739_v63   ;;  %v7003_v8 = vld [vmem:[#allocation20_spill] sm:$0xff]  ;;  %7009 = vst [vmem:[#allocation70_spill] sm:$0xff] %v6032_v3  ;;  %v6078_v30 = vmul.f32 %v6032_v3, %v6032_v3 }
 0x224   : > { %v6014_v63 = vmul.f32 0.0051020407, %v7003_v8  ;;  %v7014_v8 = vld [vmem:[#allocation53_spill] sm:$0xff]  ;;  %v7024_v24 = vld [vmem:[#allocation24_spill] sm:$0xff]  ;;  %v1460_v50 = vsub.f32 %v1332_v27, %v6008_v61 }
 0x225   : > { %v6069_v10 = vmul.f32 0.0051020407, %v7024_v24  ;;  %v1806_v24 = vld [vmem:[%s4370_s15 + $0x1a8] sm:$0xff] }
 0x226   : > { %v5997_v52 = vpop.permute.xlu1 %2037  ;;  %v1425_v48 = vmul.f32 %v6014_v63, %v6014_v63 }
 0x227   : > { %6999 = vst [vmem:[#allocation67_spill] sm:$0xff] %v5997_v52  ;;  %2490 = vperm.xlu1 %3854, %v1900_v51   ;;  %2485 = vperm.xlu0 %3853, %v1899_v42   ;;  %v1330_v51 = vmul.f32 0.0051020407, %v7006_v14  ;;  %v6029_v42 = vmul.f32 0.0051020407, %v7007_v46  ;;  %v7015_v14 = vld [vmem:[#allocation10_spill] sm:$0xff] }
 0x228   : > { %v6046_v46 = vmul.f32 0.0051020407, %v7015_v14  ;;  %v1489_v60 = vsub.f32 %v1361_v26, %v1425_v48  ;;  %7025 = vst [vmem:[#allocation75_spill] sm:$0xff] %v6069_v10 }
 0x229   : > { %v1458_v16 = vsub.f32 %v1330_v51, %v1394_v53  ;;  %v1902_v53 = vsub.f32 %v1774_v6, %v1838_v54  ;;  %v1869_v54 = vmul.f32 %v1741_v57, %v5931_v32  ;;  %v7029_v32 = vld [vmem:[#allocation47_spill] sm:$0xff] }
 0x22a   : > { %v6016_v15 = vpop.permute.xlu1 %2047  ;;  %7016 = vst [vmem:[#allocation72_spill] sm:$0xff] %v6046_v46  ;;  %v1553_v61 = vadd.f32 1e-05, %v1489_v60 }
 0x22b   : > { %7004 = vst [vmem:[#allocation69_spill] sm:$0xff] %v6016_v15  ;;  %2650 = vperm.xlu1 %3854, %v1932_v17   ;;  %2645 = vperm.xlu0 %3853, %v1931_v9   ;;  %v7013_v17 = vld [vmem:[#allocation39_spill] sm:$0xff]  ;;  %v1522_v48 = vadd.f32 1e-05, %v1458_v16  ;;  %v3950_v16 = vpop.eup %3949 }
 0x22c   : > { %v1837_v9 = vmul.f32 %v7014_v8, %v7013_v17  ;;  %v1331_v17 = vmul.f32 0.0051020407, %v7019_v55  ;;  %v7020_v8 = vld [vmem:[#allocation21_spill] sm:$0xff]  ;;  %v6074_v55 = vmul.f32 %v6029_v42, %v6029_v42  ;;  %v3952_v3 = vpop.eup %3951 }
 0x22d   : > { %v6060_v14 = vmul.f32 0.0051020407, %v7020_v8  ;;  %v1490_v8 = vsub.f32 %v1362_v40, %v1426_v19  ;;  %v6094_v40 = vmul.f32 %v6046_v46, %v6046_v46  ;;  %3953 = vrsqrt.f32 %v1522_v48  ;;  %v7034_v48 = vld [vmem:[#allocation54_spill] sm:$0xff] }
 0x22e   : > { %v6051_v15 = vpop.permute.xlu1 %2057  ;;  %v1901_v51 = vsub.f32 %v1773_v13, %v1837_v9  ;;  %v7028_v9 = vld [vmem:[#allocation46_spill] sm:$0xff]  ;;  %v1805_v13 = vld [vmem:[%s4370_s15 + $0x1a0] sm:$0xff]  ;;  %v6121_v46 = vadd.f32 1e-05, %v1460_v50  ;;  %3955 = vrsqrt.f32 %v1553_v61 }
 0x22f   : > { %7017 = vst [vmem:[#allocation73_spill] sm:$0xff] %v6051_v15  ;;  %2212 = vperm.xlu1 %3854, %v1742_v49   ;;  %2207 = vperm.xlu0 %3853, %v1741_v57   ;;  %v7022_v15 = vld [vmem:[#allocation23_spill] sm:$0xff]  ;;  %v1459_v49 = vsub.f32 %v1331_v17, %v6022_v7  ;;  %v6089_v6 = vmul.f32 0.0051020407, %v7028_v9  ;;  %v6098_v19 = vmul.f32 %v6060_v14, %v6060_v14  ;;  %v6101_v57 = vmul.f32 0.0051020407, %v7029_v32 }
 0x230   : > { %v6066_v52 = vmul.f32 0.0051020407, %v7022_v15  ;;  %v6080_v15 = vpop.permute.xlu0 %2062  ;;  %v6105_v7 = vmul.f32 %v6063_v59, %v6063_v59  ;;  %v6113_v17 = vmul.f32 %v6069_v10, %v6069_v10  ;;  %v7030_v9 = vld [vmem:[#allocation25_spill] sm:$0xff]  ;;  %v1554_v60 = vadd.f32 1e-05, %v1490_v8  ;;  %v1679_v8 = vld [vmem:[%s4365_s21 + $0x1b0] sm:$0xff] }
 0x231   : > { %7026 = vst [vmem:[#allocation76_spill] sm:$0xff] %v6080_v15  ;;  %v6117_v32 = vmul.f32 0.0051020407, %v7030_v9  ;;  %v1933_v45 = vsub.f32 %v1805_v13, %v1869_v54  ;;  %v6123_v11 = vadd.f32 1e-05, %v1459_v49  ;;  %v1839_v13 = vmul.f32 %v7034_v48, %v7033_v39  ;;  %v3983_v50 = vld [vmem:[%s4360_s12 + $0x10] sm:$0xff] }
 0x232   : > { %7023 = vst [vmem:[#allocation74_spill] sm:$0xff] %v6066_v52  ;;  %v6082_v26 = vpop.permute.xlu1 %2067  ;;  %v6109_v27 = vmul.f32 %v6066_v52, %v6066_v52  ;;  %v2267_v49 = vmul.f32 %v3983_v50, %v5851_v23  ;;  %v3984_v9 = vld [vmem:[%s4360_s12 + $0x18] sm:$0xff]  ;;  %v3986_v52 = vld [vmem:[%s4360_s12 + $0x8] sm:$0xff]  ;;  %3957 = vrsqrt.f32 %v1554_v60  ;;  %v1743_v39 = vmul.f32 %v3952_v3, %v1679_v8  ;;  %v3987_v10 = vld [vmem:[%s4360_s12 + $0x210] sm:$0xff] }
 0x233   : > { %7027 = vst [vmem:[#allocation77_spill] sm:$0xff] %v6082_v26  ;;  %2500 = vperm.xlu1 %3854, %v1902_v53   ;;  %2495 = vperm.xlu0 %3853, %v1901_v51   ;;  %v1934_v53 = vsub.f32 %v1806_v24, %v1870_v18  ;;  %v1680_v51 = vld [vmem:[%s4365_s21 + $0x1b8] sm:$0xff]  ;;  %v2268_v33 = vmul.f32 %v3984_v9, %v5851_v23  ;;  %v3985_v18 = vld [vmem:[%s4360_s12] sm:$0xff]  ;;  %v1775_v23 = vld [vmem:[%s4370_s15 + $0xb0] sm:$0xff]  ;;  %3959 = vrsqrt.f32 %v6121_v46 }
 0x234   : > { %v1776_v24 = vld [vmem:[%s4370_s15 + $0xb8] sm:$0xff]  ;;  %v1744_v35 = vmul.f32 %v3950_v16, %v1680_v51  ;;  %v2266_v61 = vmul.f32 %v3986_v52, %v5894_v56  ;;  %v3989_v52 = vld [vmem:[%s4360_s12 + $0x200] sm:$0xff]  ;;  %3961 = vrsqrt.f32 %v6123_v11  ;;  %v7037_v46 = vsub.f32 %v6101_v57, %v6074_v55  ;;  %v3993_v57 = vld [vmem:[%s4360_s12 + $0x30] sm:$0xff] }
 0x235   : > { %v1904_v48 = vsub.f32 %v1776_v24, %v1840_v28  ;;  %v1364_v24 = vmul.f32 0.0051020407, %v5807_v36 }
 0x236   : > { %v2113_v26 = vpop.permute.xlu1 %2112  ;;  %v2108_v15 = vpop.permute.xlu0 %2107 }
 0x237   : > { %2660 = vperm.xlu1 %3854, %v1934_v53   ;;  %2655 = vperm.xlu0 %3853, %v1933_v45   ;;  %v2265_v53 = vmul.f32 %v3985_v18, %v5894_v56  ;;  %v6142_v45 = vmul.f32 0.0051020407, %v5849_v29  ;;  %v2331_v58 = vmul.f32 %v3987_v10, %v2113_v26  ;;  %v2332_v56 = vmul.f32 %v3988_v4, %v2113_v26 }
 0x238   : > { %v2329_v60 = vmul.f32 %v3989_v52, %v2108_v15  ;;  %v1872_v29 = vmul.f32 %v1744_v35, %v5962_v47  ;;  %v1903_v10 = vsub.f32 %v1775_v23, %v1839_v13  ;;  %v1871_v4 = vmul.f32 %v1743_v39, %v5969_v38  ;;  %v3954_v13 = vpop.eup %3953 }
 0x239   : > { %v1491_v36 = vsub.f32 %v6142_v45, %v6105_v7 }
 0x23a   : > { %v2401_v16 = vpop.permute.xlu1 %2400  ;;  %v2396_v51 = vpop.permute.xlu0 %2395 }
 0x23b   : > { %v2715_v50 = vadd.f32 %v2401_v16, %v2267_v49  ;;  %v2713_v54 = vadd.f32 %v2396_v51, %v2265_v53  ;;  %2222 = vperm.xlu1 %3854, %v1744_v35   ;;  %v2714_v9 = vadd.f32 %v2396_v51, %v2266_v61  ;;  %v2716_v18 = vadd.f32 %v2401_v16, %v2268_v33  ;;  %v3990_v49 = vld [vmem:[%s4360_s12 + $0x208] sm:$0xff]  ;;  %v1808_v16 = vld [vmem:[%s4370_s15 + $0x1b8] sm:$0xff]  ;;  %v1807_v35 = vld [vmem:[%s4370_s15 + $0x1b0] sm:$0xff] }
 0x23c   : > { %2217 = vperm.xlu0 %3853, %v1743_v39   ;;  %v2330_v53 = vmul.f32 %v3990_v49, %v2108_v15  ;;  %v1935_v45 = vsub.f32 %v1807_v35, %v1871_v4  ;;  %v3994_v4 = vld [vmem:[%s4360_s12 + $0x38] sm:$0xff] }
 0x23d   : > { %v2842_v21 = vmax.f32 %v2714_v9, 0.0  ;;  %v2844_v3 = vmax.f32 %v2716_v18, 0.0  ;;  %v2841_v28 = vmax.f32 %v2713_v54, 0.0  ;;  %v2843_v8 = vmax.f32 %v2715_v50, 0.0  ;;  %v7035_v9 = vld [vmem:[#allocation26_spill] sm:$0xff]  ;;  %v1650_v18 = vld [vmem:[%s4365_s21 + $0xc8] sm:$0xff] }
 0x23e   : > { %v2561_v33 = vpop.permute.xlu1 %2560  ;;  %v2556_v61 = vpop.permute.xlu0 %2555  ;;  %v6155_v54 = vmul.f32 0.0051020407, %v7035_v9 }
 0x23f   : > { %v2779_v26 = vadd.f32 %v2561_v33, %v2331_v58  ;;  %v2780_v51 = vadd.f32 %v2561_v33, %v2332_v56  ;;  %v2777_v52 = vadd.f32 %v2556_v61, %v2329_v60  ;;  %2510 = vperm.xlu1 %3854, %v1904_v48   ;;  %v3651_v47 = vpack.c.bf16 %v2844_v3, %v2842_v21  ;;  %v3956_v48 = vpop.eup %3955  ;;  %v1681_v3 = vld [vmem:[%s4365_s21 + $0x1c0] sm:$0xff] }
 0x240   : > { %2505 = vperm.xlu0 %3853, %v1903_v10   ;;  %v3653_v15 = vpack.c.bf16 %v2843_v8, %v2841_v28  ;;  %v2778_v50 = vadd.f32 %v2556_v61, %v2330_v53  ;;  %v1936_v58 = vsub.f32 %v1808_v16, %v1872_v29  ;;  %v1492_v21 = vsub.f32 %v1364_v24, %v6098_v19  ;;  %v7038_v8 = vld [vmem:[#allocation49_spill] sm:$0xff]  ;;  %v3958_v49 = vpop.eup %3957 }
 0x241   : > { %v2907_v23 = vmax.f32 %v2779_v26, 0.0  ;;  %3652 = vmatprep.subr.bf16.mxu1 %v3651_v47  ;;  %v2908_v38 = vmax.f32 %v2780_v51, 0.0  ;;  %v2905_v39 = vmax.f32 %v2777_v52, 0.0  ;;  %v7036_v29 = vsub.f32 %v6089_v6, %v6043_v1  ;;  %v3991_v1 = vld [vmem:[%s4360_s12 + $0x20] sm:$0xff]  ;;  %v3992_v10 = vld [vmem:[%s4360_s12 + $0x28] sm:$0xff]  ;;  %v3995_v52 = vld [vmem:[%s4360_s12 + $0x230] sm:$0xff] }
 0x242   : > { %v2123_v56 = vpop.permute.xlu1 %2122  ;;  %3654 = vmatpush1.bf16.msra.mxu1 %v3653_v15  ;;  %v2118_v7 = vpop.permute.xlu0 %2117  ;;  %v2906_v60 = vmax.f32 %v2778_v50, 0.0  ;;  %v6172_v19 = vadd.f32 1e-05, %v7037_v46  ;;  %v6175_v24 = vmul.f32 0.0051020407, %v7038_v8  ;;  %v1714_v61 = vmul.f32 %v3954_v13, %v1650_v18  ;;  %v7039_v15 = vld [vmem:[#allocation42_spill] sm:$0xff] }
 0x243   : > { %v6167_v28 = vadd.f32 1e-05, %v7036_v29  ;;  %2670 = vperm.xlu1 %3854, %v1936_v58   ;;  %v1555_v53 = vadd.f32 1e-05, %v1491_v36  ;;  %v3717_v33 = vpack.c.bf16 %v2907_v23, %v2905_v39  ;;  %v2269_v6 = vmul.f32 %v3991_v1, %v5865_v0  ;;  %v1777_v39 = vld [vmem:[%s4370_s15 + $0xc0] sm:$0xff]  ;;  %v3996_v18 = vld [vmem:[%s4360_s12 + $0x238] sm:$0xff] }
 0x244   : > { %2665 = vperm.xlu0 %3853, %v1935_v45   ;;  %v3715_v11 = vpack.c.bf16 %v2908_v38, %v2906_v60  ;;  %v2270_v55 = vmul.f32 %v3992_v10, %v5865_v0  ;;  %v2271_v16 = vmul.f32 %v3993_v57, %v5879_v12  ;;  %v2272_v26 = vmul.f32 %v3994_v4, %v5879_v12  ;;  %v7040_v0 = vld [vmem:[#allocation55_spill] sm:$0xff]  ;;  %v1682_v12 = vld [vmem:[%s4365_s21 + $0x1c8] sm:$0xff]  ;;  %v3997_v45 = vld [vmem:[%s4360_s12 + $0x220] sm:$0xff] }
 0x245   : > { %v1556_v51 = vadd.f32 1e-05, %v1492_v21  ;;  %v2335_v47 = vmul.f32 %v3995_v52, %v2123_v56  ;;  %v1745_v36 = vmul.f32 %v3956_v48, %v1681_v3  ;;  %v1841_v50 = vmul.f32 %v7040_v0, %v7039_v15  ;;  %v3998_v29 = vld [vmem:[%s4360_s12 + $0x228] sm:$0xff]  ;;  %v1809_v4 = vld [vmem:[%s4370_s15 + $0x1c0] sm:$0xff]  ;;  %v3960_v52 = vpop.eup %3959 }
 0x246   : > { %3716 = vmatprep.subr.bf16.mxu0 %v3715_v11  ;;  %v2411_v35 = vpop.permute.xlu1 %2410  ;;  %v2406_v9 = vpop.permute.xlu0 %2405  ;;  %3963 = vrsqrt.f32 %v1555_v53  ;;  %v2336_v21 = vmul.f32 %v3996_v18, %v2123_v56  ;;  %v2333_v60 = vmul.f32 %v3997_v45, %v2118_v7  ;;  %v2334_v46 = vmul.f32 %v3998_v29, %v2118_v7  ;;  %v3999_v45 = vld [vmem:[%s4360_s12 + $0x40] sm:$0xff]  ;;  %v4000_v29 = vld [vmem:[%s4360_s12 + $0x48] sm:$0xff] }
 0x247   : > { %v2719_v13 = vadd.f32 %v2411_v35, %v2271_v16  ;;  %v2720_v23 = vadd.f32 %v2411_v35, %v2272_v26  ;;  %3718 = vmatpush1.bf16.msra.mxu0 %v3717_v33  ;;  %v2717_v58 = vadd.f32 %v2406_v9, %v2269_v6  ;;  %v2718_v38 = vadd.f32 %v2406_v9, %v2270_v55  ;;  %v1778_v26 = vld [vmem:[%s4370_s15 + $0xc8] sm:$0xff]  ;;  %v3962_v0 = vpop.eup %3961 }
 0x248   : > { %2227 = vperm.xlu1 %3854, %v1745_v36   ;;  %2072 = vperm.xlu0 %3853, %v1714_v61   ;;  %v1905_v6 = vsub.f32 %v1777_v39, %v1841_v50  ;;  %v1746_v10 = vmul.f32 %v3958_v49, %v1682_v12  ;;  %v1873_v53 = vmul.f32 %v1745_v36, %v6014_v63  ;;  %3965 = vrsqrt.f32 %v1556_v51  ;;  %v1652_v49 = vld [vmem:[%s4365_s21 + $0xd8] sm:$0xff]  ;;  %v1810_v12 = vld [vmem:[%s4370_s15 + $0x1c8] sm:$0xff] }
 0x249   : > { %v2847_v48 = vmax.f32 %v2719_v13, 0.0  ;;  %v2848_v3 = vmax.f32 %v2720_v23, 0.0  ;;  %v2845_v8 = vmax.f32 %v2717_v58, 0.0  ;;  %v2846_v11 = vmax.f32 %v2718_v38, 0.0  ;;  %v7041_v38 = vld [vmem:[#allocation50_spill] sm:$0xff] }
 0x24a   : > { %v2571_v33 = vpop.permute.xlu1 %2570  ;;  %v2566_v1 = vpop.permute.xlu0 %2565  ;;  %v1842_v56 = vmul.f32 %v1714_v61, %v5990_v43  ;;  %v1365_v35 = vmul.f32 0.0051020407, %v5863_v20  ;;  %v6200_v36 = vmul.f32 0.0051020407, %v5823_v2  ;;  %v1937_v13 = vsub.f32 %v1809_v4, %v1873_v53  ;;  %v1651_v2 = vld [vmem:[%s4365_s21 + $0xd0] sm:$0xff]  ;;  %v4004_v4 = vld [vmem:[%s4360_s12 + $0x258] sm:$0xff] }
 0x24b   : > { %v2783_v55 = vadd.f32 %v2571_v33, %v2335_v47  ;;  %v2784_v57 = vadd.f32 %v2571_v33, %v2336_v21  ;;  %v2781_v7 = vadd.f32 %v2566_v1, %v2333_v60  ;;  %v2782_v16 = vadd.f32 %v2566_v1, %v2334_v46  ;;  %v4003_v33 = vld [vmem:[%s4360_s12 + $0x250] sm:$0xff] }
 0x24c   : > { %2515 = vperm.xlu1 %3854, %v1905_v6   ;;  %2232 = vperm.xlu0 %3853, %v1746_v10   ;;  %v3655_v9 = vpack.c.bf16 %v2848_v3, %v2846_v11  ;;  %v3657_v15 = vpack.c.bf16 %v2847_v48, %v2845_v8  ;;  %v1906_v20 = vsub.f32 %v1778_v26, %v1842_v56  ;;  %3967 = vrsqrt.f32 %v6167_v28  ;;  %v4001_v48 = vld [vmem:[%s4360_s12 + $0x50] sm:$0xff]  ;;  %v4002_v8 = vld [vmem:[%s4360_s12 + $0x58] sm:$0xff] }
 0x24d   : > { %v2911_v63 = vmax.f32 %v2783_v55, 0.0  ;;  %v2912_v43 = vmax.f32 %v2784_v57, 0.0  ;;  %v2909_v61 = vmax.f32 %v2781_v7, 0.0  ;;  %v2910_v47 = vmax.f32 %v2782_v16, 0.0 }
 0x24e   : > { %3656 = vmatprep.subr.bf16.mxu1 %v3655_v9  ;;  %v2133_v50 = vpop.permute.xlu1 %2132  ;;  %v2128_v51 = vpop.permute.xlu0 %2127  ;;  %v1874_v23 = vmul.f32 %v1746_v10, %v6025_v62  ;;  %v1464_v58 = vsub.f32 %v6175_v24, %v6078_v30  ;;  %v6207_v39 = vmul.f32 0.0051020407, %v7041_v38  ;;  %v1716_v18 = vmul.f32 %v3960_v52, %v1652_v49  ;;  %v4005_v52 = vld [vmem:[%s4360_s12 + $0x240] sm:$0xff]  ;;  %v4009_v24 = vld [vmem:[%s4360_s12 + $0x70] sm:$0xff] }
 0x24f   : > { %3658 = vmatpush1.bf16.msra.mxu1 %v3657_v15  ;;  %3969 = vrsqrt.f32 %v6172_v19  ;;  %v1493_v62 = vsub.f32 %v1365_v35, %v6113_v17  ;;  %v3719_v28 = vpack.c.bf16 %v2912_v43, %v2910_v47  ;;  %v3721_v21 = vpack.c.bf16 %v2911_v63, %v2909_v61  ;;  %v4006_v35 = vld [vmem:[%s4360_s12 + $0x248] sm:$0xff] }
 0x250   : > { %2675 = vperm.xlu1 %3854, %v1937_v13   ;;  %2520 = vperm.xlu0 %3853, %v1906_v20   ;;  %v2273_v60 = vmul.f32 %v3999_v45, %v5887_v41  ;;  %v2274_v46 = vmul.f32 %v4000_v29, %v5887_v41  ;;  %v2275_v3 = vmul.f32 %v4001_v48, %v5899_v44  ;;  %v3964_v11 = vpop.eup %3963  ;;  %v1780_v29 = vld [vmem:[%s4370_s15 + $0xd8] sm:$0xff]  ;;  %v6240_v48 = vmul.f32 0.0051020407, %v5883_v25 }
 0x251   : > { %v2276_v19 = vmul.f32 %v4002_v8, %v5899_v44  ;;  %v1494_v17 = vsub.f32 %v6200_v36, %v6109_v27  ;;  %v2339_v1 = vmul.f32 %v4003_v33, %v2133_v50  ;;  %3720 = vmatprep.subr.bf16.mxu0 %v3719_v28  ;;  %v1715_v41 = vmul.f32 %v3962_v0, %v1651_v2  ;;  %v1683_v44 = vld [vmem:[%s4365_s21 + $0x1d0] sm:$0xff] }
 0x252   : > { %v2421_v6 = vpop.permute.xlu1 %2420  ;;  %v2416_v10 = vpop.permute.xlu0 %2415  ;;  %v1938_v53 = vsub.f32 %v1810_v12, %v1874_v23  ;;  %3722 = vmatpush1.bf16.msra.mxu0 %v3721_v21  ;;  %v1557_v16 = vadd.f32 1e-05, %v1493_v62  ;;  %v2340_v26 = vmul.f32 %v4004_v4, %v2133_v50  ;;  %v2337_v27 = vmul.f32 %v4005_v52, %v2128_v51  ;;  %v1779_v12 = vld [vmem:[%s4370_s15 + $0xd0] sm:$0xff]  ;;  %v1684_v62 = vld [vmem:[%s4365_s21 + $0x1d8] sm:$0xff] }
 0x253   : > { %v2723_v56 = vadd.f32 %v2421_v6, %v2275_v3  ;;  %v2724_v55 = vadd.f32 %v2421_v6, %v2276_v19  ;;  %v2721_v57 = vadd.f32 %v2416_v10, %v2273_v60  ;;  %v2722_v7 = vadd.f32 %v2416_v10, %v2274_v46  ;;  %v3966_v43 = vpop.eup %3965  ;;  %v1811_v6 = vld [vmem:[%s4370_s15 + $0x1d0] sm:$0xff] }
 0x254   : > { %v2338_v9 = vmul.f32 %v4006_v35, %v2128_v51  ;;  %2077 = vperm.xlu1 %3854, %v1715_v41   ;;  %2680 = vperm.xlu0 %3853, %v1938_v53   ;;  %v1463_v61 = vsub.f32 %v6207_v39, %v6094_v40  ;;  %v1747_v13 = vmul.f32 %v3964_v11, %v1683_v44  ;;  %v1558_v28 = vadd.f32 1e-05, %v1494_v17  ;;  %v4007_v53 = vld [vmem:[%s4360_s12 + $0x60] sm:$0xff] }
 0x255   : > { %v2851_v15 = vmax.f32 %v2723_v56, 0.0  ;;  %v2852_v49 = vmax.f32 %v2724_v55, 0.0  ;;  %v2849_v0 = vmax.f32 %v2721_v57, 0.0  ;;  %v2850_v63 = vmax.f32 %v2722_v7, 0.0  ;;  %v4008_v55 = vld [vmem:[%s4360_s12 + $0x68] sm:$0xff]  ;;  %v4010_v57 = vld [vmem:[%s4360_s12 + $0x78] sm:$0xff] }
 0x256   : > { %v2581_v47 = vpop.permute.xlu1 %2580  ;;  %v2576_v36 = vpop.permute.xlu0 %2575  ;;  %v1843_v50 = vmul.f32 %v1715_v41, %v6002_v22  ;;  %v6232_v20 = vmul.f32 %v1716_v18, %v5993_v31  ;;  %3971 = vrsqrt.f32 %v1557_v16  ;;  %v1875_v11 = vmul.f32 %v1747_v13, %v6063_v59  ;;  %v4011_v16 = vld [vmem:[%s4360_s12 + $0x270] sm:$0xff] }
 0x257   : > { %v2787_v51 = vadd.f32 %v2581_v47, %v2339_v1  ;;  %v2788_v23 = vadd.f32 %v2581_v47, %v2340_v26  ;;  %v2785_v38 = vadd.f32 %v2576_v36, %v2337_v27  ;;  %v2786_v2 = vadd.f32 %v2576_v36, %v2338_v9  ;;  %v6236_v21 = vpop.eup %3967  ;;  %v4013_v36 = vld [vmem:[%s4360_s12 + $0x260] sm:$0xff] }
 0x258   : > { %2237 = vperm.xlu1 %3854, %v1747_v13   ;;  %2082 = vperm.xlu0 %3853, %v1716_v18   ;;  %v3659_v40 = vpack.c.bf16 %v2852_v49, %v2850_v63  ;;  %v3661_v39 = vpack.c.bf16 %v2851_v15, %v2849_v0  ;;  %v1907_v19 = vsub.f32 %v1779_v12, %v1843_v50  ;;  %v6252_v25 = vadd.f32 1e-05, %v1464_v58  ;;  %v1812_v0 = vld [vmem:[%s4370_s15 + $0x1d8] sm:$0xff]  ;;  %v1654_v63 = vld [vmem:[%s4365_s21 + $0xe8] sm:$0xff] }
 0x259   : > { %v2915_v45 = vmax.f32 %v2787_v51, 0.0  ;;  %v2916_v22 = vmax.f32 %v2788_v23, 0.0  ;;  %v2913_v60 = vmax.f32 %v2785_v38, 0.0  ;;  %v2914_v31 = vmax.f32 %v2786_v2, 0.0  ;;  %v3970_v46 = vpop.eup %3969  ;;  %v4014_v50 = vld [vmem:[%s4360_s12 + $0x268] sm:$0xff] }
 0x25a   : > { %3660 = vmatprep.subr.bf16.mxu1 %v3659_v40  ;;  %v2143_v3 = vpop.permute.xlu1 %2142  ;;  %v2138_v8 = vpop.permute.xlu0 %2137  ;;  %v1748_v18 = vmul.f32 %v3966_v43, %v1684_v62  ;;  %v6245_v17 = vmul.f32 %v6117_v32, %v6117_v32  ;;  %v1431_v33 = vmul.f32 %v6155_v54, %v6155_v54  ;;  %v1527_v1 = vadd.f32 1e-05, %v1463_v61  ;;  %v4012_v61 = vld [vmem:[%s4360_s12 + $0x278] sm:$0xff] }
 0x25b   : > { %3662 = vmatpush1.bf16.msra.mxu1 %v3661_v39  ;;  %3973 = vrsqrt.f32 %v1558_v28  ;;  %v3723_v59 = vpack.c.bf16 %v2916_v22, %v2914_v31  ;;  %v3725_v10 = vpack.c.bf16 %v2915_v45, %v2913_v60  ;;  %v1908_v41 = vsub.f32 %v1780_v29, %v6232_v20  ;;  %v1685_v31 = vld [vmem:[%s4365_s21 + $0x1e0] sm:$0xff] }
 0x25c   : > { %2525 = vperm.xlu1 %3854, %v1907_v19   ;;  %2242 = vperm.xlu0 %3853, %v1748_v18   ;;  %v2277_v56 = vmul.f32 %v4007_v53, %v5915_v5  ;;  %v2278_v30 = vmul.f32 %v4008_v55, %v5915_v5  ;;  %v2279_v58 = vmul.f32 %v4009_v24, %v5923_v34  ;;  %v1368_v43 = vmul.f32 0.0051020407, %v5839_v37  ;;  %v4015_v24 = vld [vmem:[%s4360_s12 + $0x90] sm:$0xff] }
 0x25d   : > { %v2280_v7 = vmul.f32 %v4010_v57, %v5923_v34  ;;  %v1495_v44 = vsub.f32 %v6240_v48, %v1431_v33  ;;  %v2343_v4 = vmul.f32 %v4011_v16, %v2143_v3  ;;  %3724 = vmatprep.subr.bf16.mxu0 %v3723_v59  ;;  %v1939_v5 = vsub.f32 %v1811_v6, %v1875_v11  ;;  %v1653_v34 = vld [vmem:[%s4365_s21 + $0xe0] sm:$0xff] }
 0x25e   : > { %v2431_v26 = vpop.permute.xlu1 %2430  ;;  %v2426_v52 = vpop.permute.xlu0 %2425  ;;  %v1876_v27 = vmul.f32 %v1748_v18, %v6060_v14  ;;  %3726 = vmatpush1.bf16.msra.mxu0 %v3725_v10  ;;  %v2344_v47 = vmul.f32 %v4012_v61, %v2143_v3  ;;  %v2341_v13 = vmul.f32 %v4013_v36, %v2138_v8  ;;  %v2342_v20 = vmul.f32 %v4014_v50, %v2138_v8  ;;  %v1781_v59 = vld [vmem:[%s4370_s15 + $0xe0] sm:$0xff]  ;;  %v1686_v10 = vld [vmem:[%s4365_s21 + $0x1e8] sm:$0xff]  ;;  %v4020_v50 = vld [vmem:[%s4360_s12 + $0x298] sm:$0xff] }
 0x25f   : > { %v2727_v35 = vadd.f32 %v2431_v26, %v2279_v58  ;;  %v2728_v9 = vadd.f32 %v2431_v26, %v2280_v7  ;;  %v2725_v15 = vadd.f32 %v2426_v52, %v2277_v56  ;;  %v2726_v49 = vadd.f32 %v2426_v52, %v2278_v30  ;;  %v7043_v58 = vld [vmem:[#allocation56_spill] sm:$0xff]  ;;  %v4019_v52 = vld [vmem:[%s4360_s12 + $0x290] sm:$0xff]  ;;  %v1782_v36 = vld [vmem:[%s4370_s15 + $0xe8] sm:$0xff] }
 0x260   : > { %2685 = vperm.xlu1 %3854, %v1939_v5   ;;  %2530 = vperm.xlu0 %3853, %v1908_v41   ;;  %v3972_v2 = vpop.eup %3971  ;;  %3975 = vrsqrt.f32 %v1527_v1  ;;  %v1717_v28 = vmul.f32 %v3970_v46, %v1653_v34  ;;  %v1940_v40 = vsub.f32 %v1812_v0, %v1876_v27  ;;  %v1718_v37 = vmul.f32 %v6236_v21, %v1654_v63  ;;  %v7042_v41 = vld [vmem:[#allocation68_spill] sm:$0xff] }
 0x261   : > { %v2855_v14 = vmax.f32 %v2727_v35, 0.0  ;;  %v2856_v51 = vmax.f32 %v2728_v9, 0.0  ;;  %v2853_v23 = vmax.f32 %v2725_v15, 0.0  ;;  %v2854_v38 = vmax.f32 %v2726_v49, 0.0  ;;  %v7045_v49 = vld [vmem:[#allocation75_spill] sm:$0xff] }
 0x262   : > { %v2591_v12 = vpop.permute.xlu1 %2590  ;;  %v2586_v62 = vpop.permute.xlu0 %2585  ;;  %v1496_v29 = vsub.f32 %v1368_v43, %v6245_v17  ;;  %v1559_v48 = vadd.f32 1e-05, %v1495_v44  ;;  %v1749_v6 = vmul.f32 %v3972_v2, %v1685_v31  ;;  %v1845_v17 = vmul.f32 %v1717_v28, %v6029_v42  ;;  %v4016_v42 = vld [vmem:[%s4360_s12 + $0x98] sm:$0xff]  ;;  %v7044_v44 = vld [vmem:[#allocation58_spill] sm:$0xff] }
 0x263   : > { %v2791_v39 = vadd.f32 %v2591_v12, %v2343_v4  ;;  %v2792_v45 = vadd.f32 %v2591_v12, %v2344_v47  ;;  %v2789_v22 = vadd.f32 %v2586_v62, %v2341_v13  ;;  %v2790_v60 = vadd.f32 %v2586_v62, %v2342_v20  ;;  %v4018_v4 = vld [vmem:[%s4360_s12 + $0x88] sm:$0xff]  ;;  %v1813_v47 = vld [vmem:[%s4370_s15 + $0x1e0] sm:$0xff] }
 0x264   : > { %2087 = vperm.xlu1 %3854, %v1717_v28   ;;  %2690 = vperm.xlu0 %3853, %v1940_v40   ;;  %v3663_v3 = vpack.c.bf16 %v2856_v51, %v2854_v38  ;;  %v3665_v8 = vpack.c.bf16 %v2855_v14, %v2853_v23  ;;  %3977 = vrsqrt.f32 %v6252_v25  ;;  %v1846_v53 = vmul.f32 %v1718_v37, %v7042_v41  ;;  %v4017_v25 = vld [vmem:[%s4360_s12 + $0x80] sm:$0xff]  ;;  %v4022_v23 = vld [vmem:[%s4360_s12 + $0x288] sm:$0xff] }
 0x265   : > { %v2919_v19 = vmax.f32 %v2791_v39, 0.0  ;;  %v2920_v18 = vmax.f32 %v2792_v45, 0.0  ;;  %v2917_v46 = vmax.f32 %v2789_v22, 0.0  ;;  %v2918_v11 = vmax.f32 %v2790_v60, 0.0  ;;  %v3974_v33 = vpop.eup %3973  ;;  %v4021_v14 = vld [vmem:[%s4360_s12 + $0x280] sm:$0xff]  ;;  %v7046_v22 = vld [vmem:[#allocation74_spill] sm:$0xff] }
 0x266   : > { %3664 = vmatprep.subr.bf16.mxu1 %v3663_v3  ;;  %v2153_v21 = vpop.permute.xlu1 %2152  ;;  %v2148_v1 = vpop.permute.xlu0 %2147  ;;  %v1560_v56 = vadd.f32 1e-05, %v1496_v29  ;;  %3979 = vrsqrt.f32 %v1559_v48  ;;  %v2283_v57 = vmul.f32 %v4015_v24, %v7043_v58  ;;  %v2284_v7 = vmul.f32 %v4016_v42, %v7043_v58  ;;  %v4023_v58 = vld [vmem:[%s4360_s12 + $0xb0] sm:$0xff] }
 0x267   : > { %3666 = vmatpush1.bf16.msra.mxu1 %v3665_v8  ;;  %v3727_v55 = vpack.c.bf16 %v2920_v18, %v2918_v11  ;;  %v3729_v30 = vpack.c.bf16 %v2919_v19, %v2917_v46  ;;  %v2281_v16 = vmul.f32 %v4017_v25, %v7044_v44  ;;  %v2282_v26 = vmul.f32 %v4018_v4, %v7044_v44  ;;  %v1655_v8 = vld [vmem:[%s4365_s21 + $0xf0] sm:$0xff]  ;;  %v1814_v19 = vld [vmem:[%s4370_s15 + $0x1e8] sm:$0xff]  ;;  %v4025_v44 = vld [vmem:[%s4360_s12 + $0xa0] sm:$0xff] }
 0x268   : > { %2247 = vperm.xlu1 %3854, %v1749_v6   ;;  %2092 = vperm.xlu0 %3853, %v1718_v37   ;;  %v2347_v5 = vmul.f32 %v4019_v52, %v2153_v21  ;;  %v1909_v9 = vsub.f32 %v1781_v59, %v1845_v17  ;;  %v1750_v15 = vmul.f32 %v3974_v33, %v1686_v10  ;;  %3981 = vrsqrt.f32 %v1560_v56  ;;  %v1687_v56 = vld [vmem:[%s4365_s21 + $0x1f0] sm:$0xff] }
 0x269   : > { %3728 = vmatprep.subr.bf16.mxu0 %v3727_v55  ;;  %v1877_v34 = vmul.f32 %v1749_v6, %v7045_v49  ;;  %v2348_v20 = vmul.f32 %v4020_v50, %v2153_v21  ;;  %v2345_v51 = vmul.f32 %v4021_v14, %v2148_v1  ;;  %v2346_v38 = vmul.f32 %v4022_v23, %v2148_v1  ;;  %v1656_v55 = vld [vmem:[%s4365_s21 + $0xf8] sm:$0xff] }
 0x26a   : > { %v2441_v27 = vpop.permute.xlu1 %2440  ;;  %v2436_v35 = vpop.permute.xlu0 %2435  ;;  %3730 = vmatpush1.bf16.msra.mxu0 %v3729_v30  ;;  %v1910_v45 = vsub.f32 %v1782_v36, %v1846_v53  ;;  %v1878_v60 = vmul.f32 %v1750_v15, %v7046_v22  ;;  %v1688_v50 = vld [vmem:[%s4365_s21 + $0x1f8] sm:$0xff] }
 0x26b   : > { %v2731_v0 = vadd.f32 %v2441_v27, %v2283_v57  ;;  %v2732_v63 = vadd.f32 %v2441_v27, %v2284_v7  ;;  %v2729_v43 = vadd.f32 %v2436_v35, %v2281_v16  ;;  %v2730_v61 = vadd.f32 %v2436_v35, %v2282_v26  ;;  %v3976_v13 = vpop.eup %3975  ;;  %v7047_v57 = vld [vmem:[#allocation57_spill] sm:$0xff]  ;;  %v4024_v7 = vld [vmem:[%s4360_s12 + $0xb8] sm:$0xff]  ;;  %v7048_v16 = vld [vmem:[#allocation60_spill] sm:$0xff] }
 0x26c   : > { %2535 = vperm.xlu1 %3854, %v1909_v9   ;;  %2252 = vperm.xlu0 %3853, %v1750_v15   ;;  %v1941_v39 = vsub.f32 %v1813_v47, %v1877_v34  ;;  %v1719_v41 = vmul.f32 %v3976_v13, %v1655_v8  ;;  %v1942_v53 = vsub.f32 %v1814_v19, %v1878_v60  ;;  %v4026_v26 = vld [vmem:[%s4360_s12 + $0xa8] sm:$0xff]  ;;  %v4027_v27 = vld [vmem:[%s4360_s12 + $0x2b0] sm:$0xff] }
 0x26d   : > { %v2859_v2 = vmax.f32 %v2731_v0, 0.0  ;;  %v2860_v12 = vmax.f32 %v2732_v63, 0.0  ;;  %v2857_v62 = vmax.f32 %v2729_v43, 0.0  ;;  %v2858_v28 = vmax.f32 %v2730_v61, 0.0  ;;  %v7049_v0 = vld [vmem:[#allocation72_spill] sm:$0xff]  ;;  %v1783_v13 = vld [vmem:[%s4370_s15 + $0xf0] sm:$0xff] }
 0x26e   : > { %v2601_v40 = vpop.permute.xlu1 %2600  ;;  %v2596_v37 = vpop.permute.xlu0 %2595  ;;  %v2287_v42 = vmul.f32 %v4023_v58, %v7047_v57  ;;  %v2288_v25 = vmul.f32 %v4024_v7, %v7047_v57  ;;  %v2285_v4 = vmul.f32 %v4025_v44, %v7048_v16  ;;  %v2286_v52 = vmul.f32 %v4026_v26, %v7048_v16  ;;  %v7051_v58 = vld [vmem:[#allocation59_spill] sm:$0xff]  ;;  %v7052_v44 = vld [vmem:[#allocation62_spill] sm:$0xff] }
 0x26f   : > { %v2795_v31 = vadd.f32 %v2601_v40, %v2347_v5  ;;  %v2796_v29 = vadd.f32 %v2601_v40, %v2348_v20  ;;  %v2793_v48 = vadd.f32 %v2596_v37, %v2345_v51  ;;  %v2794_v3 = vadd.f32 %v2596_v37, %v2346_v38  ;;  %v3978_v11 = vpop.eup %3977  ;;  %v4028_v20 = vld [vmem:[%s4360_s12 + $0x2b8] sm:$0xff]  ;;  %v4029_v51 = vld [vmem:[%s4360_s12 + $0x2a0] sm:$0xff]  ;;  %v4030_v38 = vld [vmem:[%s4360_s12 + $0x2a8] sm:$0xff] }
 0x270   : > { %2695 = vperm.xlu1 %3854, %v1941_v39   ;;  %2540 = vperm.xlu0 %3853, %v1910_v45   ;;  %v3667_v18 = vpack.c.bf16 %v2860_v12, %v2858_v28  ;;  %v3669_v46 = vpack.c.bf16 %v2859_v2, %v2857_v62  ;;  %v3980_v17 = vpop.eup %3979  ;;  %v1720_v34 = vmul.f32 %v3978_v11, %v1656_v55 }
 0x271   : > { %v2923_v33 = vmax.f32 %v2795_v31, 0.0  ;;  %v2924_v21 = vmax.f32 %v2796_v29, 0.0  ;;  %v2921_v1 = vmax.f32 %v2793_v48, 0.0  ;;  %v2922_v6 = vmax.f32 %v2794_v3, 0.0  ;;  %v7050_v31 = vld [vmem:[#allocation70_spill] sm:$0xff] }
 0x272   : > { %3668 = vmatprep.subr.bf16.mxu1 %v3667_v18  ;;  %v2163_v59 = vpop.permute.xlu1 %2162  ;;  %v2158_v10 = vpop.permute.xlu0 %2157  ;;  %v1751_v49 = vmul.f32 %v3980_v17, %v1687_v56  ;;  %v1847_v63 = vmul.f32 %v1719_v41, %v7049_v0  ;;  %v1848_v29 = vmul.f32 %v1720_v34, %v7050_v31  ;;  %v1815_v18 = vld [vmem:[%s4370_s15 + $0x1f0] sm:$0xff]  ;;  %v1816_v56 = vld [vmem:[%s4370_s15 + $0x1f8] sm:$0xff] }
 0x273   : > { %3670 = vmatpush1.bf16.msra.mxu1 %v3669_v46  ;;  %v3731_v30 = vpack.c.bf16 %v2924_v21, %v2922_v6  ;;  %v3733_v24 = vpack.c.bf16 %v2923_v33, %v2921_v1  ;;  %v3982_v5 = vpop.eup %3981  ;;  %v2351_v35 = vmul.f32 %v4027_v27, %v2163_v59  ;;  %v2352_v14 = vmul.f32 %v4028_v20, %v2163_v59  ;;  %v1784_v46 = vld [vmem:[%s4370_s15 + $0xf8] sm:$0xff] }
 0x274   : > { %2097 = vperm.xlu1 %3854, %v1719_v41   ;;  %2700 = vperm.xlu0 %3853, %v1942_v53   ;;  %v2349_v23 = vmul.f32 %v4029_v51, %v2158_v10  ;;  %v2350_v2 = vmul.f32 %v4030_v38, %v2158_v10  ;;  %v1911_v45 = vsub.f32 %v1783_v13, %v1847_v63  ;;  %v4036_v0 = vld [vmem:[%s4360_s12 + $0x2d8] sm:$0xff] }
 0x275   : > { %3732 = vmatprep.subr.bf16.mxu0 %v3731_v30  ;;  %v1752_v22 = vmul.f32 %v3982_v5, %v1688_v50  ;;  %v1879_v60 = vmul.f32 %v1751_v49, %v6155_v54  ;;  %v1912_v41 = vsub.f32 %v1784_v46, %v1848_v29  ;;  %v3002_v29 = vld [vmem:[%s4372_s25 + $0x8] sm:$0xff] }
 0x276   : > { %v2451_v9 = vpop.permute.xlu1 %2450  ;;  %v2446_v15 = vpop.permute.xlu0 %2445  ;;  %3734 = vmatpush1.bf16.msra.mxu0 %v3733_v24  ;;  %v4031_v24 = vld [vmem:[%s4360_s12 + $0xd0] sm:$0xff]  ;;  %3129 = vmatprep.mubr.f32.mxu1 %v3002_v29 }
 0x277   : > { %v2735_v43 = vadd.f32 %v2451_v9, %v2287_v42  ;;  %v2736_v61 = vadd.f32 %v2451_v9, %v2288_v25  ;;  %v2733_v47 = vadd.f32 %v2446_v15, %v2285_v4  ;;  %v2734_v36 = vadd.f32 %v2446_v15, %v2286_v52  ;;  %v4032_v42 = vld [vmem:[%s4360_s12 + $0xd8] sm:$0xff]  ;;  %v4033_v25 = vld [vmem:[%s4360_s12 + $0xc0] sm:$0xff]  ;;  %v4034_v4 = vld [vmem:[%s4360_s12 + $0xc8] sm:$0xff] }
 0x278   : > { %2257 = vperm.xlu1 %3854, %v1751_v49   ;;  %2102 = vperm.xlu0 %3853, %v1720_v34   ;;  %v1943_v10 = vsub.f32 %v1815_v18, %v1879_v60  ;;  %v1880_v53 = vmul.f32 %v1752_v22, %v6117_v32  ;;  %v2291_v57 = vmul.f32 %v4031_v24, %v7051_v58  ;;  %v4035_v49 = vld [vmem:[%s4360_s12 + $0x2d0] sm:$0xff]  ;;  %v7053_v18 = vld [vmem:[#allocation61_spill] sm:$0xff] }
 0x279   : > { %v2863_v12 = vmax.f32 %v2735_v43, 0.0  ;;  %v2864_v62 = vmax.f32 %v2736_v61, 0.0  ;;  %v2861_v28 = vmax.f32 %v2733_v47, 0.0  ;;  %v2862_v40 = vmax.f32 %v2734_v36, 0.0  ;;  %v4037_v43 = vld [vmem:[%s4360_s12 + $0x2c0] sm:$0xff]  ;;  %v4038_v47 = vld [vmem:[%s4360_s12 + $0x2c8] sm:$0xff] }
 0x27a   : > { %v2611_v37 = vpop.permute.xlu1 %2610  ;;  %v2606_v39 = vpop.permute.xlu0 %2605  ;;  %v2292_v7 = vmul.f32 %v4032_v42, %v7051_v58  ;;  %v2289_v16 = vmul.f32 %v4033_v25, %v7052_v44  ;;  %v2290_v32 = vmul.f32 %v4034_v4, %v7052_v44  ;;  %v1944_v5 = vsub.f32 %v1816_v56, %v1880_v53  ;;  %v4044_v58 = vld [vmem:[%s4360_s12 + $0x2f8] sm:$0xff]  ;;  %v4045_v42 = vld [vmem:[%s4360_s12 + $0x2e0] sm:$0xff]  ;;  %v4046_v25 = vld [vmem:[%s4360_s12 + $0x2e8] sm:$0xff] }
 0x27b   : > { %v2799_v48 = vadd.f32 %v2611_v37, %v2351_v35  ;;  %v2800_v3 = vadd.f32 %v2611_v37, %v2352_v14  ;;  %v2797_v8 = vadd.f32 %v2606_v39, %v2349_v23  ;;  %v2798_v19 = vadd.f32 %v2606_v39, %v2350_v2  ;;  %v4051_v29 = vld [vmem:[%s4360_s12 + $0x310] sm:$0xff] }
 0x27c   : > { %2545 = vperm.xlu1 %3854, %v1911_v45   ;;  %2262 = vperm.xlu0 %3853, %v1752_v22   ;;  %v3671_v11 = vpack.c.bf16 %v2864_v62, %v2862_v40  ;;  %v3673_v33 = vpack.c.bf16 %v2863_v12, %v2861_v28 }
 0x27d   : > { %v2927_v21 = vmax.f32 %v2799_v48, 0.0  ;;  %v2928_v1 = vmax.f32 %v2800_v3, 0.0  ;;  %v2925_v6 = vmax.f32 %v2797_v8, 0.0  ;;  %v2926_v17 = vmax.f32 %v2798_v19, 0.0  ;;  %v3004_v48 = vld [vmem:[%s4372_s25 + $0x18] sm:$0xff]  ;;  %v4039_v19 = vld [vmem:[%s4360_s12 + $0xf0] sm:$0xff] }
 0x27e   : > { %3672 = vmatprep.subr.bf16.mxu1 %v3671_v11  ;;  %v2173_v54 = vpop.permute.xlu1 %2172  ;;  %v2168_v59 = vpop.permute.xlu0 %2167  ;;  %3290 = vmatprep.mubr.f32.mxu0 %v3004_v48  ;;  %v2295_v46 = vmul.f32 %v4039_v19, %v7053_v18  ;;  %v4040_v11 = vld [vmem:[%s4360_s12 + $0xf8] sm:$0xff]  ;;  %v4053_v19 = vld [vmem:[%s4360_s12 + $0x300] sm:$0xff] }
 0x27f   : > { %3674 = vmatpush1.bf16.msra.mxu1 %v3673_v33  ;;  %v3735_v55 = vpack.c.bf16 %v2928_v1, %v2926_v17  ;;  %v3737_v30 = vpack.c.bf16 %v2927_v21, %v2925_v6  ;;  %v2355_v34 = vmul.f32 %v4035_v49, %v2173_v54  ;;  %v2356_v63 = vmul.f32 %v4036_v0, %v2173_v54  ;;  %v4041_v21 = vld [vmem:[%s4360_s12 + $0xe0] sm:$0xff]  ;;  %v7054_v1 = vld [vmem:[#allocation63_spill] sm:$0xff]  ;;  %v4042_v17 = vld [vmem:[%s4360_s12 + $0xe8] sm:$0xff] }
 0x280   : > { %2705 = vperm.xlu1 %3854, %v1943_v10   ;;  %2550 = vperm.xlu0 %3853, %v1912_v41   ;;  %v2353_v61 = vmul.f32 %v4037_v43, %v2168_v59  ;;  %v2354_v36 = vmul.f32 %v4038_v47, %v2168_v59  ;;  %v2296_v33 = vmul.f32 %v4040_v11, %v7053_v18 }
 0x281   : > { %3736 = vmatprep.subr.bf16.mxu0 %v3735_v55  ;;  %v2293_v6 = vmul.f32 %v4041_v21, %v7054_v1  ;;  %v2294_v54 = vmul.f32 %v4042_v17, %v7054_v1 }
 0x282   : > { %v2461_v26 = vpop.permute.xlu1 %2460  ;;  %v2456_v52 = vpop.permute.xlu0 %2455  ;;  %3738 = vmatpush1.bf16.msra.mxu0 %v3737_v30  ;;  %v4043_v30 = vld [vmem:[%s4360_s12 + $0x2f0] sm:$0xff] }
 0x283   : > { %v2739_v27 = vadd.f32 %v2461_v26, %v2291_v57  ;;  %v2740_v35 = vadd.f32 %v2461_v26, %v2292_v7  ;;  %v2737_v9 = vadd.f32 %v2456_v52, %v2289_v16  ;;  %v2738_v15 = vadd.f32 %v2456_v52, %v2290_v32 }
 0x284   : > { %2710 = vperm.xlu0 %3853, %v1944_v5  }
 0x285   : > { %v2867_v13 = vmax.f32 %v2739_v27, 0.0  ;;  %v2868_v50 = vmax.f32 %v2740_v35, 0.0  ;;  %v2865_v20 = vmax.f32 %v2737_v9, 0.0  ;;  %v2866_v14 = vmax.f32 %v2738_v15, 0.0 }
 0x286   : > { %v2621_v51 = vpop.permute.xlu1 %2620  ;;  %v2616_v23 = vpop.permute.xlu0 %2615 }
 0x287   : > { %v2803_v38 = vadd.f32 %v2621_v51, %v2355_v34  ;;  %v2804_v2 = vadd.f32 %v2621_v51, %v2356_v63  ;;  %v2801_v12 = vadd.f32 %v2616_v23, %v2353_v61  ;;  %v2802_v62 = vadd.f32 %v2616_v23, %v2354_v36  ;;  %v4048_v23 = vld [vmem:[%s4360_s12 + $0x118] sm:$0xff] }
 0x288   : > { %v3675_v28 = vpack.c.bf16 %v2868_v50, %v2866_v14  ;;  %v3677_v40 = vpack.c.bf16 %v2867_v13, %v2865_v20  ;;  %v4047_v20 = vld [vmem:[%s4360_s12 + $0x110] sm:$0xff]  ;;  %v7055_v14 = vld [vmem:[#allocation64_spill] sm:$0xff] }
 0x289   : > { %v2931_v37 = vmax.f32 %v2803_v38, 0.0  ;;  %v2932_v39 = vmax.f32 %v2804_v2, 0.0  ;;  %v2929_v45 = vmax.f32 %v2801_v12, 0.0  ;;  %v2930_v22 = vmax.f32 %v2802_v62, 0.0  ;;  %v4049_v2 = vld [vmem:[%s4360_s12 + $0x100] sm:$0xff]  ;;  %v7056_v12 = vld [vmem:[#allocation65_spill] sm:$0xff] }
 0x28a   : > { %3676 = vmatprep.subr.bf16.mxu1 %v3675_v28  ;;  %v2183_v60 = vpop.permute.xlu1 %2182  ;;  %v2178_v31 = vpop.permute.xlu0 %2177  ;;  %v2299_v51 = vmul.f32 %v4047_v20, %v7055_v14  ;;  %v2300_v38 = vmul.f32 %v4048_v23, %v7055_v14  ;;  %v2297_v62 = vmul.f32 %v4049_v2, %v7056_v12  ;;  %v4050_v28 = vld [vmem:[%s4360_s12 + $0x108] sm:$0xff]  ;;  %v4061_v20 = vld [vmem:[%s4360_s12 + $0x320] sm:$0xff] }
 0x28b   : > { %3678 = vmatpush1.bf16.msra.mxu1 %v3677_v40  ;;  %v3739_v3 = vpack.c.bf16 %v2932_v39, %v2930_v22  ;;  %v3741_v8 = vpack.c.bf16 %v2931_v37, %v2929_v45  ;;  %v2359_v24 = vmul.f32 %v4043_v30, %v2183_v60  ;;  %v2360_v57 = vmul.f32 %v4044_v58, %v2183_v60 }
 0x28c   : > { %v2357_v7 = vmul.f32 %v4045_v42, %v2178_v31  ;;  %v2358_v44 = vmul.f32 %v4046_v25, %v2178_v31  ;;  %v2298_v40 = vmul.f32 %v4050_v28, %v7056_v12 }
 0x28d   : > { %3740 = vmatprep.subr.bf16.mxu0 %v3739_v3  ;;  %v4052_v3 = vld [vmem:[%s4360_s12 + $0x318] sm:$0xff] }
 0x28e   : > { %v2471_v59 = vpop.permute.xlu1 %2470  ;;  %v2466_v10 = vpop.permute.xlu0 %2465  ;;  %3742 = vmatpush1.bf16.msra.mxu0 %v3741_v8 }
 0x28f   : > { %v2743_v41 = vadd.f32 %v2471_v59, %v2295_v46  ;;  %v2744_v53 = vadd.f32 %v2471_v59, %v2296_v33  ;;  %v2741_v56 = vadd.f32 %v2466_v10, %v2293_v6  ;;  %v2742_v55 = vadd.f32 %v2466_v10, %v2294_v54  ;;  %v4054_v46 = vld [vmem:[%s4360_s12 + $0x308] sm:$0xff] }
 0x291   : > { %v2871_v16 = vmax.f32 %v2743_v41, 0.0  ;;  %v2872_v4 = vmax.f32 %v2744_v53, 0.0  ;;  %v2869_v32 = vmax.f32 %v2741_v56, 0.0  ;;  %v2870_v26 = vmax.f32 %v2742_v55, 0.0 }
 0x292   : > { %v2631_v52 = vpop.permute.xlu1 %2630  ;;  %v2626_v5 = vpop.permute.xlu0 %2625 }
 0x293   : > { %v2807_v27 = vadd.f32 %v2631_v52, %v2359_v24  ;;  %v2808_v35 = vadd.f32 %v2631_v52, %v2360_v57  ;;  %v2805_v9 = vadd.f32 %v2626_v5, %v2357_v7  ;;  %v2806_v15 = vadd.f32 %v2626_v5, %v2358_v44  ;;  %v4057_v5 = vld [vmem:[%s4360_s12 + $0x120] sm:$0xff] }
 0x294   : > { %v3679_v49 = vpack.c.bf16 %v2872_v4, %v2870_v26  ;;  %v3681_v34 = vpack.c.bf16 %v2871_v16, %v2869_v32  ;;  %v4055_v16 = vld [vmem:[%s4360_s12 + $0x130] sm:$0xff]  ;;  %v4056_v26 = vld [vmem:[%s4360_s12 + $0x138] sm:$0xff] }
 0x295   : > { %v2935_v0 = vmax.f32 %v2807_v27, 0.0  ;;  %v2936_v63 = vmax.f32 %v2808_v35, 0.0  ;;  %v2933_v43 = vmax.f32 %v2805_v9, 0.0  ;;  %v2934_v61 = vmax.f32 %v2806_v15, 0.0  ;;  %v7057_v4 = vld [vmem:[#allocation66_spill] sm:$0xff]  ;;  %v7058_v27 = vld [vmem:[#allocation67_spill] sm:$0xff] }
 0x296   : > { %3680 = vmatprep.subr.bf16.mxu1 %v3679_v49  ;;  %v2193_v47 = vpop.permute.xlu1 %2192  ;;  %v2188_v36 = vpop.permute.xlu0 %2187  ;;  %v2303_v32 = vmul.f32 %v4055_v16, %v7057_v4  ;;  %v2304_v52 = vmul.f32 %v4056_v26, %v7057_v4  ;;  %v2301_v35 = vmul.f32 %v4057_v5, %v7058_v27  ;;  %v4058_v9 = vld [vmem:[%s4360_s12 + $0x128] sm:$0xff] }
 0x297   : > { %3682 = vmatpush1.bf16.msra.mxu1 %v3681_v34  ;;  %v3743_v13 = vpack.c.bf16 %v2936_v63, %v2934_v61  ;;  %v3745_v50 = vpack.c.bf16 %v2935_v0, %v2933_v43  ;;  %v2363_v48 = vmul.f32 %v4051_v29, %v2193_v47  ;;  %v2364_v8 = vmul.f32 %v4052_v3, %v2193_v47  ;;  %v4059_v47 = vld [vmem:[%s4360_s12 + $0x330] sm:$0xff] }
 0x298   : > { %v2361_v18 = vmul.f32 %v4053_v19, %v2188_v36  ;;  %v2362_v11 = vmul.f32 %v4054_v46, %v2188_v36  ;;  %v2302_v15 = vmul.f32 %v4058_v9, %v7058_v27  ;;  %v4070_v27 = vld [vmem:[%s4360_s12 + $0x348] sm:$0xff] }
 0x299   : > { %3744 = vmatprep.subr.bf16.mxu0 %v3743_v13  ;;  %v4060_v13 = vld [vmem:[%s4360_s12 + $0x338] sm:$0xff] }
 0x29a   : > { %v2481_v37 = vpop.permute.xlu1 %2480  ;;  %v2476_v39 = vpop.permute.xlu0 %2475  ;;  %3746 = vmatpush1.bf16.msra.mxu0 %v3745_v50 }
 0x29b   : > { %v2747_v45 = vadd.f32 %v2481_v37, %v2299_v51  ;;  %v2748_v22 = vadd.f32 %v2481_v37, %v2300_v38  ;;  %v2745_v60 = vadd.f32 %v2476_v39, %v2297_v62  ;;  %v2746_v31 = vadd.f32 %v2476_v39, %v2298_v40  ;;  %v4062_v51 = vld [vmem:[%s4360_s12 + $0x328] sm:$0xff] }
 0x29d   : > { %v2875_v33 = vmax.f32 %v2747_v45, 0.0  ;;  %v2876_v21 = vmax.f32 %v2748_v22, 0.0  ;;  %v2873_v1 = vmax.f32 %v2745_v60, 0.0  ;;  %v2874_v6 = vmax.f32 %v2746_v31, 0.0 }
 0x29e   : > { %v2641_v17 = vpop.permute.xlu1 %2640  ;;  %v2636_v54 = vpop.permute.xlu0 %2635 }
 0x29f   : > { %v2811_v59 = vadd.f32 %v2641_v17, %v2363_v48  ;;  %v2812_v10 = vadd.f32 %v2641_v17, %v2364_v8  ;;  %v2809_v41 = vadd.f32 %v2636_v54, %v2361_v18  ;;  %v2810_v53 = vadd.f32 %v2636_v54, %v2362_v11  ;;  %v4065_v54 = vld [vmem:[%s4360_s12 + $0x140] sm:$0xff] }
 0x2a0   : > { %v3683_v56 = vpack.c.bf16 %v2876_v21, %v2874_v6  ;;  %v3685_v55 = vpack.c.bf16 %v2875_v33, %v2873_v1  ;;  %v4063_v33 = vld [vmem:[%s4360_s12 + $0x150] sm:$0xff]  ;;  %v7059_v21 = vld [vmem:[#allocation71_spill] sm:$0xff] }
 0x2a1   : > { %v2939_v30 = vmax.f32 %v2811_v59, 0.0  ;;  %v2940_v24 = vmax.f32 %v2812_v10, 0.0  ;;  %v2937_v58 = vmax.f32 %v2809_v41, 0.0  ;;  %v2938_v57 = vmax.f32 %v2810_v53, 0.0  ;;  %v4064_v6 = vld [vmem:[%s4360_s12 + $0x158] sm:$0xff]  ;;  %v7060_v59 = vld [vmem:[#allocation69_spill] sm:$0xff] }
 0x2a2   : > { %3684 = vmatprep.subr.bf16.mxu1 %v3683_v56  ;;  %v2203_v42 = vpop.permute.xlu1 %2202  ;;  %v2198_v7 = vpop.permute.xlu0 %2197  ;;  %v2307_v1 = vmul.f32 %v4063_v33, %v7059_v21  ;;  %v2308_v17 = vmul.f32 %v4064_v6, %v7059_v21  ;;  %v2305_v10 = vmul.f32 %v4065_v54, %v7060_v59  ;;  %v4066_v41 = vld [vmem:[%s4360_s12 + $0x148] sm:$0xff] }
 0x2a3   : > { %3686 = vmatpush1.bf16.msra.mxu1 %v3685_v55  ;;  %v3747_v25 = vpack.c.bf16 %v2940_v24, %v2938_v57  ;;  %v3749_v44 = vpack.c.bf16 %v2939_v30, %v2937_v58  ;;  %v2367_v36 = vmul.f32 %v4059_v47, %v2203_v42  ;;  %v2368_v50 = vmul.f32 %v4060_v13, %v2203_v42  ;;  %v4067_v42 = vld [vmem:[%s4360_s12 + $0x350] sm:$0xff] }
 0x2a4   : > { %v2365_v14 = vmul.f32 %v4061_v20, %v2198_v7  ;;  %v2366_v23 = vmul.f32 %v4062_v51, %v2198_v7  ;;  %v2306_v53 = vmul.f32 %v4066_v41, %v7060_v59 }
 0x2a5   : > { %3748 = vmatprep.subr.bf16.mxu0 %v3747_v25  ;;  %v4068_v25 = vld [vmem:[%s4360_s12 + $0x358] sm:$0xff] }
 0x2a6   : > { %v2491_v49 = vpop.permute.xlu1 %2490  ;;  %v2486_v34 = vpop.permute.xlu0 %2485  ;;  %3750 = vmatpush1.bf16.msra.mxu0 %v3749_v44 }
 0x2a7   : > { %v2751_v0 = vadd.f32 %v2491_v49, %v2303_v32  ;;  %v2752_v63 = vadd.f32 %v2491_v49, %v2304_v52  ;;  %v2749_v43 = vadd.f32 %v2486_v34, %v2301_v35  ;;  %v2750_v61 = vadd.f32 %v2486_v34, %v2302_v15  ;;  %v4069_v52 = vld [vmem:[%s4360_s12 + $0x340] sm:$0xff] }
 0x2a9   : > { %v2879_v38 = vmax.f32 %v2751_v0, 0.0  ;;  %v2880_v2 = vmax.f32 %v2752_v63, 0.0  ;;  %v2877_v12 = vmax.f32 %v2749_v43, 0.0  ;;  %v2878_v62 = vmax.f32 %v2750_v61, 0.0 }
 0x2aa   : > { %v2651_v28 = vpop.permute.xlu1 %2650  ;;  %v2646_v40 = vpop.permute.xlu0 %2645 }
 0x2ab   : > { %v2815_v37 = vadd.f32 %v2651_v28, %v2367_v36  ;;  %v2816_v39 = vadd.f32 %v2651_v28, %v2368_v50  ;;  %v2813_v45 = vadd.f32 %v2646_v40, %v2365_v14  ;;  %v2814_v22 = vadd.f32 %v2646_v40, %v2366_v23  ;;  %v4073_v40 = vld [vmem:[%s4360_s12 + $0x160] sm:$0xff] }
 0x2ac   : > { %v3687_v60 = vpack.c.bf16 %v2880_v2, %v2878_v62  ;;  %v3689_v31 = vpack.c.bf16 %v2879_v38, %v2877_v12  ;;  %v4071_v38 = vld [vmem:[%s4360_s12 + $0x170] sm:$0xff]  ;;  %v7061_v2 = vld [vmem:[#allocation76_spill] sm:$0xff]  ;;  %v4072_v62 = vld [vmem:[%s4360_s12 + $0x178] sm:$0xff] }
 0x2ad   : > { %v2943_v29 = vmax.f32 %v2815_v37, 0.0  ;;  %v2944_v48 = vmax.f32 %v2816_v39, 0.0  ;;  %v2941_v3 = vmax.f32 %v2813_v45, 0.0  ;;  %v2942_v8 = vmax.f32 %v2814_v22, 0.0  ;;  %v7062_v37 = vld [vmem:[#allocation73_spill] sm:$0xff] }
 0x2ae   : > { %3688 = vmatprep.subr.bf16.mxu1 %v3687_v60  ;;  %v2213_v19 = vpop.permute.xlu1 %2212  ;;  %v2208_v18 = vpop.permute.xlu0 %2207  ;;  %v2311_v12 = vmul.f32 %v4071_v38, %v7061_v2  ;;  %v2312_v28 = vmul.f32 %v4072_v62, %v7061_v2  ;;  %v2309_v39 = vmul.f32 %v4073_v40, %v7062_v37  ;;  %v4074_v45 = vld [vmem:[%s4360_s12 + $0x168] sm:$0xff]  ;;  %v4085_v2 = vld [vmem:[%s4360_s12 + $0x390] sm:$0xff]  ;;  %v4086_v62 = vld [vmem:[%s4360_s12 + $0x398] sm:$0xff] }
 0x2af   : > { %3690 = vmatpush1.bf16.msra.mxu1 %v3689_v31  ;;  %v3751_v46 = vpack.c.bf16 %v2944_v48, %v2942_v8  ;;  %v3753_v11 = vpack.c.bf16 %v2943_v29, %v2941_v3  ;;  %v2371_v7 = vmul.f32 %v4067_v42, %v2213_v19  ;;  %v2372_v44 = vmul.f32 %v4068_v25, %v2213_v19  ;;  %v4075_v19 = vld [vmem:[%s4360_s12 + $0x370] sm:$0xff] }
 0x2b0   : > { %v2369_v5 = vmul.f32 %v4069_v52, %v2208_v18  ;;  %v2370_v35 = vmul.f32 %v4070_v27, %v2208_v18  ;;  %v2310_v22 = vmul.f32 %v4074_v45, %v7062_v37  ;;  %v4079_v27 = vld [vmem:[%s4360_s12 + $0x180] sm:$0xff] }
 0x2b1   : > { %3752 = vmatprep.subr.bf16.mxu0 %v3751_v46  ;;  %v4076_v46 = vld [vmem:[%s4360_s12 + $0x378] sm:$0xff] }
 0x2b2   : > { %v2501_v56 = vpop.permute.xlu1 %2500  ;;  %v2496_v55 = vpop.permute.xlu0 %2495  ;;  %3754 = vmatpush1.bf16.msra.mxu0 %v3753_v11 }
 0x2b3   : > { %v2755_v30 = vadd.f32 %v2501_v56, %v2307_v1  ;;  %v2756_v24 = vadd.f32 %v2501_v56, %v2308_v17  ;;  %v2753_v58 = vadd.f32 %v2496_v55, %v2305_v10  ;;  %v2754_v57 = vadd.f32 %v2496_v55, %v2306_v53  ;;  %v4077_v1 = vld [vmem:[%s4360_s12 + $0x360] sm:$0xff]  ;;  %v4078_v17 = vld [vmem:[%s4360_s12 + $0x368] sm:$0xff] }
 0x2b5   : > { %v2883_v16 = vmax.f32 %v2755_v30, 0.0  ;;  %v2884_v4 = vmax.f32 %v2756_v24, 0.0  ;;  %v2881_v32 = vmax.f32 %v2753_v58, 0.0  ;;  %v2882_v26 = vmax.f32 %v2754_v57, 0.0 }
 0x2b6   : > { %v2661_v9 = vpop.permute.xlu1 %2660  ;;  %v2656_v34 = vpop.permute.xlu0 %2655 }
 0x2b7   : > { %v2819_v15 = vadd.f32 %v2661_v9, %v2371_v7  ;;  %v2820_v49 = vadd.f32 %v2661_v9, %v2372_v44  ;;  %v3691_v0 = vpack.c.bf16 %v2884_v4, %v2882_v26  ;;  %v3693_v63 = vpack.c.bf16 %v2883_v16, %v2881_v32 }
 0x2b8   : > { %v2817_v43 = vadd.f32 %v2656_v34, %v2369_v5  ;;  %v2818_v61 = vadd.f32 %v2656_v34, %v2370_v35  ;;  %v7063_v35 = vld [vmem:[#allocation77_spill] sm:$0xff]  ;;  %v4081_v34 = vld [vmem:[%s4360_s12 + $0x190] sm:$0xff] }
 0x2b9   : > { %v2947_v47 = vmax.f32 %v2819_v15, 0.0  ;;  %v2948_v36 = vmax.f32 %v2820_v49, 0.0  ;;  %3692 = vmatprep.subr.bf16.mxu1 %v3691_v0  ;;  %v2313_v9 = vmul.f32 %v4079_v27, %v7063_v35  ;;  %v4080_v15 = vld [vmem:[%s4360_s12 + $0x188] sm:$0xff] }
 0x2ba   : > { %v2945_v13 = vmax.f32 %v2817_v43, 0.0  ;;  %v2946_v50 = vmax.f32 %v2818_v61, 0.0  ;;  %v2223_v20 = vpop.permute.xlu1 %2222  ;;  %3694 = vmatpush1.bf16.msra.mxu1 %v3693_v63  ;;  %v2314_v49 = vmul.f32 %v4080_v15, %v7063_v35  ;;  %v4082_v63 = vld [vmem:[%s4360_s12 + $0x198] sm:$0xff] }
 0x2bb   : > { %v2218_v14 = vpop.permute.xlu0 %2217  ;;  %v2375_v18 = vmul.f32 %v4075_v19, %v2223_v20  ;;  %v2376_v11 = vmul.f32 %v4076_v46, %v2223_v20  ;;  %v4094_v35 = vld [vmem:[%s4360_s12 + $0x3b8] sm:$0xff] }
 0x2bc   : > { %v3755_v51 = vpack.c.bf16 %v2948_v36, %v2946_v50  ;;  %v3757_v23 = vpack.c.bf16 %v2947_v47, %v2945_v13  ;;  %v2373_v6 = vmul.f32 %v4077_v1, %v2218_v14  ;;  %v2374_v54 = vmul.f32 %v4078_v17, %v2218_v14  ;;  %v4083_v14 = vld [vmem:[%s4360_s12 + $0x380] sm:$0xff] }
 0x2be   : > { %3756 = vmatprep.subr.bf16.mxu0 %v3755_v51  ;;  %v2511_v60 = vpop.permute.xlu1 %2510 }
 0x2bf   : > { %v2759_v31 = vadd.f32 %v2511_v60, %v2311_v12  ;;  %v2760_v29 = vadd.f32 %v2511_v60, %v2312_v28  ;;  %3758 = vmatpush1.bf16.msra.mxu0 %v3757_v23  ;;  %v2506_v48 = vpop.permute.xlu0 %2505  ;;  %v4084_v23 = vld [vmem:[%s4360_s12 + $0x388] sm:$0xff] }
 0x2c0   : > { %v2757_v3 = vadd.f32 %v2506_v48, %v2309_v39  ;;  %v2758_v8 = vadd.f32 %v2506_v48, %v2310_v22 }
 0x2c1   : > { %v2887_v33 = vmax.f32 %v2759_v31, 0.0  ;;  %v2888_v21 = vmax.f32 %v2760_v29, 0.0 }
 0x2c2   : > { %v2885_v59 = vmax.f32 %v2757_v3, 0.0  ;;  %v2886_v10 = vmax.f32 %v2758_v8, 0.0  ;;  %v2671_v41 = vpop.permute.xlu1 %2670 }
 0x2c3   : > { %v2823_v53 = vadd.f32 %v2671_v41, %v2375_v18  ;;  %v2824_v56 = vadd.f32 %v2671_v41, %v2376_v11  ;;  %v2666_v55 = vpop.permute.xlu0 %2665 }
 0x2c4   : > { %v2821_v30 = vadd.f32 %v2666_v55, %v2373_v6  ;;  %v2822_v24 = vadd.f32 %v2666_v55, %v2374_v54  ;;  %v3695_v58 = vpack.c.bf16 %v2888_v21, %v2886_v10  ;;  %v3697_v57 = vpack.c.bf16 %v2887_v33, %v2885_v59  ;;  %v4087_v10 = vld [vmem:[%s4360_s12 + $0x1a0] sm:$0xff]  ;;  %v4089_v55 = vld [vmem:[%s4360_s12 + $0x1b0] sm:$0xff] }
 0x2c5   : > { %v2951_v42 = vmax.f32 %v2823_v53, 0.0  ;;  %v2952_v7 = vmax.f32 %v2824_v56, 0.0  ;;  %v4088_v53 = vld [vmem:[%s4360_s12 + $0x1a8] sm:$0xff] }
 0x2c6   : > { %v2949_v25 = vmax.f32 %v2821_v30, 0.0  ;;  %v2950_v44 = vmax.f32 %v2822_v24, 0.0  ;;  %3696 = vmatprep.subr.bf16.mxu1 %v3695_v58  ;;  %v4090_v24 = vld [vmem:[%s4360_s12 + $0x1b8] sm:$0xff] }
 0x2c7   : > { %v2228_v16 = vpop.permute.xlu1 %2227  ;;  %3698 = vmatpush1.bf16.msra.mxu1 %v3697_v57  ;;  %v2073_v4 = vpop.permute.xlu0 %2072 }
 0x2c8   : > { %v3759_v32 = vpack.c.bf16 %v2952_v7, %v2950_v44  ;;  %v3761_v26 = vpack.c.bf16 %v2951_v42, %v2949_v25  ;;  %v2315_v0 = vmul.f32 %v4081_v34, %v2073_v4  ;;  %v2316_v43 = vmul.f32 %v4082_v63, %v2073_v4  ;;  %v4091_v4 = vld [vmem:[%s4360_s12 + $0x3a0] sm:$0xff] }
 0x2c9   : > { %v2377_v51 = vmul.f32 %v4083_v14, %v2228_v16  ;;  %v2378_v38 = vmul.f32 %v4084_v23, %v2228_v16 }
 0x2ca   : > { %3760 = vmatprep.subr.bf16.mxu0 %v3759_v32 }
 0x2cb   : > { %v2516_v52 = vpop.permute.xlu1 %2515  ;;  %v2233_v5 = vpop.permute.xlu0 %2232  ;;  %3762 = vmatpush1.bf16.msra.mxu0 %v3761_v26  ;;  %v4092_v26 = vld [vmem:[%s4360_s12 + $0x3a8] sm:$0xff] }
 0x2cc   : > { %v2761_v61 = vadd.f32 %v2516_v52, %v2313_v9  ;;  %v2762_v47 = vadd.f32 %v2516_v52, %v2314_v49  ;;  %v2379_v12 = vmul.f32 %v4085_v2, %v2233_v5  ;;  %v2380_v28 = vmul.f32 %v4086_v62, %v2233_v5  ;;  %v4093_v5 = vld [vmem:[%s4360_s12 + $0x3b0] sm:$0xff] }
 0x2ce   : > { %v2889_v39 = vmax.f32 %v2761_v61, 0.0  ;;  %v2890_v45 = vmax.f32 %v2762_v47, 0.0 }
 0x2cf   : > { %v2676_v36 = vpop.permute.xlu1 %2675  ;;  %v2521_v13 = vpop.permute.xlu0 %2520 }
 0x2d0   : > { %v2763_v50 = vadd.f32 %v2521_v13, %v2315_v0  ;;  %v2764_v20 = vadd.f32 %v2521_v13, %v2316_v43  ;;  %v2825_v22 = vadd.f32 %v2676_v36, %v2377_v51  ;;  %v2826_v60 = vadd.f32 %v2676_v36, %v2378_v38 }
 0x2d2   : > { %v2891_v40 = vmax.f32 %v2763_v50, 0.0  ;;  %v2892_v37 = vmax.f32 %v2764_v20, 0.0  ;;  %v2953_v11 = vmax.f32 %v2825_v22, 0.0  ;;  %v2954_v33 = vmax.f32 %v2826_v60, 0.0  ;;  %v4096_v22 = vld [vmem:[%s4360_s12 + $0x1c8] sm:$0xff] }
 0x2d3   : > { %v2078_v31 = vpop.permute.xlu1 %2077  ;;  %v2681_v29 = vpop.permute.xlu0 %2680 }
 0x2d4   : > { %v2827_v48 = vadd.f32 %v2681_v29, %v2379_v12  ;;  %v2828_v3 = vadd.f32 %v2681_v29, %v2380_v28  ;;  %v3699_v8 = vpack.c.bf16 %v2892_v37, %v2890_v45  ;;  %v3701_v19 = vpack.c.bf16 %v2891_v40, %v2889_v39  ;;  %v4095_v39 = vld [vmem:[%s4360_s12 + $0x1c0] sm:$0xff] }
 0x2d5   : > { %v2317_v41 = vmul.f32 %v4087_v10, %v2078_v31  ;;  %v2318_v56 = vmul.f32 %v4088_v53, %v2078_v31  ;;  %v4097_v31 = vld [vmem:[%s4360_s12 + $0x1d0] sm:$0xff]  ;;  %v4102_v10 = vld [vmem:[%s4360_s12 + $0x3d8] sm:$0xff] }
 0x2d6   : > { %v2955_v18 = vmax.f32 %v2827_v48, 0.0  ;;  %v2956_v46 = vmax.f32 %v2828_v3, 0.0  ;;  %3700 = vmatprep.subr.bf16.mxu1 %v3699_v8  ;;  %v4098_v48 = vld [vmem:[%s4360_s12 + $0x1d8] sm:$0xff] }
 0x2d7   : > { %v2238_v21 = vpop.permute.xlu1 %2237  ;;  %v2083_v1 = vpop.permute.xlu0 %2082  ;;  %3702 = vmatpush1.bf16.msra.mxu1 %v3701_v19 }
 0x2d8   : > { %v3763_v6 = vpack.c.bf16 %v2956_v46, %v2954_v33  ;;  %v3765_v17 = vpack.c.bf16 %v2955_v18, %v2953_v11  ;;  %v2319_v30 = vmul.f32 %v4089_v55, %v2083_v1  ;;  %v2320_v58 = vmul.f32 %v4090_v24, %v2083_v1 }
 0x2d9   : > { %v2381_v32 = vmul.f32 %v4091_v4, %v2238_v21  ;;  %v2382_v52 = vmul.f32 %v4092_v26, %v2238_v21  ;;  %v4099_v21 = vld [vmem:[%s4360_s12 + $0x3c0] sm:$0xff] }
 0x2da   : > { %3764 = vmatprep.subr.bf16.mxu0 %v3763_v6  ;;  %v4100_v6 = vld [vmem:[%s4360_s12 + $0x3c8] sm:$0xff] }
 0x2db   : > { %v2526_v54 = vpop.permute.xlu1 %2525  ;;  %v2243_v59 = vpop.permute.xlu0 %2242  ;;  %3766 = vmatpush1.bf16.msra.mxu0 %v3765_v17 }
 0x2dc   : > { %v2765_v57 = vadd.f32 %v2526_v54, %v2317_v41  ;;  %v2766_v42 = vadd.f32 %v2526_v54, %v2318_v56  ;;  %v2383_v27 = vmul.f32 %v4093_v5, %v2243_v59  ;;  %v2384_v9 = vmul.f32 %v4094_v35, %v2243_v59  ;;  %v4101_v54 = vld [vmem:[%s4360_s12 + $0x3d0] sm:$0xff] }
 0x2de   : > { %v2893_v34 = vmax.f32 %v2765_v57, 0.0  ;;  %v2894_v0 = vmax.f32 %v2766_v42, 0.0 }
 0x2df   : > { %v2686_v7 = vpop.permute.xlu1 %2685  ;;  %v2531_v25 = vpop.permute.xlu0 %2530 }
 0x2e0   : > { %v2767_v44 = vadd.f32 %v2531_v25, %v2319_v30  ;;  %v2768_v16 = vadd.f32 %v2531_v25, %v2320_v58  ;;  %v2829_v63 = vadd.f32 %v2686_v7, %v2381_v32  ;;  %v2830_v43 = vadd.f32 %v2686_v7, %v2382_v52 }
 0x2e2   : > { %v2895_v15 = vmax.f32 %v2767_v44, 0.0  ;;  %v2896_v49 = vmax.f32 %v2768_v16, 0.0  ;;  %v2957_v23 = vmax.f32 %v2829_v63, 0.0  ;;  %v2958_v38 = vmax.f32 %v2830_v43, 0.0 }
 0x2e3   : > { %v2088_v61 = vpop.permute.xlu1 %2087  ;;  %v2691_v47 = vpop.permute.xlu0 %2690 }
 0x2e4   : > { %v2831_v36 = vadd.f32 %v2691_v47, %v2383_v27  ;;  %v2832_v13 = vadd.f32 %v2691_v47, %v2384_v9  ;;  %v3703_v50 = vpack.c.bf16 %v2896_v49, %v2894_v0  ;;  %v3705_v20 = vpack.c.bf16 %v2895_v15, %v2893_v34  ;;  %v4103_v15 = vld [vmem:[%s4360_s12 + $0x1e0] sm:$0xff]  ;;  %v4104_v34 = vld [vmem:[%s4360_s12 + $0x1e8] sm:$0xff] }
 0x2e5   : > { %v2321_v45 = vmul.f32 %v4095_v39, %v2088_v61  ;;  %v2322_v60 = vmul.f32 %v4096_v22, %v2088_v61  ;;  %v4109_v39 = vld [vmem:[%s4360_s12 + $0x3f0] sm:$0xff]  ;;  %v4110_v22 = vld [vmem:[%s4360_s12 + $0x3f8] sm:$0xff] }
 0x2e6   : > { %v2959_v14 = vmax.f32 %v2831_v36, 0.0  ;;  %v2960_v51 = vmax.f32 %v2832_v13, 0.0  ;;  %3704 = vmatprep.subr.bf16.mxu1 %v3703_v50  ;;  %v4105_v36 = vld [vmem:[%s4360_s12 + $0x1f0] sm:$0xff]  ;;  %v4106_v50 = vld [vmem:[%s4360_s12 + $0x1f8] sm:$0xff] }
 0x2e7   : > { %v2248_v2 = vpop.permute.xlu1 %2247  ;;  %v2093_v12 = vpop.permute.xlu0 %2092  ;;  %3706 = vmatpush1.bf16.msra.mxu1 %v3705_v20 }
 0x2e8   : > { %v3767_v62 = vpack.c.bf16 %v2960_v51, %v2958_v38  ;;  %v3769_v28 = vpack.c.bf16 %v2959_v14, %v2957_v23  ;;  %v2323_v29 = vmul.f32 %v4097_v31, %v2093_v12  ;;  %v2324_v3 = vmul.f32 %v4098_v48, %v2093_v12  ;;  %v4107_v23 = vld [vmem:[%s4360_s12 + $0x3e0] sm:$0xff] }
 0x2e9   : > { %v2385_v1 = vmul.f32 %v4099_v21, %v2248_v2  ;;  %v2386_v17 = vmul.f32 %v4100_v6, %v2248_v2  ;;  %v4108_v2 = vld [vmem:[%s4360_s12 + $0x3e8] sm:$0xff] }
 0x2ea   : > { %3768 = vmatprep.subr.bf16.mxu0 %v3767_v62 }
 0x2eb   : > { %v2536_v40 = vpop.permute.xlu1 %2535  ;;  %v2253_v37 = vpop.permute.xlu0 %2252  ;;  %3770 = vmatpush1.bf16.msra.mxu0 %v3769_v28 }
 0x2ec   : > { %v2769_v8 = vadd.f32 %v2536_v40, %v2321_v45  ;;  %v2770_v19 = vadd.f32 %v2536_v40, %v2322_v60  ;;  %v2387_v59 = vmul.f32 %v4101_v54, %v2253_v37  ;;  %v2388_v41 = vmul.f32 %v4102_v10, %v2253_v37  ;;  %v3006_v10 = vld [vmem:[%s4372_s25 + $0x28] sm:$0xff] }
 0x2ee   : > { %v2897_v55 = vmax.f32 %v2769_v8, 0.0  ;;  %v2898_v30 = vmax.f32 %v2770_v19, 0.0 }
 0x2ef   : > { %v2696_v18 = vpop.permute.xlu1 %2695  ;;  %v2541_v46 = vpop.permute.xlu0 %2540 }
 0x2f0   : > { %v2771_v11 = vadd.f32 %v2541_v46, %v2323_v29  ;;  %v2772_v33 = vadd.f32 %v2541_v46, %v2324_v3  ;;  %v2833_v24 = vadd.f32 %v2696_v18, %v2385_v1  ;;  %v2834_v58 = vadd.f32 %v2696_v18, %v2386_v17  ;;  %v3001_v17 = vld [vmem:[%s4372_s25] sm:$0xff] }
 0x2f2   : > { %v2899_v53 = vmax.f32 %v2771_v11, 0.0  ;;  %v2900_v56 = vmax.f32 %v2772_v33, 0.0  ;;  %v2961_v26 = vmax.f32 %v2833_v24, 0.0  ;;  %v2962_v52 = vmax.f32 %v2834_v58, 0.0  ;;  %v3009_v24 = vld [vmem:[%s4372_s25 + $0x40] sm:$0xff]  ;;  %v3012_v58 = vld [vmem:[%s4372_s25 + $0x58] sm:$0xff] }
 0x2f3   : > { %v2098_v57 = vpop.permute.xlu1 %2097  ;;  %v2701_v42 = vpop.permute.xlu0 %2700 }
 0x2f4   : > { %v2835_v7 = vadd.f32 %v2701_v42, %v2387_v59  ;;  %v2836_v25 = vadd.f32 %v2701_v42, %v2388_v41  ;;  %v3707_v44 = vpack.c.bf16 %v2900_v56, %v2898_v30  ;;  %v3709_v16 = vpack.c.bf16 %v2899_v53, %v2897_v55  ;;  %v3003_v41 = vld [vmem:[%s4372_s25 + $0x10] sm:$0xff]  ;;  %v3005_v53 = vld [vmem:[%s4372_s25 + $0x20] sm:$0xff]  ;;  %v3008_v56 = vld [vmem:[%s4372_s25 + $0x38] sm:$0xff] }
 0x2f5   : > { %v2325_v49 = vmul.f32 %v4103_v15, %v2098_v57  ;;  %v2326_v0 = vmul.f32 %v4104_v34, %v2098_v57  ;;  %v3010_v55 = vld [vmem:[%s4372_s25 + $0x48] sm:$0xff]  ;;  %v3007_v30 = vld [vmem:[%s4372_s25 + $0x30] sm:$0xff]  ;;  %v3025_v15 = vld [vmem:[%s4372_s25 + $0xc0] sm:$0xff] }
 0x2f6   : > { %v2963_v4 = vmax.f32 %v2835_v7, 0.0  ;;  %v2964_v32 = vmax.f32 %v2836_v25, 0.0  ;;  %3708 = vmatprep.subr.bf16.mxu1 %v3707_v44  ;;  %v3014_v57 = vld [vmem:[%s4372_s25 + $0x68] sm:$0xff]  ;;  %v3011_v42 = vld [vmem:[%s4372_s25 + $0x50] sm:$0xff]  ;;  %v3013_v7 = vld [vmem:[%s4372_s25 + $0x60] sm:$0xff] }
 0x2f7   : > { %v2258_v5 = vpop.permute.xlu1 %2257  ;;  %v2103_v27 = vpop.permute.xlu0 %2102  ;;  %3710 = vmatpush1.bf16.msra.mxu1 %v3709_v16  ;;  %v3016_v25 = vld [vmem:[%s4372_s25 + $0x78] sm:$0xff]  ;;  %v3018_v44 = vld [vmem:[%s4372_s25 + $0x88] sm:$0xff]  ;;  %v3015_v16 = vld [vmem:[%s4372_s25 + $0x70] sm:$0xff] }
 0x2f8   : > { %v3771_v35 = vpack.c.bf16 %v2964_v32, %v2962_v52  ;;  %v3773_v9 = vpack.c.bf16 %v2963_v4, %v2961_v26  ;;  %v2327_v13 = vmul.f32 %v4105_v36, %v2103_v27  ;;  %v2328_v20 = vmul.f32 %v4106_v50, %v2103_v27  ;;  %v3017_v4 = vld [vmem:[%s4372_s25 + $0x80] sm:$0xff]  ;;  %v3020_v32 = vld [vmem:[%s4372_s25 + $0x98] sm:$0xff]  ;;  %v3022_v26 = vld [vmem:[%s4372_s25 + $0xa8] sm:$0xff] }
 0x2f9   : > { %v2389_v38 = vmul.f32 %v4107_v23, %v2258_v5  ;;  %v2390_v12 = vmul.f32 %v4108_v2, %v2258_v5  ;;  %v3019_v52 = vld [vmem:[%s4372_s25 + $0x90] sm:$0xff]  ;;  %v3021_v5 = vld [vmem:[%s4372_s25 + $0xa0] sm:$0xff]  ;;  %v3024_v27 = vld [vmem:[%s4372_s25 + $0xb8] sm:$0xff] }
 0x2fa   : > { %3772 = vmatprep.subr.bf16.mxu0 %v3771_v35  ;;  %v3026_v35 = vld [vmem:[%s4372_s25 + $0xc8] sm:$0xff]  ;;  %v3033_v36 = vld [vmem:[%s4372_s25 + $0x100] sm:$0xff] }
 0x2fb   : > { %v2546_v63 = vpop.permute.xlu1 %2545  ;;  %v2263_v43 = vpop.permute.xlu0 %2262  ;;  %3774 = vmatpush1.bf16.msra.mxu0 %v3773_v9  ;;  %v3023_v9 = vld [vmem:[%s4372_s25 + $0xb0] sm:$0xff]  ;;  %v3030_v34 = vld [vmem:[%s4372_s25 + $0xe8] sm:$0xff]  ;;  %v3041_v2 = vld [vmem:[%s4372_s25 + $0x140] sm:$0xff] }
 0x2fc   : > { %v2773_v61 = vadd.f32 %v2546_v63, %v2325_v49  ;;  %v2774_v47 = vadd.f32 %v2546_v63, %v2326_v0  ;;  %v2391_v45 = vmul.f32 %v4109_v39, %v2263_v43  ;;  %v2392_v60 = vmul.f32 %v4110_v22, %v2263_v43  ;;  %v3028_v49 = vld [vmem:[%s4372_s25 + $0xd8] sm:$0xff]  ;;  %v3027_v0 = vld [vmem:[%s4372_s25 + $0xd0] sm:$0xff]  ;;  %v3029_v63 = vld [vmem:[%s4372_s25 + $0xe0] sm:$0xff] }
 0x2fd   : > { %v3032_v43 = vld [vmem:[%s4372_s25 + $0xf8] sm:$0xff]  ;;  %v3038_v50 = vld [vmem:[%s4372_s25 + $0x128] sm:$0xff]  ;;  %v3049_v22 = vld [vmem:[%s4372_s25 + $0x180] sm:$0xff] }
 0x2fe   : > { %v2901_v40 = vmax.f32 %v2773_v61, 0.0  ;;  %v2902_v37 = vmax.f32 %v2774_v47, 0.0  ;;  %v3034_v61 = vld [vmem:[%s4372_s25 + $0x108] sm:$0xff]  ;;  %v3031_v47 = vld [vmem:[%s4372_s25 + $0xf0] sm:$0xff] }
 0x2ff   : > { %v2706_v14 = vpop.permute.xlu1 %2705  ;;  %v2551_v51 = vpop.permute.xlu0 %2550  ;;  %v3042_v23 = vld [vmem:[%s4372_s25 + $0x148] sm:$0xff] }
 0x300   : > { %v2775_v62 = vadd.f32 %v2551_v51, %v2327_v13  ;;  %v2776_v28 = vadd.f32 %v2551_v51, %v2328_v20  ;;  %v2837_v31 = vadd.f32 %v2706_v14, %v2389_v38  ;;  %v2838_v29 = vadd.f32 %v2706_v14, %v2390_v12  ;;  %v3036_v13 = vld [vmem:[%s4372_s25 + $0x118] sm:$0xff]  ;;  %v3035_v20 = vld [vmem:[%s4372_s25 + $0x110] sm:$0xff]  ;;  %v3037_v14 = vld [vmem:[%s4372_s25 + $0x120] sm:$0xff] }
 0x301   : > { %v3040_v51 = vld [vmem:[%s4372_s25 + $0x138] sm:$0xff]  ;;  %v3039_v38 = vld [vmem:[%s4372_s25 + $0x130] sm:$0xff]  ;;  %v3050_v39 = vld [vmem:[%s4372_s25 + $0x188] sm:$0xff] }
 0x302   : > { %v2903_v48 = vmax.f32 %v2775_v62, 0.0  ;;  %v2904_v3 = vmax.f32 %v2776_v28, 0.0  ;;  %v2965_v33 = vmax.f32 %v2837_v31, 0.0  ;;  %v2966_v21 = vmax.f32 %v2838_v29, 0.0  ;;  %v3044_v12 = vld [vmem:[%s4372_s25 + $0x158] sm:$0xff]  ;;  %v3046_v62 = vld [vmem:[%s4372_s25 + $0x168] sm:$0xff] }
 0x303   : > { %v2711_v8 = vpop.permute.xlu0 %2710  ;;  %v3043_v28 = vld [vmem:[%s4372_s25 + $0x150] sm:$0xff]  ;;  %v3054_v31 = vld [vmem:[%s4372_s25 + $0x1a8] sm:$0xff] }
 0x304   : > { %v2839_v19 = vadd.f32 %v2711_v8, %v2391_v45  ;;  %v2840_v18 = vadd.f32 %v2711_v8, %v2392_v60  ;;  %v3711_v46 = vpack.c.bf16 %v2904_v3, %v2902_v37  ;;  %v3713_v11 = vpack.c.bf16 %v2903_v48, %v2901_v40  ;;  %v3045_v40 = vld [vmem:[%s4372_s25 + $0x160] sm:$0xff]  ;;  %v3048_v37 = vld [vmem:[%s4372_s25 + $0x178] sm:$0xff]  ;;  %v3047_v45 = vld [vmem:[%s4372_s25 + $0x170] sm:$0xff] }
 0x305   : > { %v3052_v60 = vld [vmem:[%s4372_s25 + $0x198] sm:$0xff]  ;;  %v3051_v29 = vld [vmem:[%s4372_s25 + $0x190] sm:$0xff]  ;;  %v3053_v48 = vld [vmem:[%s4372_s25 + $0x1a0] sm:$0xff] }
 0x306   : > { %v2967_v1 = vmax.f32 %v2839_v19, 0.0  ;;  %v2968_v6 = vmax.f32 %v2840_v18, 0.0  ;;  %3712 = vmatprep.subr.bf16.mxu1 %v3711_v46  ;;  %v3056_v3 = vld [vmem:[%s4372_s25 + $0x1b8] sm:$0xff]  ;;  %v3058_v8 = vld [vmem:[%s4372_s25 + $0x1c8] sm:$0xff]  ;;  %v3055_v19 = vld [vmem:[%s4372_s25 + $0x1b0] sm:$0xff] }
 0x307   : > { %3714 = vmatpush1.bf16.msra.mxu1 %v3713_v11  ;;  %v3057_v18 = vld [vmem:[%s4372_s25 + $0x1c0] sm:$0xff]  ;;  %v3060_v46 = vld [vmem:[%s4372_s25 + $0x1d8] sm:$0xff]  ;;  %v3062_v11 = vld [vmem:[%s4372_s25 + $0x1e8] sm:$0xff] }
 0x308   : > { %v3775_v54 = vpack.c.bf16 %v2968_v6, %v2966_v21  ;;  %v3777_v59 = vpack.c.bf16 %v2967_v1, %v2965_v33  ;;  %v3059_v33 = vld [vmem:[%s4372_s25 + $0x1d0] sm:$0xff]  ;;  %v3061_v21 = vld [vmem:[%s4372_s25 + $0x1e0] sm:$0xff]  ;;  %v3064_v1 = vld [vmem:[%s4372_s25 + $0x1f8] sm:$0xff] }
 0x309   : > { %v3063_v6 = vld [vmem:[%s4372_s25 + $0x1f0] sm:$0xff] }
 0x30a   : > { %3776 = vmatprep.subr.bf16.mxu0 %v3775_v54  ;;  %3130 = vmatmul.mubr.f32.vlgmr.msra.gmra.mrb[0].mxu1 %v3001_v17 }
 0x30b   : > { %3778 = vmatpush1.bf16.msra.mxu0 %v3777_v59  ;;  %3135 = vmatprep.mubr.f32.mxu1 %v3006_v10  ;;  %v2969_v59 = vld [vmem:[#allocation2] sm:$0xff] }
 0x30e   : > { %3291 = vmatmul.mubr.f32.vlgmr.msra.gmra.mrb[0].mxu0 %v3003_v41  ;;  %3136 = vmatmul.mubr.f32.gmra.mrb[2].mxu1 %v3005_v53 }
 0x30f   : > { %3296 = vmatprep.mubr.f32.mxu0 %v3008_v56  ;;  %3141 = vmatprep.mubr.f32.mxu1 %v3010_v55  ;;  %v2970_v56 = vld [vmem:[#allocation2 + $0x8] sm:$0xff] }
 0x312   : > { %3297 = vmatmul.mubr.f32.gmra.mrb[2].mxu0 %v3007_v30  ;;  %3142 = vmatmul.mubr.f32.gmra.mrb[4].mxu1 %v3009_v24 }
 0x313   : > { %3302 = vmatprep.mubr.f32.mxu0 %v3012_v58  ;;  %3147 = vmatprep.mubr.f32.mxu1 %v3014_v57 }
 0x316   : > { %3303 = vmatmul.mubr.f32.gmra.mrb[4].mxu0 %v3011_v42  ;;  %3148 = vmatmul.mubr.f32.gmra.mrb[6].mxu1 %v3013_v7  ;;  %v2971_v42 = vld [vmem:[#allocation2 + $0x10] sm:$0xff] }
 0x317   : > { %3308 = vmatprep.mubr.f32.mxu0 %v3016_v25  ;;  %3153 = vmatprep.mubr.f32.mxu1 %v3018_v44 }
 0x31a   : > { %3309 = vmatmul.mubr.f32.gmra.mrb[6].mxu0 %v3015_v16  ;;  %3154 = vmatmul.mubr.f32.gmra.mrb[8].mxu1 %v3017_v4  ;;  %v2972_v16 = vld [vmem:[#allocation2 + $0x18] sm:$0xff] }
 0x31b   : > { %3314 = vmatprep.mubr.f32.mxu0 %v3020_v32  ;;  %3159 = vmatprep.mubr.f32.mxu1 %v3022_v26 }
 0x31e   : > { %3315 = vmatmul.mubr.f32.gmra.mrb[8].mxu0 %v3019_v52  ;;  %3160 = vmatmul.mubr.f32.gmra.mrb[10].mxu1 %v3021_v5 }
 0x31f   : > { %3320 = vmatprep.mubr.f32.mxu0 %v3024_v27  ;;  %3165 = vmatprep.mubr.f32.mxu1 %v3026_v35  ;;  %v2973_v27 = vld [vmem:[#allocation2 + $0x20] sm:$0xff] }
 0x322   : > { %3321 = vmatmul.mubr.f32.gmra.mrb[10].mxu0 %v3023_v9  ;;  %3166 = vmatmul.mubr.f32.gmra.mrb[12].mxu1 %v3025_v15 }
 0x323   : > { %3326 = vmatprep.mubr.f32.mxu0 %v3028_v49  ;;  %3171 = vmatprep.mubr.f32.mxu1 %v3030_v34  ;;  %v2974_v49 = vld [vmem:[#allocation2 + $0x28] sm:$0xff] }
 0x326   : > { %3327 = vmatmul.mubr.f32.gmra.mrb[12].mxu0 %v3027_v0  ;;  %3172 = vmatmul.mubr.f32.gmra.mrb[14].mxu1 %v3029_v63 }
 0x327   : > { %3332 = vmatprep.mubr.f32.mxu0 %v3032_v43  ;;  %3177 = vmatprep.mubr.f32.mxu1 %v3034_v61 }
 0x32a   : > { %3333 = vmatmul.mubr.f32.gmra.mrb[14].mxu0 %v3031_v47  ;;  %3178 = vmatmul.mubr.f32.gmra.mrb[16].mxu1 %v3033_v36  ;;  %v2975_v47 = vld [vmem:[#allocation2 + $0x30] sm:$0xff] }
 0x32b   : > { %3338 = vmatprep.mubr.f32.mxu0 %v3036_v13  ;;  %3183 = vmatprep.mubr.f32.mxu1 %v3038_v50 }
 0x32e   : > { %3339 = vmatmul.mubr.f32.gmra.mrb[16].mxu0 %v3035_v20  ;;  %3184 = vmatmul.mubr.f32.gmra.mrb[18].mxu1 %v3037_v14  ;;  %v2976_v20 = vld [vmem:[#allocation2 + $0x38] sm:$0xff] }
 0x32f   : > { %3344 = vmatprep.mubr.f32.mxu0 %v3040_v51  ;;  %3189 = vmatprep.mubr.f32.mxu1 %v3042_v23 }
 0x332   : > { %3345 = vmatmul.mubr.f32.gmra.mrb[18].mxu0 %v3039_v38  ;;  %3190 = vmatmul.mubr.f32.gmra.mrb[20].mxu1 %v3041_v2 }
 0x333   : > { %3350 = vmatprep.mubr.f32.mxu0 %v3044_v12  ;;  %3195 = vmatprep.mubr.f32.mxu1 %v3046_v62  ;;  %v2977_v12 = vld [vmem:[#allocation2 + $0x40] sm:$0xff] }
 0x336   : > { %3351 = vmatmul.mubr.f32.gmra.mrb[20].mxu0 %v3043_v28  ;;  %3196 = vmatmul.mubr.f32.gmra.mrb[22].mxu1 %v3045_v40 }
 0x337   : > { %3356 = vmatprep.mubr.f32.mxu0 %v3048_v37  ;;  %3201 = vmatprep.mubr.f32.mxu1 %v3050_v39  ;;  %v2978_v37 = vld [vmem:[#allocation2 + $0x48] sm:$0xff] }
 0x33a   : > { %3357 = vmatmul.mubr.f32.gmra.mrb[22].mxu0 %v3047_v45  ;;  %3202 = vmatmul.mubr.f32.gmra.mrb[24].mxu1 %v3049_v22 }
 0x33b   : > { %3362 = vmatprep.mubr.f32.mxu0 %v3052_v60  ;;  %3207 = vmatprep.mubr.f32.mxu1 %v3054_v31 }
 0x33e   : > { %3363 = vmatmul.mubr.f32.gmra.mrb[24].mxu0 %v3051_v29  ;;  %3208 = vmatmul.mubr.f32.gmra.mrb[26].mxu1 %v3053_v48  ;;  %v2979_v29 = vld [vmem:[#allocation2 + $0x50] sm:$0xff] }
 0x33f   : > { %3368 = vmatprep.mubr.f32.mxu0 %v3056_v3  ;;  %3213 = vmatprep.mubr.f32.mxu1 %v3058_v8 }
 0x342   : > { %3369 = vmatmul.mubr.f32.gmra.mrb[26].mxu0 %v3055_v19  ;;  %3214 = vmatmul.mubr.f32.gmra.mrb[28].mxu1 %v3057_v18  ;;  %v2980_v19 = vld [vmem:[#allocation2 + $0x58] sm:$0xff] }
 0x343   : > { %3374 = vmatprep.mubr.f32.mxu0 %v3060_v46  ;;  %3219 = vmatprep.mubr.f32.mxu1 %v3062_v11 }
 0x346   : > { %3375 = vmatmul.mubr.f32.gmra.mrb[28].mxu0 %v3059_v33  ;;  %3220 = vmatmul.mubr.f32.gmra.mrb[30].mxu1 %v3061_v21 }
 0x347   : > { %3380 = vmatprep.mubr.f32.mxu0 %v3064_v1  ;;  %v2981_v1 = vld [vmem:[#allocation2 + $0x60] sm:$0xff] }
 0x34a   : > { %3381 = vmatmul.mubr.f32.gmra.mrb[30].mxu0 %v3063_v6 }
 0x3dd   : > { %v3131_v17 = vpop.f32.mrb[0].mxu1 }
 0x3de   : > { %v3133_v54 = vpop.f32.mrb[1].mxu1 }
 0x3e1   : > { %v3292_v10 = vpop.f32.mrb[0].mxu0  ;;  %v3137_v41 = vpop.f32.mrb[2].mxu1 }
 0x3e2   : > { %v3293_v53 = vadd.f32 %v3292_v10, %v3131_v17  ;;  %v3294_v55 = vpop.f32.mrb[1].mxu0  ;;  %v3139_v30 = vpop.f32.mrb[3].mxu1 }
 0x3e3   : > { %v3295_v24 = vadd.f32 %v3294_v55, %v3133_v54 }
 0x3e4   : > { %v3387_v58 = vadd.f32 %v3293_v53, %v2969_v59  ;;  %v2982_v59 = vld [vmem:[#allocation2 + $0x68] sm:$0xff] }
 0x3e5   : > { %v3388_v57 = vadd.f32 %v3295_v24, %v2970_v56  ;;  %v3298_v7 = vpop.f32.mrb[2].mxu0  ;;  %v3143_v25 = vpop.f32.mrb[4].mxu1 }
 0x3e6   : > { %3419 = vst [vmem:[#allocation2] sm:$0xff] %v3387_v58  ;;  %v3299_v44 = vadd.f32 %v3298_v7, %v3137_v41  ;;  %v3300_v4 = vpop.f32.mrb[3].mxu0  ;;  %v3145_v32 = vpop.f32.mrb[5].mxu1 }
 0x3e7   : > { %3420 = vst.msk [vmem:[#allocation2 + $0x8] sm:$0xff] %vm600_vm1, %v3388_v57  ;;  %v3301_v26 = vadd.f32 %v3300_v4, %v3139_v30  ;;  %v2983_v30 = vld [vmem:[#allocation2 + $0x70] sm:$0xff] }
 0x3e8   : > { %v3389_v52 = vadd.f32 %v3299_v44, %v2971_v42  ;;  %v2984_v42 = vld [vmem:[#allocation2 + $0x78] sm:$0xff] }
 0x3e9   : > { %v3390_v5 = vadd.f32 %v3301_v26, %v2972_v16  ;;  %v3304_v35 = vpop.f32.mrb[4].mxu0  ;;  %v3149_v9 = vpop.f32.mrb[6].mxu1 }
 0x3ea   : > { %3421 = vst [vmem:[#allocation2 + $0x10] sm:$0xff] %v3389_v52  ;;  %v3305_v15 = vadd.f32 %v3304_v35, %v3143_v25  ;;  %v3306_v34 = vpop.f32.mrb[5].mxu0  ;;  %v3151_v0 = vpop.f32.mrb[7].mxu1 }
 0x3eb   : > { %3422 = vst.msk [vmem:[#allocation2 + $0x18] sm:$0xff] %vm600_vm1, %v3390_v5  ;;  %v3307_v63 = vadd.f32 %v3306_v34, %v3145_v32  ;;  %v2985_v32 = vld [vmem:[#allocation2 + $0x80] sm:$0xff] }
 0x3ec   : > { %v3391_v43 = vadd.f32 %v3305_v15, %v2973_v27  ;;  %v2986_v27 = vld [vmem:[#allocation2 + $0x88] sm:$0xff] }
 0x3ed   : > { %v3392_v61 = vadd.f32 %v3307_v63, %v2974_v49  ;;  %v3310_v36 = vpop.f32.mrb[6].mxu0  ;;  %v3155_v13 = vpop.f32.mrb[8].mxu1 }
 0x3ee   : > { %3423 = vst [vmem:[#allocation2 + $0x20] sm:$0xff] %v3391_v43  ;;  %v3311_v50 = vadd.f32 %v3310_v36, %v3149_v9  ;;  %v3312_v14 = vpop.f32.mrb[7].mxu0  ;;  %v3157_v51 = vpop.f32.mrb[9].mxu1 }
 0x3ef   : > { %3424 = vst.msk [vmem:[#allocation2 + $0x28] sm:$0xff] %vm600_vm1, %v3392_v61  ;;  %v3313_v23 = vadd.f32 %v3312_v14, %v3151_v0  ;;  %v2987_v0 = vld [vmem:[#allocation2 + $0x90] sm:$0xff] }
 0x3f0   : > { %v3393_v38 = vadd.f32 %v3311_v50, %v2975_v47  ;;  %v2988_v47 = vld [vmem:[#allocation2 + $0x98] sm:$0xff] }
 0x3f1   : > { %v3394_v2 = vadd.f32 %v3313_v23, %v2976_v20  ;;  %v3316_v62 = vpop.f32.mrb[8].mxu0  ;;  %v3161_v28 = vpop.f32.mrb[10].mxu1 }
 0x3f2   : > { %3425 = vst [vmem:[#allocation2 + $0x30] sm:$0xff] %v3393_v38  ;;  %v3317_v40 = vadd.f32 %v3316_v62, %v3155_v13  ;;  %v3318_v39 = vpop.f32.mrb[9].mxu0  ;;  %v3163_v45 = vpop.f32.mrb[11].mxu1 }
 0x3f3   : > { %3426 = vst.msk [vmem:[#allocation2 + $0x38] sm:$0xff] %vm600_vm1, %v3394_v2  ;;  %v3319_v22 = vadd.f32 %v3318_v39, %v3157_v51  ;;  %v2989_v51 = vld [vmem:[#allocation2 + $0xa0] sm:$0xff] }
 0x3f4   : > { %v3395_v60 = vadd.f32 %v3317_v40, %v2977_v12  ;;  %v2990_v12 = vld [vmem:[#allocation2 + $0xa8] sm:$0xff] }
 0x3f5   : > { %v3396_v31 = vadd.f32 %v3319_v22, %v2978_v37  ;;  %v3322_v48 = vpop.f32.mrb[10].mxu0  ;;  %v3167_v3 = vpop.f32.mrb[12].mxu1 }
 0x3f6   : > { %3427 = vst [vmem:[#allocation2 + $0x40] sm:$0xff] %v3395_v60  ;;  %v3323_v8 = vadd.f32 %v3322_v48, %v3161_v28  ;;  %v3324_v18 = vpop.f32.mrb[11].mxu0  ;;  %v3169_v46 = vpop.f32.mrb[13].mxu1 }
 0x3f7   : > { %3428 = vst.msk [vmem:[#allocation2 + $0x48] sm:$0xff] %vm600_vm1, %v3396_v31  ;;  %v3325_v11 = vadd.f32 %v3324_v18, %v3163_v45  ;;  %v2991_v45 = vld [vmem:[#allocation2 + $0xb0] sm:$0xff] }
 0x3f8   : > { %v3397_v33 = vadd.f32 %v3323_v8, %v2979_v29  ;;  %v2992_v29 = vld [vmem:[#allocation2 + $0xb8] sm:$0xff] }
 0x3f9   : > { %v3398_v21 = vadd.f32 %v3325_v11, %v2980_v19  ;;  %v3328_v6 = vpop.f32.mrb[12].mxu0  ;;  %v3173_v17 = vpop.f32.mrb[14].mxu1 }
 0x3fa   : > { %3429 = vst [vmem:[#allocation2 + $0x50] sm:$0xff] %v3397_v33  ;;  %v3329_v54 = vadd.f32 %v3328_v6, %v3167_v3  ;;  %v3330_v10 = vpop.f32.mrb[13].mxu0  ;;  %v3175_v41 = vpop.f32.mrb[15].mxu1 }
 0x3fb   : > { %3430 = vst.msk [vmem:[#allocation2 + $0x58] sm:$0xff] %vm600_vm1, %v3398_v21  ;;  %v3331_v53 = vadd.f32 %v3330_v10, %v3169_v46  ;;  %v2993_v46 = vld [vmem:[#allocation2 + $0xc0] sm:$0xff] }
 0x3fc   : > { %v3399_v56 = vadd.f32 %v3329_v54, %v2981_v1  ;;  %v2994_v1 = vld [vmem:[#allocation2 + $0xc8] sm:$0xff] }
 0x3fd   : > { %v3400_v55 = vadd.f32 %v3331_v53, %v2982_v59  ;;  %v3334_v24 = vpop.f32.mrb[14].mxu0  ;;  %v3179_v58 = vpop.f32.mrb[16].mxu1 }
 0x3fe   : > { %3431 = vst [vmem:[#allocation2 + $0x60] sm:$0xff] %v3399_v56  ;;  %v3335_v57 = vadd.f32 %v3334_v24, %v3173_v17  ;;  %v3336_v7 = vpop.f32.mrb[15].mxu0  ;;  %v3181_v25 = vpop.f32.mrb[17].mxu1 }
 0x3ff   : > { %3432 = vst.msk [vmem:[#allocation2 + $0x68] sm:$0xff] %vm600_vm1, %v3400_v55  ;;  %v3337_v44 = vadd.f32 %v3336_v7, %v3175_v41  ;;  %v2995_v41 = vld [vmem:[#allocation2 + $0xd0] sm:$0xff] }
 0x400   : > { %v3401_v16 = vadd.f32 %v3335_v57, %v2983_v30  ;;  %v2996_v30 = vld [vmem:[#allocation2 + $0xd8] sm:$0xff] }
 0x401   : > { %v3402_v4 = vadd.f32 %v3337_v44, %v2984_v42  ;;  %v3340_v26 = vpop.f32.mrb[16].mxu0  ;;  %v3185_v52 = vpop.f32.mrb[18].mxu1 }
 0x402   : > { %3433 = vst [vmem:[#allocation2 + $0x70] sm:$0xff] %v3401_v16  ;;  %v3341_v5 = vadd.f32 %v3340_v26, %v3179_v58  ;;  %v3342_v35 = vpop.f32.mrb[17].mxu0  ;;  %v3187_v9 = vpop.f32.mrb[19].mxu1 }
 0x403   : > { %3434 = vst.msk [vmem:[#allocation2 + $0x78] sm:$0xff] %vm600_vm1, %v3402_v4  ;;  %v3343_v15 = vadd.f32 %v3342_v35, %v3181_v25  ;;  %v2997_v25 = vld [vmem:[#allocation2 + $0xe0] sm:$0xff] }
 0x404   : > { %v3403_v49 = vadd.f32 %v3341_v5, %v2985_v32  ;;  %v2998_v32 = vld [vmem:[#allocation2 + $0xe8] sm:$0xff] }
 0x405   : > { %v3404_v34 = vadd.f32 %v3343_v15, %v2986_v27  ;;  %v3346_v63 = vpop.f32.mrb[18].mxu0  ;;  %v3191_v43 = vpop.f32.mrb[20].mxu1 }
 0x406   : > { %3435 = vst [vmem:[#allocation2 + $0x80] sm:$0xff] %v3403_v49  ;;  %v3347_v61 = vadd.f32 %v3346_v63, %v3185_v52  ;;  %v3348_v36 = vpop.f32.mrb[19].mxu0  ;;  %v3193_v13 = vpop.f32.mrb[21].mxu1 }
 0x407   : > { %3436 = vst.msk [vmem:[#allocation2 + $0x88] sm:$0xff] %vm600_vm1, %v3404_v34  ;;  %v3349_v50 = vadd.f32 %v3348_v36, %v3187_v9  ;;  %v2999_v9 = vld [vmem:[#allocation2 + $0xf0] sm:$0xff]  ;;  %v3000_v34 = vld [vmem:[#allocation2 + $0xf8] sm:$0xff]  ;;  %v3456_v36 = vld [vmem:[#allocation2 + $0x8] sm:$0xff] (!%p3644_p11) }
 0x408   : > { %v3405_v20 = vadd.f32 %v3347_v61, %v2987_v0  ;;  %3488 = vst.msk [vmem:[%s6641_s4 + $0x8] sm:$0xff] (!%p3644_p11), %vm600_vm1, %v3456_v36 }
 0x409   : > { %v3406_v14 = vadd.f32 %v3349_v50, %v2988_v47  ;;  %v3352_v23 = vpop.f32.mrb[20].mxu0  ;;  %v3197_v38 = vpop.f32.mrb[22].mxu1  ;;  %v3455_v47 = vld [vmem:[#allocation2] sm:$0xff] (!%p3644_p11)  ;;  %v3458_v50 = vld [vmem:[#allocation2 + $0x18] sm:$0xff] (!%p3644_p11) }
 0x40a   : > { %3437 = vst [vmem:[#allocation2 + $0x90] sm:$0xff] %v3405_v20  ;;  %v3353_v2 = vadd.f32 %v3352_v23, %v3191_v43  ;;  %v3354_v62 = vpop.f32.mrb[21].mxu0  ;;  %v3199_v28 = vpop.f32.mrb[23].mxu1  ;;  %3487 = vst [vmem:[%s6641_s4] sm:$0xff] (!%p3644_p11), %v3455_v47  ;;  %v3459_v20 = vld [vmem:[#allocation2 + $0x20] sm:$0xff] (!%p3644_p11)  ;;  %v3462_v23 = vld [vmem:[#allocation2 + $0x38] sm:$0xff] (!%p3644_p11) }
 0x40b   : > { %3438 = vst.msk [vmem:[#allocation2 + $0x98] sm:$0xff] %vm600_vm1, %v3406_v14  ;;  %v3355_v40 = vadd.f32 %v3354_v62, %v3193_v13  ;;  %v3457_v13 = vld [vmem:[#allocation2 + $0x10] sm:$0xff] (!%p3644_p11)  ;;  %v3460_v14 = vld [vmem:[#allocation2 + $0x28] sm:$0xff] (!%p3644_p11)  ;;  %3490 = vst.msk [vmem:[%s6641_s4 + $0x18] sm:$0xff] (!%p3644_p11), %vm600_vm1, %v3458_v50 }
 0x40c   : > { %v3407_v37 = vadd.f32 %v3353_v2, %v2989_v51  ;;  %3489 = vst [vmem:[%s6641_s4 + $0x10] sm:$0xff] (!%p3644_p11), %v3457_v13  ;;  %3491 = vst [vmem:[%s6641_s4 + $0x20] sm:$0xff] (!%p3644_p11), %v3459_v20  ;;  %v3461_v51 = vld [vmem:[#allocation2 + $0x30] sm:$0xff] (!%p3644_p11)  ;;  %v3464_v2 = vld [vmem:[#allocation2 + $0x48] sm:$0xff] (!%p3644_p11) }
 0x40d   : > { %v3408_v39 = vadd.f32 %v3355_v40, %v2990_v12  ;;  %v3358_v22 = vpop.f32.mrb[22].mxu0  ;;  %v3203_v60 = vpop.f32.mrb[24].mxu1  ;;  %3492 = vst.msk [vmem:[%s6641_s4 + $0x28] sm:$0xff] (!%p3644_p11), %vm600_vm1, %v3460_v14  ;;  %3493 = vst [vmem:[%s6641_s4 + $0x30] sm:$0xff] (!%p3644_p11), %v3461_v51  ;;  %v3465_v12 = vld [vmem:[#allocation2 + $0x50] sm:$0xff] (!%p3644_p11)  ;;  %v3466_v62 = vld [vmem:[#allocation2 + $0x58] sm:$0xff] (!%p3644_p11) }
 0x40e   : > { %3439 = vst [vmem:[#allocation2 + $0xa0] sm:$0xff] %v3407_v37  ;;  %v3359_v31 = vadd.f32 %v3358_v22, %v3197_v38  ;;  %v3360_v48 = vpop.f32.mrb[23].mxu0  ;;  %v3205_v3 = vpop.f32.mrb[25].mxu1  ;;  %v3463_v38 = vld [vmem:[#allocation2 + $0x40] sm:$0xff] (!%p3644_p11)  ;;  %3494 = vst.msk [vmem:[%s6641_s4 + $0x38] sm:$0xff] (!%p3644_p11), %vm600_vm1, %v3462_v23  ;;  %v3468_v40 = vld [vmem:[#allocation2 + $0x68] sm:$0xff] (!%p3644_p11) }
 0x40f   : > { %3440 = vst.msk [vmem:[#allocation2 + $0xa8] sm:$0xff] %vm600_vm1, %v3408_v39  ;;  %v3361_v8 = vadd.f32 %v3360_v48, %v3199_v28  ;;  %3495 = vst [vmem:[%s6641_s4 + $0x40] sm:$0xff] (!%p3644_p11), %v3463_v38  ;;  %v3467_v28 = vld [vmem:[#allocation2 + $0x60] sm:$0xff] (!%p3644_p11)  ;;  %v3469_v37 = vld [vmem:[#allocation2 + $0x70] sm:$0xff] (!%p3644_p11) }
 0x410   : > { %v3409_v19 = vadd.f32 %v3359_v31, %v2991_v45  ;;  %3496 = vst.msk [vmem:[%s6641_s4 + $0x48] sm:$0xff] (!%p3644_p11), %vm600_vm1, %v3464_v2  ;;  %3497 = vst [vmem:[%s6641_s4 + $0x50] sm:$0xff] (!%p3644_p11), %v3465_v12  ;;  %v3470_v39 = vld [vmem:[#allocation2 + $0x78] sm:$0xff] (!%p3644_p11)  ;;  %v3471_v45 = vld [vmem:[#allocation2 + $0x80] sm:$0xff] (!%p3644_p11) }
 0x411   : > { %v3410_v18 = vadd.f32 %v3361_v8, %v2992_v29  ;;  %v3364_v11 = vpop.f32.mrb[24].mxu0  ;;  %v3209_v33 = vpop.f32.mrb[26].mxu1  ;;  %3498 = vst.msk [vmem:[%s6641_s4 + $0x58] sm:$0xff] (!%p3644_p11), %vm600_vm1, %v3466_v62  ;;  %3499 = vst [vmem:[%s6641_s4 + $0x60] sm:$0xff] (!%p3644_p11), %v3467_v28  ;;  %v3472_v22 = vld [vmem:[#allocation2 + $0x88] sm:$0xff] (!%p3644_p11) }
 0x412   : > { %3441 = vst [vmem:[#allocation2 + $0xb0] sm:$0xff] %v3409_v19  ;;  %v3365_v21 = vadd.f32 %v3364_v11, %v3203_v60  ;;  %v3366_v6 = vpop.f32.mrb[25].mxu0  ;;  %v3211_v17 = vpop.f32.mrb[27].mxu1  ;;  %3500 = vst.msk [vmem:[%s6641_s4 + $0x68] sm:$0xff] (!%p3644_p11), %vm600_vm1, %v3468_v40  ;;  %v3473_v60 = vld [vmem:[#allocation2 + $0x90] sm:$0xff] (!%p3644_p11)  ;;  %v3474_v31 = vld [vmem:[#allocation2 + $0x98] sm:$0xff] (!%p3644_p11) }
 0x413   : > { %3442 = vst.msk [vmem:[#allocation2 + $0xb8] sm:$0xff] %vm600_vm1, %v3410_v18  ;;  %v3367_v54 = vadd.f32 %v3366_v6, %v3205_v3  ;;  %3501 = vst [vmem:[%s6641_s4 + $0x70] sm:$0xff] (!%p3644_p11), %v3469_v37 }
 0x414   : > { %v3411_v59 = vadd.f32 %v3365_v21, %v2993_v46  ;;  %3502 = vst.msk [vmem:[%s6641_s4 + $0x78] sm:$0xff] (!%p3644_p11), %vm600_vm1, %v3470_v39  ;;  %3503 = vst [vmem:[%s6641_s4 + $0x80] sm:$0xff] (!%p3644_p11), %v3471_v45 }
 0x415   : > { %v3412_v10 = vadd.f32 %v3367_v54, %v2994_v1  ;;  %v3370_v53 = vpop.f32.mrb[26].mxu0  ;;  %v3215_v56 = vpop.f32.mrb[28].mxu1  ;;  %3504 = vst.msk [vmem:[%s6641_s4 + $0x88] sm:$0xff] (!%p3644_p11), %vm600_vm1, %v3472_v22  ;;  %v3475_v29 = vld [vmem:[#allocation2 + $0xa0] sm:$0xff] (!%p3644_p11)  ;;  %3505 = vst [vmem:[%s6641_s4 + $0x90] sm:$0xff] (!%p3644_p11), %v3473_v60 }
 0x416   : > { %3443 = vst [vmem:[#allocation2 + $0xc0] sm:$0xff] %v3411_v59  ;;  %v3371_v55 = vadd.f32 %v3370_v53, %v3209_v33  ;;  %v3372_v24 = vpop.f32.mrb[27].mxu0  ;;  %v3217_v58 = vpop.f32.mrb[29].mxu1  ;;  %3506 = vst.msk [vmem:[%s6641_s4 + $0x98] sm:$0xff] (!%p3644_p11), %vm600_vm1, %v3474_v31  ;;  %v3476_v48 = vld [vmem:[#allocation2 + $0xa8] sm:$0xff] (!%p3644_p11) }
 0x417   : > { %3444 = vst.msk [vmem:[#allocation2 + $0xc8] sm:$0xff] %vm600_vm1, %v3412_v10  ;;  %v3373_v57 = vadd.f32 %v3372_v24, %v3211_v17  ;;  %3507 = vst [vmem:[%s6641_s4 + $0xa0] sm:$0xff] (!%p3644_p11), %v3475_v29 }
 0x418   : > { %v3413_v42 = vadd.f32 %v3371_v55, %v2995_v41  ;;  %3508 = vst.msk [vmem:[%s6641_s4 + $0xa8] sm:$0xff] (!%p3644_p11), %vm600_vm1, %v3476_v48 }
 0x419   : > { %v3414_v7 = vadd.f32 %v3373_v57, %v2996_v30  ;;  %v3376_v44 = vpop.f32.mrb[28].mxu0  ;;  %v3221_v16 = vpop.f32.mrb[30].mxu1  ;;  %v3477_v3 = vld [vmem:[#allocation2 + $0xb0] sm:$0xff] (!%p3644_p11) }
 0x41a   : > { %3445 = vst [vmem:[#allocation2 + $0xd0] sm:$0xff] %v3413_v42  ;;  %v3377_v4 = vadd.f32 %v3376_v44, %v3215_v56  ;;  %v3378_v26 = vpop.f32.mrb[29].mxu0  ;;  %v3223_v52 = vpop.f32.mrb[31].mxu1  ;;  %v3478_v8 = vld [vmem:[#allocation2 + $0xb8] sm:$0xff] (!%p3644_p11)  ;;  %3509 = vst [vmem:[%s6641_s4 + $0xb0] sm:$0xff] (!%p3644_p11), %v3477_v3 }
 0x41b   : > { %3446 = vst.msk [vmem:[#allocation2 + $0xd8] sm:$0xff] %vm600_vm1, %v3414_v7  ;;  %v3379_v5 = vadd.f32 %v3378_v26, %v3217_v58  ;;  %3510 = vst.msk [vmem:[%s6641_s4 + $0xb8] sm:$0xff] (!%p3644_p11), %vm600_vm1, %v3478_v8 }
 0x41c   : > { %v3415_v27 = vadd.f32 %v3377_v4, %v2997_v25 }
 0x41d   : > { %v3416_v35 = vadd.f32 %v3379_v5, %v2998_v32  ;;  %v3382_v15 = vpop.f32.mrb[30].mxu0  ;;  %3454 = sbr.rel (%p3644_p11) target bundleno = 1068 (0x42c), region = 67  ;;  %v3479_v19 = vld [vmem:[#allocation2 + $0xc0] sm:$0xff] (!%p3644_p11) }
 0x41e   : > { %3447 = vst [vmem:[#allocation2 + $0xe0] sm:$0xff] %v3415_v27  ;;  %v3383_v49 = vadd.f32 %v3382_v15, %v3221_v16  ;;  %v3384_v0 = vpop.f32.mrb[31].mxu0  ;;  %v3480_v18 = vld [vmem:[#allocation2 + $0xc8] sm:$0xff] (!%p3644_p11)  ;;  %3511 = vst [vmem:[%s6641_s4 + $0xc0] sm:$0xff] (!%p3644_p11), %v3479_v19 }
 0x41f   : > { %3448 = vst.msk [vmem:[#allocation2 + $0xe8] sm:$0xff] %vm600_vm1, %v3416_v35  ;;  %v3385_v63 = vadd.f32 %v3384_v0, %v3223_v52  ;;  %3512 = vst.msk [vmem:[%s6641_s4 + $0xc8] sm:$0xff] (!%p3644_p11), %vm600_vm1, %v3480_v18 }
 0x420   : > { %v3417_v43 = vadd.f32 %v3383_v49, %v2999_v9 }
 0x421   : > { %v3418_v61 = vadd.f32 %v3385_v63, %v3000_v34  ;;  %v3481_v46 = vld [vmem:[#allocation2 + $0xd0] sm:$0xff] (!%p3644_p11) }
 0x422   : > { %3449 = vst [vmem:[#allocation2 + $0xf0] sm:$0xff] %v3417_v43  ;;  %3513 = vst [vmem:[%s6641_s4 + $0xd0] sm:$0xff] (!%p3644_p11), %v3481_v46  ;;  %v3482_v11 = vld [vmem:[#allocation2 + $0xd8] sm:$0xff] (!%p3644_p11) }
 0x423   : > { %3450 = vst.msk [vmem:[#allocation2 + $0xf8] sm:$0xff] %vm600_vm1, %v3418_v61  ;;  %3514 = vst.msk [vmem:[%s6641_s4 + $0xd8] sm:$0xff] (!%p3644_p11), %vm600_vm1, %v3482_v11 }
 0x425   : > { %v3483_v33 = vld [vmem:[#allocation2 + $0xe0] sm:$0xff] }
 0x426   : > { %v3484_v21 = vld [vmem:[#allocation2 + $0xe8] sm:$0xff]  ;;  %3515 = vst [vmem:[%s6641_s4 + $0xe0] sm:$0xff] %v3483_v33 }
 0x427   : > { %3516 = vst.msk [vmem:[%s6641_s4 + $0xe8] sm:$0xff] %vm600_vm1, %v3484_v21 }
 0x429   : > { %v3485_v1 = vld [vmem:[#allocation2 + $0xf0] sm:$0xff] }
 0x42a   : > { %v3486_v6 = vld [vmem:[#allocation2 + $0xf8] sm:$0xff]  ;;  %3517 = vst [vmem:[%s6641_s4 + $0xf0] sm:$0xff] %v3485_v1 }
 0x42b   : > { %3518 = vst.msk [vmem:[%s6641_s4 + $0xf8] sm:$0xff] %vm600_vm1, %v3486_v6 }
 0x42c PF: > { %s14_s19 = sadd.s32 1, %s4149_s19   ;;  %s7064_s15 = smov %s4137_s16 }
 0x42d   : > { %p11_p12 = scmp.ge.s32.totalorder %s14_s19, 4   ;;  %s7065_s16 = smov %s4213_s23 }
 0x42e   : > { %s7066_s17 = smov %s4145_s18  ;;  %s7067_s18 = smov %s7069_s20 }
 0x42f   :  { %13 = sbr.rel (!%p11_p12) target bundleno = 3 (0x3), region = 111 }

</bundles_post_ra>
